<compile_context>
chip_gen: v7x
topology: tpu7x:2x2x1
jax: 0.10.0
libtpu: 0.0.40
codegen_flags: <defaults>
</compile_context>

<pallas_src>
import math

import jax
import jax.numpy as jnp
from jax.experimental import pallas as pl
from jax.experimental.pallas import tpu as pltpu


EMBED_DIM = 32
N_HEADS = 8
HEAD_DIM = EMBED_DIM // N_HEADS
EXPANSION = 4
HIDDEN = EXPANSION * EMBED_DIM
LN_EPS = 1e-5


def _layer_norm(x, gamma, beta):
    mean = jnp.mean(x, axis=-1, keepdims=True)
    var = jnp.mean((x - mean) ** 2, axis=-1, keepdims=True)
    return (x - mean) * jax.lax.rsqrt(var + LN_EPS) * gamma + beta


def _make_kernel(*, n_heads, head_dim, seqs_per_block, seq_len, embed_dim, hidden):
    H, D, Bb, N, E, HID = n_heads, head_dim, seqs_per_block, seq_len, embed_dim, hidden
    G = Bb * H          # (sequence, head) pairs in this block
    R = Bb * N          # rows of the [R, E] slab
    inv_sqrt_d = 1.0 / math.sqrt(D)

    def kernel(qkv_ref, val_ref, wqkv_ref, wo_ref, w1_ref, w2_ref, vec_ref, out_ref):
        # qkv_ref : [3, G*N, D]  query/key/value, head-major rows (b, h, n)
        # val_ref : [R, E]       value in sequence layout (residual input)
        x_val = val_ref[...]

        # Packed small parameter vectors (one operand instead of seven).
        b1   = vec_ref[0:1, :HID]
        bo   = vec_ref[1:2, :E]
        b2   = vec_ref[2:3, :E]
        g1   = vec_ref[3:4, :E]
        bln1 = vec_ref[4:5, :E]
        g2   = vec_ref[5:6, :E]
        bln2 = vec_ref[6:7, :E]

        # Fused Q/K/V projection: ONE batched (s=3) matmul with the shared
        # per-head [D, D] weights (matches the per-head bias-free nn.Linear).
        proj = jnp.einsum("srd,sdf->srf", qkv_ref[...], wqkv_ref[...],
                          preferred_element_type=jnp.float32)        # [3, G*N, D]
        qh = proj[0].reshape(G, N, D)
        kh = proj[1].reshape(G, N, D)
        vh = proj[2].reshape(G, N, D)

        # Scaled dot-product attention for ALL (sequence, head) pairs at once:
        # one batched einsum per stage, no per-head loop, no VMEM scratch.
        s = jnp.einsum("gqd,gkd->gqk", qh, kh,
                       preferred_element_type=jnp.float32) * inv_sqrt_d
        s = s - jnp.max(s, axis=-1, keepdims=True)
        p = jnp.exp(s)
        p = p * pl.reciprocal(jnp.sum(p, axis=-1, keepdims=True), approx=True)
        ctx = jnp.einsum("gqk,gkd->gqd", p, vh,
                         preferred_element_type=jnp.float32)          # [G, N, D]

        # Output projection: per-head slice of Wo^T batched over g, then sum
        # over the head axis (plain vreg adds) folds heads back together
        # without any in-kernel head-relayout.
        y = jnp.einsum("gnd,gde->gne", ctx, wo_ref[...],
                       preferred_element_type=jnp.float32)            # [G, N, E]
        attn_out = y.reshape(Bb, H, N, E).sum(axis=1).reshape(R, E) + bo

        # Residual with `value` (matches reference forward), LayerNorm 1.
        attn_res = attn_out + x_val
        norm1 = _layer_norm(attn_res, g1, bln1)
        # TODO(synk): nn.Dropout omitted (eval-mode semantics -> identity).

        # Feed-forward: Linear -> ReLU -> Linear, residual, LayerNorm 2.
        h1 = jnp.dot(norm1, w1_ref[...], preferred_element_type=jnp.float32) + b1
        h1 = jnp.maximum(h1, 0.0)
        ff = jnp.dot(h1, w2_ref[...], preferred_element_type=jnp.float32) + b2

        out_ref[...] = _layer_norm(ff + norm1, g2, bln2)

    return kernel


def _device_info():
    """(#TensorCores, VMEM capacity bytes) with conservative fallbacks."""
    try:
        kind = jax.devices()[0].device_kind.lower()
    except Exception:
        kind = ""
    is_v7 = ("v7" in kind) or ("7x" in kind)
    n_tc = 2 if is_v7 else 1
    try:
        vmem_cap = int(pltpu.get_tpu_info().vmem_capacity_bytes)
    except Exception:
        vmem_cap = (64 if is_v7 else 128) * 1024 * 1024
    return n_tc, vmem_cap


def _choose_seqs_per_block(batch, seq_len, embed_dim, hidden, n_heads,
                           n_tensorcores, vmem_budget_bytes):
    """Largest divisor of `batch` that fits VMEM; grid=1 on single-TC chips,
    >= 2 grid steps when 2 TensorCores are available (v7x)."""
    N, E, H, HID = seq_len, embed_dim, n_heads, hidden
    per_seq = 4 * N * (2 * 3 * E          # qkv block (double-buffered)
                       + 2 * E + 2 * E    # value block + output block (double-buffered)
                       + 3 * E            # q/k/v projections
                       + 2 * H * N        # attention scores + probs
                       + E + H * E        # context + per-head output-proj intermediate
                       + 2 * HID          # FFN hidden (+ ReLU copy)
                       + 12 * E)          # misc [rows, E] temporaries
    cap = max(1, vmem_budget_bytes // max(per_seq, 1))
    if n_tensorcores <= 1 or batch == 1:
        target = batch                      # single TC: grid=1 (no step overhead)
    else:
        target = max(1, -(-batch // n_tensorcores))   # keep >= n_tc grid steps
    target = min(target, cap)
    bb = 1
    for d in range(1, batch + 1):
        if batch % d == 0 and d <= target:
            bb = d
    if bb != batch and (bb * N) % 8 != 0:
        bb = batch   # full-array block sidesteps the (8,128) divisibility rule
    return bb


def init_params(rng, embed_dim=EMBED_DIM, n_heads=N_HEADS, hidden=HIDDEN):
    head_dim = embed_dim // n_heads
    keys = jax.random.split(rng, 8)
    scale = 0.02
    return {
        "Wq": scale * jax.random.normal(keys[0], (head_dim, head_dim), jnp.float32),
        "Wk": scale * jax.random.normal(keys[1], (head_dim, head_dim), jnp.float32),
        "Wv": scale * jax.random.normal(keys[2], (head_dim, head_dim), jnp.float32),
        "Wo": scale * jax.random.normal(keys[3], (embed_dim, embed_dim), jnp.float32),
        "bo": scale * jax.random.normal(keys[4], (embed_dim,), jnp.float32),
        "W1": scale * jax.random.normal(keys[5], (hidden, embed_dim), jnp.float32),
        "b1": scale * jax.random.normal(keys[6], (hidden,), jnp.float32),
        "W2": scale * jax.random.normal(keys[7], (embed_dim, hidden), jnp.float32),
        "b2": jnp.zeros((embed_dim,), jnp.float32),
        # PyTorch LayerNorm default init: weight=1, bias=0.
        "g1": jnp.ones((embed_dim,), jnp.float32),
        "b1ln": jnp.zeros((embed_dim,), jnp.float32),
        "g2": jnp.ones((embed_dim,), jnp.float32),
        "b2ln": jnp.zeros((embed_dim,), jnp.float32),
    }


def self_attention_block(key, query, value, params, n_heads=N_HEADS):
    B, N, E = key.shape
    assert E % n_heads == 0
    H = n_heads
    D = E // H
    HID = params["W1"].shape[0]
    P = max(HID, E)

    n_tc, vmem_cap = _device_info()
    bb = _choose_seqs_per_block(B, N, E, HID, H, n_tc, vmem_cap // 3)
    G = bb * H
    R = bb * N
    grid_b = B // bb

    # ---- plain-JAX layout plumbing (wrapper side, not compute) ----
    def head_major(x):   # [B, N, E] -> [B*H, N, D]
        return x.reshape(B, N, H, D).transpose(0, 2, 1, 3).reshape(B * H, N, D)

    qkv_hm = jnp.stack(
        [head_major(query), head_major(key), head_major(value)], axis=0
    ).reshape(3, B * H * N, D)                                  # [3, B*H*N, D]
    value2d = value.reshape(B * N, E)                           # residual input

    wqkv = jnp.stack([params["Wq"].T, params["Wk"].T, params["Wv"].T], axis=0)  # [3, D, D]
    wo_rep = jnp.tile(params["Wo"].T.reshape(H, D, E), (bb, 1, 1))              # [G, D, E]
    w1_t = params["W1"].T                                       # [E, HID]
    w2_t = params["W2"].T                                       # [HID, E]

    def _row(vec):
        return jnp.zeros((P,), jnp.float32).at[: vec.shape[0]].set(vec)

    vec_pack = jnp.stack([
        _row(params["b1"]), _row(params["bo"]), _row(params["b2"]),
        _row(params["g1"]), _row(params["b1ln"]),
        _row(params["g2"]), _row(params["b2ln"]),
        jnp.zeros((P,), jnp.float32),
    ], axis=0)                                                  # [8, P]

    grid_spec = pltpu.PrefetchScalarGridSpec(
        num_scalar_prefetch=0,
        grid=(grid_b,),
        in_specs=[
            pl.BlockSpec((3, G * N, D), lambda i: (0, i, 0)),   # qkv (head-major)
            pl.BlockSpec((R, E), lambda i: (i, 0)),             # value (residual)
            pl.BlockSpec((3, D, D), lambda i: (0, 0, 0)),       # Wq/Wk/Wv (shared per head)
            pl.BlockSpec((G, D, E), lambda i: (0, 0, 0)),       # Wo^T per-head slabs
            pl.BlockSpec((E, HID), lambda i: (0, 0)),           # W1^T
            pl.BlockSpec((HID, E), lambda i: (0, 0)),           # W2^T
            pl.BlockSpec((8, P), lambda i: (0, 0)),             # packed bias / LN vectors
        ],
        out_specs=pl.BlockSpec((R, E), lambda i: (i, 0)),
    )

    kernel = _make_kernel(n_heads=H, head_dim=D, seqs_per_block=bb,
                          seq_len=N, embed_dim=E, hidden=HID)

    fn = pl.pallas_call(
        kernel,
        out_shape=jax.ShapeDtypeStruct((B * N, E), jnp.float32),
        grid_spec=grid_spec,
        compiler_params=pltpu.CompilerParams(
            dimension_semantics=("parallel",),
            vmem_limit_bytes=int(min(vmem_cap // 2, 64 * 1024 * 1024)),
        ),
    )
    out = fn(qkv_hm, value2d, wqkv, wo_rep, w1_t, w2_t, vec_pack)
    return out.reshape(B, N, E)


# ----------------------------- pure-JAX reference -----------------------------
def _linear(x, W, b=None):
    y = jnp.einsum("...i,oi->...o", x, W)
    return y if b is None else y + b


def reference_forward(key, query, value, p, n_heads=N_HEADS):
    B, N, E = key.shape
    D = E // n_heads
    k = _linear(key.reshape(B, N, n_heads, D), p["Wk"])
    q = _linear(query.reshape(B, N, n_heads, D), p["Wq"])
    v = _linear(value.reshape(B, N, n_heads, D), p["Wv"])
    q = q.transpose(0, 2, 1, 3)
    k = k.transpose(0, 2, 1, 3)
    v = v.transpose(0, 2, 1, 3)
    prod = jnp.einsum("bhqd,bhkd->bhqk", q, k) / math.sqrt(D)
    scores = jax.nn.softmax(prod, axis=-1)
    ctx = jnp.einsum("bhqk,bhkd->bhqd", scores, v).transpose(0, 2, 1, 3)
    ctx = ctx.reshape(B, N, E)
    attn_out = _linear(ctx, p["Wo"], p["bo"])
    x = attn_out + value
    n1 = _layer_norm(x, p["g1"], p["b1ln"])
    ff = _linear(jax.nn.relu(_linear(n1, p["W1"], p["b1"])), p["W2"], p["b2"])
    return _layer_norm(ff + n1, p["g2"], p["b2ln"])


if __name__ == "__main__":
    B, N, E = 4, 8, EMBED_DIM
    rng = jax.random.PRNGKey(0)
    r_k, r_q, r_v, r_p = jax.random.split(rng, 4)
    key_in = jax.random.normal(r_k, (B, N, E), jnp.float32)
    query_in = jax.random.normal(r_q, (B, N, E), jnp.float32)
    value_in = jax.random.normal(r_v, (B, N, E), jnp.float32)
    params = init_params(r_p)

    out = jax.block_until_ready(
        self_attention_block(key_in, query_in, value_in, params))
    ref = jax.block_until_ready(
        reference_forward(key_in, query_in, value_in, params))

    # Tolerance 2e-3 covers the EUP approximate reciprocal in the softmax;
    # structural errors would be orders of magnitude larger.
    if not jnp.allclose(out, ref, atol=2e-3, rtol=2e-3):
        max_err = float(jnp.max(jnp.abs(out - ref)))
        raise AssertionError(f"Pallas kernel mismatch, max abs err = {max_err}")

    print("KERNEL_OK")
</pallas_src>

<mosaic_0001>
module attributes {stable_mosaic.version = 11 : i64} {
  func.func @kernel(%arg0: i32, %arg1: memref<3x256x4xf32, #tpu.memory_space<vmem>>, %arg2: memref<32x32xf32, #tpu.memory_space<vmem>>, %arg3: memref<3x4x4xf32, #tpu.memory_space<vmem>>, %arg4: memref<32x4x32xf32, #tpu.memory_space<vmem>>, %arg5: memref<32x128xf32, #tpu.memory_space<vmem>>, %arg6: memref<128x32xf32, #tpu.memory_space<vmem>>, %arg7: memref<8x128xf32, #tpu.memory_space<vmem>>, %arg8: memref<32x32xf32, #tpu.memory_space<vmem>>) attributes {dimension_semantics = [#tpu.dimension_semantics<parallel>], iteration_bounds = array<i64: 1>, scalar_prefetch = 0 : i64, scratch_operands = 0 : i64, tpu.core_type = #tpu.core_type<tc>, window_params = [{transform_indices = @transform_0, window_bounds = array<i64: 3, 256, 4>}, {transform_indices = @transform_1, window_bounds = array<i64: 32, 32>}, {pipeline_mode = #tpu.pipeline_mode<synchronous>, transform_indices = @transform_2, window_bounds = array<i64: 3, 4, 4>}, {pipeline_mode = #tpu.pipeline_mode<synchronous>, transform_indices = @transform_3, window_bounds = array<i64: 32, 4, 32>}, {pipeline_mode = #tpu.pipeline_mode<synchronous>, transform_indices = @transform_4, window_bounds = array<i64: 32, 128>}, {pipeline_mode = #tpu.pipeline_mode<synchronous>, transform_indices = @transform_5, window_bounds = array<i64: 128, 32>}, {pipeline_mode = #tpu.pipeline_mode<synchronous>, transform_indices = @transform_6, window_bounds = array<i64: 8, 128>}, {transform_indices = @transform_7, window_bounds = array<i64: 32, 32>}]} {
    %c0 = arith.constant 0 : index
    %c0_0 = arith.constant 0 : index
    %0 = vector.load %arg2[%c0, %c0_0] : memref<32x32xf32, #tpu.memory_space<vmem>>, vector<32x32xf32>
    %c0_1 = arith.constant 0 : index
    %c0_2 = arith.constant 0 : index
    %1 = vector.load %arg7[%c0_1, %c0_2] : memref<8x128xf32, #tpu.memory_space<vmem>>, vector<1x128xf32>
    %c1 = arith.constant 1 : index
    %c0_3 = arith.constant 0 : index
    %2 = vector.load %arg7[%c1, %c0_3] : memref<8x128xf32, #tpu.memory_space<vmem>>, vector<1x32xf32>
    %c2 = arith.constant 2 : index
    %c0_4 = arith.constant 0 : index
    %3 = vector.load %arg7[%c2, %c0_4] : memref<8x128xf32, #tpu.memory_space<vmem>>, vector<1x32xf32>
    %c3 = arith.constant 3 : index
    %c0_5 = arith.constant 0 : index
    %4 = vector.load %arg7[%c3, %c0_5] : memref<8x128xf32, #tpu.memory_space<vmem>>, vector<1x32xf32>
    %c4 = arith.constant 4 : index
    %c0_6 = arith.constant 0 : index
    %5 = vector.load %arg7[%c4, %c0_6] : memref<8x128xf32, #tpu.memory_space<vmem>>, vector<1x32xf32>
    %c5 = arith.constant 5 : index
    %c0_7 = arith.constant 0 : index
    %6 = vector.load %arg7[%c5, %c0_7] : memref<8x128xf32, #tpu.memory_space<vmem>>, vector<1x32xf32>
    %c6 = arith.constant 6 : index
    %c0_8 = arith.constant 0 : index
    %7 = vector.load %arg7[%c6, %c0_8] : memref<8x128xf32, #tpu.memory_space<vmem>>, vector<1x32xf32>
    %c0_9 = arith.constant 0 : index
    %c0_10 = arith.constant 0 : index
    %c0_11 = arith.constant 0 : index
    %8 = vector.load %arg1[%c0_9, %c0_10, %c0_11] : memref<3x256x4xf32, #tpu.memory_space<vmem>>, vector<3x256x4xf32>
    %c0_12 = arith.constant 0 : index
    %c0_13 = arith.constant 0 : index
    %c0_14 = arith.constant 0 : index
    %9 = vector.load %arg3[%c0_12, %c0_13, %c0_14] : memref<3x4x4xf32, #tpu.memory_space<vmem>>, vector<3x4x4xf32>
    "tpu.trace_start"() <{level = 10 : i32, message = "srd,sdf->srf"}> : () -> ()
    %cst = arith.constant dense<0.000000e+00> : vector<3x256x4xf32>
    %10 = tpu.matmul %8, %9, %cst {dimension_numbers = #tpu.dot_dimension_numbers<[2], [1], [1], [2], [0, 0, 0, 1, 1, 2], [0], [0]>} : vector<3x256x4xf32>, vector<3x4x4xf32>, vector<3x256x4xf32> -> vector<3x256x4xf32>
    "tpu.trace_stop"() : () -> ()
    %11 = vector.extract_strided_slice %10 {offsets = [0, 0, 0], sizes = [1, 256, 4], strides = [1, 1, 1]} : vector<3x256x4xf32> to vector<1x256x4xf32>
    %12 = vector.shape_cast %11 : vector<1x256x4xf32> to vector<256x4xf32>
    %13 = vector.shape_cast %12 : vector<256x4xf32> to vector<32x8x4xf32>
    %14 = vector.extract_strided_slice %10 {offsets = [1, 0, 0], sizes = [1, 256, 4], strides = [1, 1, 1]} : vector<3x256x4xf32> to vector<1x256x4xf32>
    %15 = vector.shape_cast %14 : vector<1x256x4xf32> to vector<256x4xf32>
    %16 = vector.shape_cast %15 : vector<256x4xf32> to vector<32x8x4xf32>
    %17 = vector.extract_strided_slice %10 {offsets = [2, 0, 0], sizes = [1, 256, 4], strides = [1, 1, 1]} : vector<3x256x4xf32> to vector<1x256x4xf32>
    %18 = vector.shape_cast %17 : vector<1x256x4xf32> to vector<256x4xf32>
    %19 = vector.shape_cast %18 : vector<256x4xf32> to vector<32x8x4xf32>
    "tpu.trace_start"() <{level = 10 : i32, message = "gqd,gkd->gqk"}> : () -> ()
    %cst_15 = arith.constant dense<0.000000e+00> : vector<32x8x8xf32>
    %20 = tpu.matmul %13, %16, %cst_15 {dimension_numbers = #tpu.dot_dimension_numbers<[2], [2], [1], [1], [0, 0, 0, 1, 1, 1], [0], [0]>} : vector<32x8x4xf32>, vector<32x8x4xf32>, vector<32x8x8xf32> -> vector<32x8x8xf32>
    "tpu.trace_stop"() : () -> ()
    %cst_16 = arith.constant 5.000000e-01 : f32
    %21 = vector.broadcast %cst_16 : f32 to vector<32x8x8xf32>
    %22 = arith.mulf %20, %21 : vector<32x8x8xf32>
    %cst_17 = arith.constant dense<0xFF800000> : vector<32x8xf32>
    %23 = vector.multi_reduction <maximumf>, %22, %cst_17 [2] : vector<32x8x8xf32> to vector<32x8xf32>
    %24 = vector.shape_cast %23 : vector<32x8xf32> to vector<32x8x1xf32>
    %25 = vector.broadcast %24 : vector<32x8x1xf32> to vector<32x8x8xf32>
    %26 = arith.subf %22, %25 : vector<32x8x8xf32>
    %27 = math.exp %26 : vector<32x8x8xf32>
    %cst_18 = arith.constant dense<0.000000e+00> : vector<32x8xf32>
    %28 = vector.multi_reduction <add>, %27, %cst_18 [2] : vector<32x8x8xf32> to vector<32x8xf32>
    %29 = vector.shape_cast %28 : vector<32x8xf32> to vector<32x8x1xf32>
    %30 = tpu.reciprocal %29 {approx = true} : vector<32x8x1xf32> -> vector<32x8x1xf32>
    %31 = vector.broadcast %30 : vector<32x8x1xf32> to vector<32x8x8xf32>
    %32 = arith.mulf %27, %31 : vector<32x8x8xf32>
    "tpu.trace_start"() <{level = 10 : i32, message = "gqk,gkd->gqd"}> : () -> ()
    %cst_19 = arith.constant dense<0.000000e+00> : vector<32x8x4xf32>
    %33 = tpu.matmul %32, %19, %cst_19 {dimension_numbers = #tpu.dot_dimension_numbers<[2], [1], [1], [2], [0, 0, 0, 1, 1, 2], [0], [0]>} : vector<32x8x8xf32>, vector<32x8x4xf32>, vector<32x8x4xf32> -> vector<32x8x4xf32>
    "tpu.trace_stop"() : () -> ()
    %c0_20 = arith.constant 0 : index
    %c0_21 = arith.constant 0 : index
    %c0_22 = arith.constant 0 : index
    %34 = vector.load %arg4[%c0_20, %c0_21, %c0_22] : memref<32x4x32xf32, #tpu.memory_space<vmem>>, vector<32x4x32xf32>
    "tpu.trace_start"() <{level = 10 : i32, message = "gnd,gde->gne"}> : () -> ()
    %cst_23 = arith.constant dense<0.000000e+00> : vector<32x8x32xf32>
    %35 = tpu.matmul %33, %34, %cst_23 {dimension_numbers = #tpu.dot_dimension_numbers<[2], [1], [1], [2], [0, 0, 0, 1, 1, 2], [0], [0]>} : vector<32x8x4xf32>, vector<32x4x32xf32>, vector<32x8x32xf32> -> vector<32x8x32xf32>
    "tpu.trace_stop"() : () -> ()
    %36 = vector.shape_cast %35 : vector<32x8x32xf32> to vector<4x8x8x32xf32>
    %cst_24 = arith.constant dense<0.000000e+00> : vector<4x8x32xf32>
    %37 = vector.multi_reduction <add>, %36, %cst_24 [1] : vector<4x8x8x32xf32> to vector<4x8x32xf32>
    %38 = vector.shape_cast %37 : vector<4x8x32xf32> to vector<32x32xf32>
    %39 = vector.broadcast %2 : vector<1x32xf32> to vector<32x32xf32>
    %40 = arith.addf %38, %39 : vector<32x32xf32>
    %41 = arith.addf %40, %0 : vector<32x32xf32>
    %cst_25 = arith.constant dense<0.000000e+00> : vector<32xf32>
    %42 = vector.multi_reduction <add>, %41, %cst_25 [1] : vector<32x32xf32> to vector<32xf32>
    %43 = vector.shape_cast %42 : vector<32xf32> to vector<32x1xf32>
    %cst_26 = arith.constant 3.200000e+01 : f32
    %44 = vector.broadcast %cst_26 : f32 to vector<32x1xf32>
    %45 = arith.divf %43, %44 : vector<32x1xf32>
    %46 = vector.broadcast %45 : vector<32x1xf32> to vector<32x32xf32>
    %47 = arith.subf %41, %46 : vector<32x32xf32>
    %48 = arith.mulf %47, %47 : vector<32x32xf32>
    %cst_27 = arith.constant dense<0.000000e+00> : vector<32xf32>
    %49 = vector.multi_reduction <add>, %48, %cst_27 [1] : vector<32x32xf32> to vector<32xf32>
    %50 = vector.shape_cast %49 : vector<32xf32> to vector<32x1xf32>
    %cst_28 = arith.constant 3.200000e+01 : f32
    %51 = vector.broadcast %cst_28 : f32 to vector<32x1xf32>
    %52 = arith.divf %50, %51 : vector<32x1xf32>
    %53 = vector.broadcast %45 : vector<32x1xf32> to vector<32x32xf32>
    %54 = arith.subf %41, %53 : vector<32x32xf32>
    %cst_29 = arith.constant 9.99999974E-6 : f32
    %55 = vector.broadcast %cst_29 : f32 to vector<32x1xf32>
    %56 = arith.addf %52, %55 : vector<32x1xf32>
    %57 = math.rsqrt %56 : vector<32x1xf32>
    %58 = vector.broadcast %57 : vector<32x1xf32> to vector<32x32xf32>
    %59 = arith.mulf %54, %58 : vector<32x32xf32>
    %60 = vector.broadcast %4 : vector<1x32xf32> to vector<32x32xf32>
    %61 = arith.mulf %59, %60 : vector<32x32xf32>
    %62 = vector.broadcast %5 : vector<1x32xf32> to vector<32x32xf32>
    %63 = arith.addf %61, %62 : vector<32x32xf32>
    %c0_30 = arith.constant 0 : index
    %c0_31 = arith.constant 0 : index
    %64 = vector.load %arg5[%c0_30, %c0_31] : memref<32x128xf32, #tpu.memory_space<vmem>>, vector<32x128xf32>
    %cst_32 = arith.constant dense<0.000000e+00> : vector<32x128xf32>
    %65 = tpu.matmul %63, %64, %cst_32 {dimension_numbers = #tpu.dot_dimension_numbers<[1], [0], [0], [1], [0, 0, 1, 1], [], []>} : vector<32x32xf32>, vector<32x128xf32>, vector<32x128xf32> -> vector<32x128xf32>
    %66 = vector.broadcast %1 : vector<1x128xf32> to vector<32x128xf32>
    %67 = arith.addf %65, %66 : vector<32x128xf32>
    %cst_33 = arith.constant 0.000000e+00 : f32
    %68 = vector.broadcast %cst_33 : f32 to vector<32x128xf32>
    %69 = arith.maximumf %67, %68 : vector<32x128xf32>
    %c0_34 = arith.constant 0 : index
    %c0_35 = arith.constant 0 : index
    %70 = vector.load %arg6[%c0_34, %c0_35] : memref<128x32xf32, #tpu.memory_space<vmem>>, vector<128x32xf32>
    %cst_36 = arith.constant dense<0.000000e+00> : vector<32x32xf32>
    %71 = tpu.matmul %69, %70, %cst_36 {dimension_numbers = #tpu.dot_dimension_numbers<[1], [0], [0], [1], [0, 0, 1, 1], [], []>} : vector<32x128xf32>, vector<128x32xf32>, vector<32x32xf32> -> vector<32x32xf32>
    %72 = vector.broadcast %3 : vector<1x32xf32> to vector<32x32xf32>
    %73 = arith.addf %71, %72 : vector<32x32xf32>
    %74 = arith.addf %73, %63 : vector<32x32xf32>
    %cst_37 = arith.constant dense<0.000000e+00> : vector<32xf32>
    %75 = vector.multi_reduction <add>, %74, %cst_37 [1] : vector<32x32xf32> to vector<32xf32>
    %76 = vector.shape_cast %75 : vector<32xf32> to vector<32x1xf32>
    %cst_38 = arith.constant 3.200000e+01 : f32
    %77 = vector.broadcast %cst_38 : f32 to vector<32x1xf32>
    %78 = arith.divf %76, %77 : vector<32x1xf32>
    %79 = vector.broadcast %78 : vector<32x1xf32> to vector<32x32xf32>
    %80 = arith.subf %74, %79 : vector<32x32xf32>
    %81 = arith.mulf %80, %80 : vector<32x32xf32>
    %cst_39 = arith.constant dense<0.000000e+00> : vector<32xf32>
    %82 = vector.multi_reduction <add>, %81, %cst_39 [1] : vector<32x32xf32> to vector<32xf32>
    %83 = vector.shape_cast %82 : vector<32xf32> to vector<32x1xf32>
    %cst_40 = arith.constant 3.200000e+01 : f32
    %84 = vector.broadcast %cst_40 : f32 to vector<32x1xf32>
    %85 = arith.divf %83, %84 : vector<32x1xf32>
    %86 = vector.broadcast %78 : vector<32x1xf32> to vector<32x32xf32>
    %87 = arith.subf %74, %86 : vector<32x32xf32>
    %cst_41 = arith.constant 9.99999974E-6 : f32
    %88 = vector.broadcast %cst_41 : f32 to vector<32x1xf32>
    %89 = arith.addf %85, %88 : vector<32x1xf32>
    %90 = math.rsqrt %89 : vector<32x1xf32>
    %91 = vector.broadcast %90 : vector<32x1xf32> to vector<32x32xf32>
    %92 = arith.mulf %87, %91 : vector<32x32xf32>
    %93 = vector.broadcast %6 : vector<1x32xf32> to vector<32x32xf32>
    %94 = arith.mulf %92, %93 : vector<32x32xf32>
    %95 = vector.broadcast %7 : vector<1x32xf32> to vector<32x32xf32>
    %96 = arith.addf %94, %95 : vector<32x32xf32>
    %c0_42 = arith.constant 0 : index
    %c0_43 = arith.constant 0 : index
    %97 = vector.load %arg8[%c0_42, %c0_43] : memref<32x32xf32, #tpu.memory_space<vmem>>, vector<32x32xf32>
    tpu.vector_store %arg8[%c0_42, %c0_43], %96 {strides = array<i32>} : memref<32x32xf32, #tpu.memory_space<vmem>>, vector<32x32xf32>,
    return
  }
  func.func @transform_0(%arg0: i32) -> (i32, i32, i32) {
    %c0_i32 = arith.constant 0 : i32
    %c0_i32_0 = arith.constant 0 : i32
    %c0_i32_1 = arith.constant 0 : i32
    return %c0_i32, %arg0, %c0_i32_0 : i32, i32, i32
  }
  func.func @transform_1(%arg0: i32) -> (i32, i32) {
    %c0_i32 = arith.constant 0 : i32
    %c0_i32_0 = arith.constant 0 : i32
    return %arg0, %c0_i32 : i32, i32
  }
  func.func @transform_2(%arg0: i32) -> (i32, i32, i32) {
    %c0_i32 = arith.constant 0 : i32
    %c0_i32_0 = arith.constant 0 : i32
    %c0_i32_1 = arith.constant 0 : i32
    %c0_i32_2 = arith.constant 0 : i32
    return %c0_i32, %c0_i32_0, %c0_i32_1 : i32, i32, i32
  }
  func.func @transform_3(%arg0: i32) -> (i32, i32, i32) {
    %c0_i32 = arith.constant 0 : i32
    %c0_i32_0 = arith.constant 0 : i32
    %c0_i32_1 = arith.constant 0 : i32
    %c0_i32_2 = arith.constant 0 : i32
    return %c0_i32, %c0_i32_0, %c0_i32_1 : i32, i32, i32
  }
  func.func @transform_4(%arg0: i32) -> (i32, i32) {
    %c0_i32 = arith.constant 0 : i32
    %c0_i32_0 = arith.constant 0 : i32
    %c0_i32_1 = arith.constant 0 : i32
    return %c0_i32, %c0_i32_0 : i32, i32
  }
  func.func @transform_5(%arg0: i32) -> (i32, i32) {
    %c0_i32 = arith.constant 0 : i32
    %c0_i32_0 = arith.constant 0 : i32
    %c0_i32_1 = arith.constant 0 : i32
    return %c0_i32, %c0_i32_0 : i32, i32
  }
  func.func @transform_6(%arg0: i32) -> (i32, i32) {
    %c0_i32 = arith.constant 0 : i32
    %c0_i32_0 = arith.constant 0 : i32
    %c0_i32_1 = arith.constant 0 : i32
    return %c0_i32, %c0_i32_0 : i32, i32
  }
  func.func @transform_7(%arg0: i32) -> (i32, i32) {
    %c0_i32 = arith.constant 0 : i32
    %c0_i32_0 = arith.constant 0 : i32
    return %arg0, %c0_i32 : i32, i32
  }
}

</mosaic_0001>

<bundles_post_ra>
// kernel: tpu_custom_call.1
= control target key start
LH: loop header
LB: loop body
LE: loop exit
PB: predicated region body
PF: predicated region fallthrough
CT: control target
= control target key end

     0   :  { %12 = vsyncpa [#allocation3], 0  ;;  %s12310_s0 = inlined_call_operand.hbm [shape: f32[3,256,4], index: 0, kind: input, shape index: {}]   ;;  %s12311_s1 = inlined_call_operand.hbm [shape: f32[32,32], index: 1, kind: input, shape index: {}]   ;;  %s12312_s2 = inlined_call_operand.hbm [shape: f32[3,4,4], index: 2, kind: input, shape index: {}]   ;;  %s12313_s3 = inlined_call_operand.hbm [shape: f32[32,4,32], index: 3, kind: input, shape index: {}]   ;;  %s12314_s4 = inlined_call_operand.hbm [shape: f32[32,128], index: 4, kind: input, shape index: {}]   ;;  %s12315_s5 = inlined_call_operand.hbm [shape: f32[128,32], index: 5, kind: input, shape index: {}]   ;;  %s12316_s6 = inlined_call_operand.hbm [shape: f32[8,128], index: 6, kind: input, shape index: {}]   ;;  %s12317_s7 = inlined_call_operand.hbm [shape: f32[32,32], index: 7, kind: output, shape index: {}]  }
   0x1   :  { %13 = vsyncpa [#allocation6], 0 }
   0x2   :  { %14 = vsyncpa [#allocation9], 0 }
   0x3   :  { %15 = vsyncpa [#allocation12], 0 }
   0x4   :  { %16 = vsyncpa [#allocation4], 0  ;;  %s10930_s24 = smov [#allocation5]   ;;  %s10744_s28 = scalar_lea.hbm %s12311_s1, 512 }
   0x5   :  { %s34_s25 = sshll.u32 %s10930_s24, 4  ;;  %p10745_p0 = scmp.ne.s32.totalorder %s12311_s1, %s10744_s28  ;;  %s35_s25 = int_to_ptr.vmem [resolvable:$true] %s34_s25 }
   0x6   :  { %p10748_p1 = scmp.lt.u32.totalorder %s10744_s28, %s12311_s1 }
   0x8   :  { %p10750_p2 = pnand %p10748_p1, %p10745_p0 }
   0xa   :  { %10753 = shalt.err (!%p10750_p2)
}
   0xb   :  { %s10754_s10 = scalar_lea.vmem %s35_s25, 512  ;;  %p10759_p4 = scmp.lt.s32.totalorder %s35_s25, %s35_s25 }
   0xc   :  { %p10755_p3 = scmp.ne.s32.totalorder %s35_s25, %s10754_s10  ;;  %p10760_p5 = scmp.lt.s32.totalorder %s10754_s10, %s10754_s10 }
   0xe   :  { %p10761_p6 = por %p10760_p5, %p10759_p4 }
  0x10   :  { %p10762_p7 = pnand %p10761_p6, %p10755_p3 }
  0x12   :  { %10765 = shalt.err (!%p10762_p7)
}
  0x13   :  { %s10931_s11 = smov 128   ;;  %s10932_s12 = smov 8  }
  0x14   :  { %40 = dma.hbm_to_vmem [thread:$0]  %s12311_s1, 512, %s35_s25, [#allocation6], %s10931_s11, %s10931_s11, %s10932_s12  }
  0x15   :  { %s10933_s15 = smov [#allocation8]   ;;  %s10934_s17 = smov [#allocation11]  }
  0x16   :  { %s58_s16 = sshll.u32 %s10933_s15, 4  ;;  %s82_s18 = sshll.u32 %s10934_s17, 4  ;;  %s59_s16 = int_to_ptr.vmem [resolvable:$true] %s58_s16  ;;  %s83_s18 = int_to_ptr.vmem [resolvable:$true] %s82_s18 }
  0x17   :  { %s10766_s21 = scalar_lea.hbm %s12313_s3, 2048 }
  0x18   :  { %p10767_p8 = scmp.ne.s32.totalorder %s12313_s3, %s10766_s21  ;;  %p10770_p9 = scmp.lt.u32.totalorder %s10766_s21, %s12313_s3 }
  0x1a   :  { %p10772_p10 = pnand %p10770_p9, %p10767_p8 }
  0x1c   :  { %10775 = shalt.err (!%p10772_p10)
}
  0x1d   :  { %s10776_s1 = scalar_lea.vmem %s59_s16, 2048  ;;  %p10781_p12 = scmp.lt.s32.totalorder %s59_s16, %s59_s16 }
  0x1e   :  { %p10777_p11 = scmp.ne.s32.totalorder %s59_s16, %s10776_s1  ;;  %p10782_p13 = scmp.lt.s32.totalorder %s10776_s1, %s10776_s1 }
  0x20   :  { %p10783_p0 = por %p10782_p13, %p10781_p12 }
  0x22   :  { %p10784_p1 = pnand %p10783_p0, %p10777_p11 }
  0x24   :  { %10787 = shalt.err (!%p10784_p1)
}
  0x25   :  { %s10935_s25 = smov 64   ;;  %s10936_s27 = smov 4  }
  0x26   :  { %64 = dma.hbm_to_vmem [thread:$0]  %s12313_s3, 2048, %s59_s16, [#allocation9], %s10935_s25, %s10935_s25, %s10936_s27  }
  0x27   :  { %s10788_s9 = scalar_lea.hbm %s12315_s5, 2048 }
  0x28   :  { %p10789_p2 = scmp.ne.s32.totalorder %s12315_s5, %s10788_s9  ;;  %p10792_p3 = scmp.lt.u32.totalorder %s10788_s9, %s12315_s5 }
  0x2a   :  { %p10794_p4 = pnand %p10792_p3, %p10789_p2 }
  0x2c   :  { %10797 = shalt.err (!%p10794_p4)
}
  0x2d   :  { %s10798_s17 = scalar_lea.vmem %s83_s18, 2048  ;;  %p10803_p6 = scmp.lt.s32.totalorder %s83_s18, %s83_s18 }
  0x2e   :  { %p10799_p5 = scmp.ne.s32.totalorder %s83_s18, %s10798_s17  ;;  %p10804_p7 = scmp.lt.s32.totalorder %s10798_s17, %s10798_s17 }
  0x30   :  { %p10805_p8 = por %p10804_p7, %p10803_p6 }
  0x32   :  { %p10806_p9 = pnand %p10805_p8, %p10799_p5 }
  0x34   :  { %10809 = shalt.err (!%p10806_p9)
}
  0x35   :  { %88 = dma.hbm_to_vmem [thread:$0]  %s12315_s5, 2048, %s83_s18, [#allocation12], %s10931_s11, %s10931_s11, %s10932_s12  }
  0x36   :  { %s10937_s19 = smov [#allocation2]   ;;  %s10938_s21 = smov [#allocation7]  }
  0x37   :  { %s22_s20 = sshll.u32 %s10937_s19, 4  ;;  %s46_s22 = sshll.u32 %s10938_s21, 4  ;;  %s23_s20 = int_to_ptr.vmem [resolvable:$true] %s22_s20  ;;  %s47_s22 = int_to_ptr.vmem [resolvable:$true] %s46_s22 }
  0x38   :  { %s10810_s26 = scalar_lea.hbm %s12310_s0, 12288 }
  0x39   :  { %p10811_p10 = scmp.ne.s32.totalorder %s12310_s0, %s10810_s26  ;;  %p10814_p11 = scmp.lt.u32.totalorder %s10810_s26, %s12310_s0 }
  0x3b   :  { %p10816_p12 = pnand %p10814_p11, %p10811_p10 }
  0x3d   :  { %10819 = shalt.err (!%p10816_p12)
}
  0x3e   :  { %s10820_s5 = scalar_lea.vmem %s23_s20, 12288  ;;  %p10825_p0 = scmp.lt.s32.totalorder %s23_s20, %s23_s20 }
  0x3f   :  { %p10821_p13 = scmp.ne.s32.totalorder %s23_s20, %s10820_s5  ;;  %p10826_p1 = scmp.lt.s32.totalorder %s10820_s5, %s10820_s5 }
  0x41   :  { %p10827_p2 = por %p10826_p1, %p10825_p0 }
  0x43   :  { %p10828_p3 = pnand %p10827_p2, %p10821_p13 }
  0x45   :  { %10831 = shalt.err (!%p10828_p3)
}
  0x46   :  { %28 = dma.hbm_to_vmem [thread:$0]  %s12310_s0, 12288, %s23_s20, [#allocation3], %s10931_s11, %s10931_s11, %s10932_s12  }
  0x47   :  { %s10832_s13 = scalar_lea.hbm %s12312_s2, 192 }
  0x48   :  { %p10833_p4 = scmp.ne.s32.totalorder %s12312_s2, %s10832_s13  ;;  %p10836_p5 = scmp.lt.u32.totalorder %s10832_s13, %s12312_s2 }
  0x4a   :  { %p10838_p6 = pnand %p10836_p5, %p10833_p4 }
  0x4c   :  { %10841 = shalt.err (!%p10838_p6)
}
  0x4d   :  { %s10842_s16 = scalar_lea.vmem %s47_s22, 192  ;;  %p10847_p8 = scmp.lt.s32.totalorder %s47_s22, %s47_s22 }
  0x4e   :  { %p10843_p7 = scmp.ne.s32.totalorder %s47_s22, %s10842_s16  ;;  %p10848_p9 = scmp.lt.s32.totalorder %s10842_s16, %s10842_s16 }
  0x50   :  { %p10849_p10 = por %p10848_p9, %p10847_p8 }
  0x52   :  { %p10850_p11 = pnand %p10849_p10, %p10843_p7 }
  0x54   :  { %10853 = shalt.err (!%p10850_p11)
}
  0x55   :  { %52 = dma.hbm_to_vmem [thread:$0]  %s12312_s2, 192, %s47_s22, [#allocation6], %s10935_s25, %s10935_s25, %s10936_s27  }
  0x56   :  { %s10939_s20 = smov [#allocation10]   ;;  %s10940_s23 = smov [#allocation13]  }
  0x57   :  { %s70_s21 = sshll.u32 %s10939_s20, 4  ;;  %s95_s24 = sshll.u32 %s10940_s23, 4  ;;  %s71_s21 = int_to_ptr.vmem [resolvable:$true] %s70_s21  ;;  %s96_s24 = int_to_ptr.vmem [resolvable:$true] %s95_s24 }
  0x58   :  { %s10854_s28 = scalar_lea.hbm %s12314_s4, 512 }
  0x59   :  { %p10855_p12 = scmp.ne.s32.totalorder %s12314_s4, %s10854_s28  ;;  %p10858_p13 = scmp.lt.u32.totalorder %s10854_s28, %s12314_s4 }
  0x5b   :  { %p10860_p0 = pnand %p10858_p13, %p10855_p12 }
  0x5d   :  { %10863 = shalt.err (!%p10860_p0)
}
  0x5e   :  { %s10864_s2 = scalar_lea.vmem %s71_s21, 512  ;;  %p10869_p2 = scmp.lt.s32.totalorder %s71_s21, %s71_s21 }
  0x5f   :  { %p10865_p1 = scmp.ne.s32.totalorder %s71_s21, %s10864_s2  ;;  %p10870_p3 = scmp.lt.s32.totalorder %s10864_s2, %s10864_s2 }
  0x61   :  { %p10871_p4 = por %p10870_p3, %p10869_p2 }
  0x63   :  { %p10872_p5 = pnand %p10871_p4, %p10865_p1 }
  0x65   :  { %10875 = shalt.err (!%p10872_p5)
}
  0x66   :  { %76 = dma.hbm_to_vmem [thread:$0]  %s12314_s4, 512, %s71_s21, [#allocation9], %s10931_s11, %s10931_s11, %s10932_s12  }
  0x67   :  { %s10876_s9 = scalar_lea.hbm %s12316_s6, 128 }
  0x68   :  { %p10877_p6 = scmp.ne.s32.totalorder %s12316_s6, %s10876_s9  ;;  %p10880_p7 = scmp.lt.u32.totalorder %s10876_s9, %s12316_s6 }
  0x6a   :  { %p10882_p8 = pnand %p10880_p7, %p10877_p6 }
  0x6c   :  { %10885 = shalt.err (!%p10882_p8)
}
  0x6d   :  { %s10886_s17 = scalar_lea.vmem %s96_s24, 128  ;;  %p10891_p10 = scmp.lt.s32.totalorder %s96_s24, %s96_s24 }
  0x6e   :  { %p10887_p9 = scmp.ne.s32.totalorder %s96_s24, %s10886_s17  ;;  %p10892_p11 = scmp.lt.s32.totalorder %s10886_s17, %s10886_s17 }
  0x70   :  { %p10893_p12 = por %p10892_p11, %p10891_p10 }
  0x72   :  { %p10894_p13 = pnand %p10893_p12, %p10887_p9 }
  0x74   :  { %10897 = shalt.err (!%p10894_p13)
}
  0x75   :  { %98 = dma.hbm_to_vmem [thread:$0]  %s12316_s6, 128, %s96_s24, [#allocation12]  }
  0x76   :  { %10920 = dma.done.wait [#allocation3], 12288  }
  0x77   :  { %10921 = vsyncadd [#allocation3], 4294955008 }
  0x78   :  { %10922 = dma.done.wait [#allocation6], 704  }
  0x79   :  { %10923 = vsyncadd [#allocation6], 4294966592 }
  0x7a   :  { %10924 = dma.done.wait [#allocation9], 2560  }
  0x7b   :  { %10925 = vsyncadd [#allocation9], 4294964736 }
  0x7c   :  { %10926 = dma.done.wait [#allocation12], 2176  }
  0x7d   :  { %10927 = vsyncadd [#allocation12], 4294965120  ;;  %vm327_vm0 = vcmask 1043456   ;;  %vm230_vm1 = vcmask 31744   ;;  %v227_v0 = vld [vmem:[#allocation7] sm:$0xf] }
  0x7e   :  { %v131_v1 = vld [vmem:[#allocation2] sm:$0xff]  ;;  %v132_v2 = vld [vmem:[#allocation2 + $0x8] sm:$0xff]  ;;  %9862 = vmatprep.subr.msk.mxu0 %vm327_vm0, %v227_v0  ;;  %v133_v3 = vld [vmem:[#allocation2 + $0x10] sm:$0xff]  ;;  %vm10942_vm2 = vmmov 0   ;;  %vm3668_vm3 = vcmask 64512   ;;  %vm8821_vm4 = vcmask 261120  }
  0x7f   :  { %9864 = vmatprep.mubr.msk.f32.mxu0 %vm230_vm1, %v131_v1  ;;  %9863 = vmatpush3.msk.msra.mxu0 %vm327_vm0, %v227_v0  ;;  %v228_v4 = vld [vmem:[#allocation7 + $0x4] sm:$0xf]  ;;  %v169_v5 = vld [vmem:[#allocation2 + $0x130] sm:$0xff]  ;;  %v170_v6 = vld [vmem:[#allocation2 + $0x138] sm:$0xff]  ;;  %s10943_s6 = smov [#allocation14]  }
  0x80   :  { %9865 = vmatmul.mubr.msk.f32.vlgmr.msra.gmra.mrb[0].mxu0 %vm230_vm1, %v132_v2  ;;  %10584 = vmatprep.subr.msk.mxu1 %vm327_vm0, %v228_v4  ;;  %v134_v7 = vld [vmem:[#allocation2 + $0x18] sm:$0xff]  ;;  %v171_v8 = vld [vmem:[#allocation2 + $0x140] sm:$0xff]  ;;  %v172_v10 = vld [vmem:[#allocation2 + $0x148] sm:$0xff]  ;;  %s9258_s16 = sshll.u32 %s10943_s6, 4  ;;  %s9259_s16 = int_to_ptr.vmem [resolvable:$true] %s9258_s16 }
  0x81   :  { %9867 = vmatprep.mubr.msk.f32.mxu0 %vm230_vm1, %v133_v3  ;;  %10585 = vmatpush3.msk.msra.mxu1 %vm327_vm0, %v228_v4  ;;  %v135_v9 = vld [vmem:[#allocation2 + $0x20] sm:$0xff]  ;;  %v136_v11 = vld [vmem:[#allocation2 + $0x28] sm:$0xff]  ;;  %v173_v12 = vld [vmem:[#allocation2 + $0x150] sm:$0xff]  ;;  %s10898_s0 = scalar_lea.vmem %s9259_s16, 512  ;;  %p10903_p1 = scmp.lt.s32.totalorder %s9259_s16, %s9259_s16 }
  0x82   :  { %9923 = vmatprep.mubr.msk.f32.mxu1 %vm230_vm1, %v169_v5  ;;  %9912 = vmatprep.subr.msk.mxu0 %vm327_vm0, %v228_v4  ;;  %v137_v13 = vld [vmem:[#allocation2 + $0x30] sm:$0xff]  ;;  %v174_v14 = vld [vmem:[#allocation2 + $0x158] sm:$0xff]  ;;  %v175_v16 = vld [vmem:[#allocation2 + $0x160] sm:$0xff]  ;;  %p10899_p0 = scmp.ne.s32.totalorder %s9259_s16, %s10898_s0  ;;  %p10904_p2 = scmp.lt.s32.totalorder %s10898_s0, %s10898_s0 }
  0x83   :  { %9924 = vmatmul.mubr.msk.f32.vlgmr.msra.gmra.mrb[0].mxu1 %vm230_vm1, %v170_v6  ;;  %9913 = vmatpush3.msk.msra.mxu0 %vm327_vm0, %v228_v4  ;;  %v138_v15 = vld [vmem:[#allocation2 + $0x38] sm:$0xff]  ;;  %v139_v17 = vld [vmem:[#allocation2 + $0x40] sm:$0xff]  ;;  %v176_v18 = vld [vmem:[#allocation2 + $0x168] sm:$0xff] }
  0x84   :  { %9868 = vmatmul.mubr.msk.f32.gmra.mrb[2].mxu0 %vm230_vm1, %v134_v7  ;;  %9926 = vmatprep.mubr.msk.f32.mxu1 %vm230_vm1, %v171_v8  ;;  %v140_v19 = vld [vmem:[#allocation2 + $0x48] sm:$0xff]  ;;  %v177_v20 = vld [vmem:[#allocation2 + $0x170] sm:$0xff]  ;;  %v178_v22 = vld [vmem:[#allocation2 + $0x178] sm:$0xff]  ;;  %p10905_p3 = por %p10904_p2, %p10903_p1 }
  0x85   :  { %9870 = vmatprep.mubr.msk.f32.mxu0 %vm230_vm1, %v135_v9  ;;  %v141_v21 = vld [vmem:[#allocation2 + $0x50] sm:$0xff]  ;;  %v142_v23 = vld [vmem:[#allocation2 + $0x58] sm:$0xff]  ;;  %v179_v24 = vld [vmem:[#allocation2 + $0x180] sm:$0xff] }
  0x86   :  { %v143_v25 = vld [vmem:[#allocation2 + $0x60] sm:$0xff]  ;;  %v11113_v26 = vld [vmem:[#allocation7 + $0x8] sm:$0xf]  ;;  %v181_v29 = vld [vmem:[#allocation2 + $0x190] sm:$0xff]  ;;  %p10906_p4 = pnand %p10905_p3, %p10899_p0 }
  0x87   :  { %9927 = vmatmul.mubr.msk.f32.gmra.mrb[2].mxu1 %vm230_vm1, %v172_v10  ;;  %v180_v27 = vld [vmem:[#allocation2 + $0x188] sm:$0xff]  ;;  %9962 = vmatprep.subr.msk.mxu0 %vm327_vm0, %v11113_v26  ;;  %v145_v30 = vld [vmem:[#allocation2 + $0x70] sm:$0xff]  ;;  %v182_v31 = vld [vmem:[#allocation2 + $0x198] sm:$0xff] }
  0x88   :  { %9871 = vmatmul.mubr.msk.f32.gmra.mrb[4].mxu0 %vm230_vm1, %v136_v11  ;;  %9929 = vmatprep.mubr.msk.f32.mxu1 %vm230_vm1, %v173_v12  ;;  %v144_v28 = vld [vmem:[#allocation2 + $0x68] sm:$0xff]  ;;  %v146_v32 = vld [vmem:[#allocation2 + $0x78] sm:$0xff]  ;;  %v183_v33 = vld [vmem:[#allocation2 + $0x1a0] sm:$0xff] }
  0x89   :  { %9873 = vmatprep.mubr.msk.f32.mxu0 %vm230_vm1, %v137_v13  ;;  %v147_v34 = vld [vmem:[#allocation2 + $0x80] sm:$0xff]  ;;  %v184_v35 = vld [vmem:[#allocation2 + $0x1a8] sm:$0xff]  ;;  %v185_v37 = vld [vmem:[#allocation2 + $0x1b0] sm:$0xff] }
  0x8a   :  { %v148_v36 = vld [vmem:[#allocation2 + $0x88] sm:$0xff]  ;;  %v149_v38 = vld [vmem:[#allocation2 + $0x90] sm:$0xff]  ;;  %v186_v39 = vld [vmem:[#allocation2 + $0x1b8] sm:$0xff] }
  0x8b   :  { %9930 = vmatmul.mubr.msk.f32.gmra.mrb[4].mxu1 %vm230_vm1, %v174_v14  ;;  %v150_v40 = vld [vmem:[#allocation2 + $0x98] sm:$0xff]  ;;  %v187_v41 = vld [vmem:[#allocation2 + $0x1c0] sm:$0xff]  ;;  %v188_v43 = vld [vmem:[#allocation2 + $0x1c8] sm:$0xff] }
  0x8c   :  { %9874 = vmatmul.mubr.msk.f32.gmra.mrb[6].mxu0 %vm230_vm1, %v138_v15  ;;  %9932 = vmatprep.mubr.msk.f32.mxu1 %vm230_vm1, %v175_v16  ;;  %v151_v42 = vld [vmem:[#allocation2 + $0xa0] sm:$0xff]  ;;  %v152_v44 = vld [vmem:[#allocation2 + $0xa8] sm:$0xff]  ;;  %v189_v45 = vld [vmem:[#allocation2 + $0x1d0] sm:$0xff] }
  0x8d   :  { %9876 = vmatprep.mubr.msk.f32.mxu0 %vm230_vm1, %v139_v17  ;;  %v153_v46 = vld [vmem:[#allocation2 + $0xb0] sm:$0xff]  ;;  %v190_v47 = vld [vmem:[#allocation2 + $0x1d8] sm:$0xff]  ;;  %v191_v49 = vld [vmem:[#allocation2 + $0x1e0] sm:$0xff] }
  0x8e   :  { %v154_v48 = vld [vmem:[#allocation2 + $0xb8] sm:$0xff]  ;;  %v155_v50 = vld [vmem:[#allocation2 + $0xc0] sm:$0xff]  ;;  %v192_v51 = vld [vmem:[#allocation2 + $0x1e8] sm:$0xff] }
  0x8f   :  { %9933 = vmatmul.mubr.msk.f32.gmra.mrb[6].mxu1 %vm230_vm1, %v176_v18  ;;  %v156_v52 = vld [vmem:[#allocation2 + $0xc8] sm:$0xff]  ;;  %v193_v53 = vld [vmem:[#allocation2 + $0x1f0] sm:$0xff]  ;;  %v194_v55 = vld [vmem:[#allocation2 + $0x1f8] sm:$0xff] }
  0x90   :  { %9877 = vmatmul.mubr.msk.f32.gmra.mrb[8].mxu0 %vm230_vm1, %v140_v19  ;;  %9935 = vmatprep.mubr.msk.f32.mxu1 %vm230_vm1, %v177_v20  ;;  %v157_v54 = vld [vmem:[#allocation2 + $0xd0] sm:$0xff]  ;;  %v158_v56 = vld [vmem:[#allocation2 + $0xd8] sm:$0xff]  ;;  %v159_v57 = vld [vmem:[#allocation2 + $0xe0] sm:$0xff] }
  0x91   :  { %9879 = vmatprep.mubr.msk.f32.mxu0 %vm230_vm1, %v141_v21  ;;  %v160_v58 = vld [vmem:[#allocation2 + $0xe8] sm:$0xff]  ;;  %v161_v59 = vld [vmem:[#allocation2 + $0xf0] sm:$0xff]  ;;  %v162_v60 = vld [vmem:[#allocation2 + $0xf8] sm:$0xff] }
  0x92   :  { %v163_v61 = vld [vmem:[#allocation2 + $0x100] sm:$0xff]  ;;  %v164_v62 = vld [vmem:[#allocation2 + $0x108] sm:$0xff]  ;;  %v165_v63 = vld [vmem:[#allocation2 + $0x110] sm:$0xff] }
  0x93   :  { %9936 = vmatmul.mubr.msk.f32.gmra.mrb[8].mxu1 %vm230_vm1, %v178_v22  ;;  %v166_v0 = vld [vmem:[#allocation2 + $0x118] sm:$0xff]  ;;  %v167_v1 = vld [vmem:[#allocation2 + $0x120] sm:$0xff]  ;;  %v168_v2 = vld [vmem:[#allocation2 + $0x128] sm:$0xff] }
  0x94   :  { %9880 = vmatmul.mubr.msk.f32.gmra.mrb[10].mxu0 %vm230_vm1, %v142_v23  ;;  %9938 = vmatprep.mubr.msk.f32.mxu1 %vm230_vm1, %v179_v24  ;;  %v195_v3 = vld [vmem:[#allocation2 + $0x200] sm:$0xff]  ;;  %v196_v4 = vld [vmem:[#allocation2 + $0x208] sm:$0xff]  ;;  %v197_v5 = vld [vmem:[#allocation2 + $0x210] sm:$0xff] }
  0x95   :  { %9882 = vmatprep.mubr.msk.f32.mxu0 %vm230_vm1, %v143_v25  ;;  %v198_v6 = vld [vmem:[#allocation2 + $0x218] sm:$0xff]  ;;  %v199_v7 = vld [vmem:[#allocation2 + $0x220] sm:$0xff]  ;;  %v200_v8 = vld [vmem:[#allocation2 + $0x228] sm:$0xff]  ;;  %v12318_v25 = vmov 0.0  }
  0x96   :  { %v201_v9 = vld [vmem:[#allocation2 + $0x230] sm:$0xff]  ;;  %v202_v10 = vld [vmem:[#allocation2 + $0x238] sm:$0xff]  ;;  %v203_v11 = vld [vmem:[#allocation2 + $0x240] sm:$0xff]  ;;  %10012 = vmatprep.subr.mxu1 %v12318_v25 }
  0x97   :  { %9939 = vmatmul.mubr.msk.f32.gmra.mrb[10].mxu1 %vm230_vm1, %v180_v27  ;;  %v204_v12 = vld [vmem:[#allocation2 + $0x248] sm:$0xff]  ;;  %v205_v13 = vld [vmem:[#allocation2 + $0x250] sm:$0xff]  ;;  %v206_v14 = vld [vmem:[#allocation2 + $0x258] sm:$0xff] }
  0x98   :  { %9883 = vmatmul.mubr.msk.f32.gmra.mrb[12].mxu0 %vm230_vm1, %v144_v28  ;;  %9941 = vmatprep.mubr.msk.f32.mxu1 %vm230_vm1, %v181_v29  ;;  %v207_v15 = vld [vmem:[#allocation2 + $0x260] sm:$0xff]  ;;  %v208_v16 = vld [vmem:[#allocation2 + $0x268] sm:$0xff]  ;;  %v209_v17 = vld [vmem:[#allocation2 + $0x270] sm:$0xff] }
  0x99   :  { %9885 = vmatprep.mubr.msk.f32.mxu0 %vm230_vm1, %v145_v30  ;;  %v210_v18 = vld [vmem:[#allocation2 + $0x278] sm:$0xff]  ;;  %v211_v19 = vld [vmem:[#allocation2 + $0x280] sm:$0xff]  ;;  %v212_v20 = vld [vmem:[#allocation2 + $0x288] sm:$0xff] }
  0x9a   :  { %v213_v21 = vld [vmem:[#allocation2 + $0x290] sm:$0xff]  ;;  %v214_v22 = vld [vmem:[#allocation2 + $0x298] sm:$0xff]  ;;  %v215_v23 = vld [vmem:[#allocation2 + $0x2a0] sm:$0xff] }
  0x9b   :  { %9942 = vmatmul.mubr.msk.f32.gmra.mrb[12].mxu1 %vm230_vm1, %v182_v31  ;;  %v216_v24 = vld [vmem:[#allocation2 + $0x2a8] sm:$0xff]  ;;  %v218_v27 = vld [vmem:[#allocation2 + $0x2b8] sm:$0xff]  ;;  %v219_v28 = vld [vmem:[#allocation2 + $0x2c0] sm:$0xff] }
  0x9c   :  { %9886 = vmatmul.mubr.msk.f32.gmra.mrb[14].mxu0 %vm230_vm1, %v146_v32  ;;  %9944 = vmatprep.mubr.msk.f32.mxu1 %vm230_vm1, %v183_v33  ;;  %v220_v29 = vld [vmem:[#allocation2 + $0x2c8] sm:$0xff]  ;;  %v221_v30 = vld [vmem:[#allocation2 + $0x2d0] sm:$0xff]  ;;  %v222_v31 = vld [vmem:[#allocation2 + $0x2d8] sm:$0xff] }
  0x9d   :  { %9888 = vmatprep.mubr.msk.f32.mxu0 %vm230_vm1, %v147_v34  ;;  %v223_v32 = vld [vmem:[#allocation2 + $0x2e0] sm:$0xff]  ;;  %v224_v33 = vld [vmem:[#allocation2 + $0x2e8] sm:$0xff]  ;;  %v225_v34 = vld [vmem:[#allocation2 + $0x2f0] sm:$0xff] }
  0x9f   :  { %9945 = vmatmul.mubr.msk.f32.gmra.mrb[14].mxu1 %vm230_vm1, %v184_v35  ;;  %v226_v35 = vld [vmem:[#allocation2 + $0x2f8] sm:$0xff] }
  0xa0   :  { %9889 = vmatmul.mubr.msk.f32.gmra.mrb[16].mxu0 %vm230_vm1, %v148_v36  ;;  %9947 = vmatprep.mubr.msk.f32.mxu1 %vm230_vm1, %v185_v37 }
  0xa1   :  { %9891 = vmatprep.mubr.msk.f32.mxu0 %vm230_vm1, %v149_v38 }
  0xa3   :  { %9948 = vmatmul.mubr.msk.f32.gmra.mrb[16].mxu1 %vm230_vm1, %v186_v39 }
  0xa4   :  { %9892 = vmatmul.mubr.msk.f32.gmra.mrb[18].mxu0 %vm230_vm1, %v150_v40  ;;  %9950 = vmatprep.mubr.msk.f32.mxu1 %vm230_vm1, %v187_v41 }
  0xa5   :  { %9894 = vmatprep.mubr.msk.f32.mxu0 %vm230_vm1, %v151_v42 }
  0xa7   :  { %9951 = vmatmul.mubr.msk.f32.gmra.mrb[18].mxu1 %vm230_vm1, %v188_v43 }
  0xa8   :  { %9895 = vmatmul.mubr.msk.f32.gmra.mrb[20].mxu0 %vm230_vm1, %v152_v44  ;;  %9953 = vmatprep.mubr.msk.f32.mxu1 %vm230_vm1, %v189_v45 }
  0xa9   :  { %9897 = vmatprep.mubr.msk.f32.mxu0 %vm230_vm1, %v153_v46 }
  0xab   :  { %9954 = vmatmul.mubr.msk.f32.gmra.mrb[20].mxu1 %vm230_vm1, %v190_v47 }
  0xac   :  { %9898 = vmatmul.mubr.msk.f32.gmra.mrb[22].mxu0 %vm230_vm1, %v154_v48  ;;  %9956 = vmatprep.mubr.msk.f32.mxu1 %vm230_vm1, %v191_v49 }
  0xad   :  { %9900 = vmatprep.mubr.msk.f32.mxu0 %vm230_vm1, %v155_v50 }
  0xaf   :  { %9957 = vmatmul.mubr.msk.f32.gmra.mrb[22].mxu1 %vm230_vm1, %v192_v51 }
  0xb0   :  { %9901 = vmatmul.mubr.msk.f32.gmra.mrb[24].mxu0 %vm230_vm1, %v156_v52  ;;  %9959 = vmatprep.mubr.msk.f32.mxu1 %vm230_vm1, %v193_v53 }
  0xb1   :  { %9903 = vmatprep.mubr.msk.f32.mxu0 %vm230_vm1, %v157_v54 }
  0xb3   :  { %9960 = vmatmul.mubr.msk.f32.gmra.mrb[24].mxu1 %vm230_vm1, %v194_v55 }
  0xb4   :  { %9904 = vmatmul.mubr.msk.f32.gmra.mrb[26].mxu0 %vm230_vm1, %v158_v56  ;;  %10014 = vmatprep.mubr.msk.f32.mxu1 %vm10942_vm2, %v12318_v25 }
  0xb5   :  { %9906 = vmatprep.mubr.msk.f32.mxu0 %vm230_vm1, %v159_v57 }
  0xb8   :  { %9907 = vmatmul.mubr.msk.f32.gmra.mrb[28].mxu0 %vm230_vm1, %v160_v58 }
  0xb9   :  { %9909 = vmatprep.mubr.msk.f32.mxu0 %vm230_vm1, %v161_v59 }
  0xbc   :  { %9910 = vmatmul.mubr.msk.f32.gmra.mrb[30].mxu0 %vm230_vm1, %v162_v60 }
  0xbd   :  { %9914 = vmatprep.mubr.msk.f32.mxu0 %vm230_vm1, %v163_v61 }
  0xc0   :  { %9915 = vmatmul.mubr.msk.f32.vlgmr.msra.gmra.mrb[32].mxu0 %vm230_vm1, %v164_v62 }
  0xc1   :  { %9917 = vmatprep.mubr.msk.f32.mxu0 %vm230_vm1, %v165_v63  ;;  %9963 = vmatpush3.msk.msra.mxu0 %vm327_vm0, %v11113_v26  ;;  %v217_v26 = vld [vmem:[#allocation2 + $0x2b0] sm:$0xff] }
  0xc2   :  { %10092 = vmatprep.subr.mxu0 %v12318_v25 }
  0xc4   :  { %9918 = vmatmul.mubr.msk.f32.gmra.mrb[34].mxu0 %vm230_vm1, %v166_v0 }
  0xc5   :  { %9920 = vmatprep.mubr.msk.f32.mxu0 %vm230_vm1, %v167_v1 }
  0xc8   :  { %9921 = vmatmul.mubr.msk.f32.gmra.mrb[36].mxu0 %vm230_vm1, %v168_v2 }
  0xc9   :  { %9964 = vmatprep.mubr.msk.f32.mxu0 %vm230_vm1, %v195_v3 }
  0xcc   :  { %9965 = vmatmul.mubr.msk.f32.vlgmr.msra.gmra.mrb[38].mxu0 %vm230_vm1, %v196_v4 }
  0xcd   :  { %9967 = vmatprep.mubr.msk.f32.mxu0 %vm230_vm1, %v197_v5 }
  0xd0   :  { %9968 = vmatmul.mubr.msk.f32.gmra.mrb[40].mxu0 %vm230_vm1, %v198_v6 }
  0xd1   :  { %9970 = vmatprep.mubr.msk.f32.mxu0 %vm230_vm1, %v199_v7 }
  0xd4   :  { %9971 = vmatmul.mubr.msk.f32.gmra.mrb[42].mxu0 %vm230_vm1, %v200_v8 }
  0xd5   :  { %9973 = vmatprep.mubr.msk.f32.mxu0 %vm230_vm1, %v201_v9 }
  0xd8   :  { %9974 = vmatmul.mubr.msk.f32.gmra.mrb[44].mxu0 %vm230_vm1, %v202_v10 }
  0xd9   :  { %9976 = vmatprep.mubr.msk.f32.mxu0 %vm230_vm1, %v203_v11 }
  0xdc   :  { %9977 = vmatmul.mubr.msk.f32.gmra.mrb[46].mxu0 %vm230_vm1, %v204_v12 }
  0xdd   :  { %9979 = vmatprep.mubr.msk.f32.mxu0 %vm230_vm1, %v205_v13 }
  0xe0   :  { %9980 = vmatmul.mubr.msk.f32.gmra.mrb[48].mxu0 %vm230_vm1, %v206_v14 }
  0xe1   :  { %9982 = vmatprep.mubr.msk.f32.mxu0 %vm230_vm1, %v207_v15 }
  0xe4   :  { %9983 = vmatmul.mubr.msk.f32.gmra.mrb[50].mxu0 %vm230_vm1, %v208_v16 }
  0xe5   :  { %9985 = vmatprep.mubr.msk.f32.mxu0 %vm230_vm1, %v209_v17 }
  0xe8   :  { %9986 = vmatmul.mubr.msk.f32.gmra.mrb[52].mxu0 %vm230_vm1, %v210_v18 }
  0xe9   :  { %9988 = vmatprep.mubr.msk.f32.mxu0 %vm230_vm1, %v211_v19 }
  0xec   :  { %9989 = vmatmul.mubr.msk.f32.gmra.mrb[54].mxu0 %vm230_vm1, %v212_v20 }
  0xed   :  { %9991 = vmatprep.mubr.msk.f32.mxu0 %vm230_vm1, %v213_v21 }
  0xf0   :  { %9992 = vmatmul.mubr.msk.f32.gmra.mrb[56].mxu0 %vm230_vm1, %v214_v22 }
  0xf1   :  { %9994 = vmatprep.mubr.msk.f32.mxu0 %vm230_vm1, %v215_v23 }
  0xf4   :  { %9995 = vmatmul.mubr.msk.f32.gmra.mrb[58].mxu0 %vm230_vm1, %v216_v24 }
  0xf5   :  { %9997 = vmatprep.mubr.msk.f32.mxu0 %vm230_vm1, %v217_v26 }
  0xf8   :  { %9998 = vmatmul.mubr.msk.f32.gmra.mrb[60].mxu0 %vm230_vm1, %v218_v27 }
  0xf9   :  { %10000 = vmatprep.mubr.msk.f32.mxu0 %vm230_vm1, %v219_v28 }
  0xfc   :  { %10001 = vmatmul.mubr.msk.f32.gmra.mrb[62].mxu0 %vm230_vm1, %v220_v29 }
  0xfd   :  { %10003 = vmatprep.mubr.msk.f32.mxu0 %vm230_vm1, %v221_v30 }
 0x100   :  { %10004 = vmatmul.mubr.msk.f32.gmra.mrb[64].mxu0 %vm230_vm1, %v222_v31 }
 0x101   :  { %10006 = vmatprep.mubr.msk.f32.mxu0 %vm230_vm1, %v223_v32 }
 0x104   :  { %10007 = vmatmul.mubr.msk.f32.gmra.mrb[66].mxu0 %vm230_vm1, %v224_v33 }
 0x105   :  { %10009 = vmatprep.mubr.msk.f32.mxu0 %vm230_vm1, %v225_v34 }
 0x108   :  { %10010 = vmatmul.mubr.msk.f32.gmra.mrb[68].mxu0 %vm230_vm1, %v226_v35 }
 0x109   :  { %10094 = vmatprep.mubr.msk.f32.mxu0 %vm10942_vm2, %v12318_v25 }
 0x153   :  { %v11200_v36 = vpop.f32.mrb[0].mxu0 }
 0x154   :  { %v11202_v37 = vpop.f32.mrb[1].mxu0 }
 0x156   :  { %v11204_v38 = vpop.f32.mrb[0].mxu1 }
 0x157   :  { %v11206_v39 = vpop.f32.mrb[2].mxu0  ;;  %v11208_v40 = vpop.f32.mrb[1].mxu1 }
 0x158   :  { %v11210_v41 = vpop.f32.mrb[3].mxu0 }
 0x15a   :  { %v11212_v42 = vpop.f32.mrb[2].mxu1 }
 0x15b   :  { %v11214_v43 = vpop.f32.mrb[4].mxu0  ;;  %v11216_v44 = vpop.f32.mrb[3].mxu1 }
 0x15c   :  { %v11218_v45 = vpop.f32.mrb[5].mxu0 }
 0x15e   :  { %v11220_v46 = vpop.f32.mrb[4].mxu1 }
 0x15f   :  { %v11222_v47 = vpop.f32.mrb[6].mxu0  ;;  %v11224_v48 = vpop.f32.mrb[5].mxu1 }
 0x160   :  { %v11226_v49 = vpop.f32.mrb[7].mxu0 }
 0x162   :  { %v11228_v50 = vpop.f32.mrb[6].mxu1 }
 0x163   :  { %v11230_v51 = vpop.f32.mrb[8].mxu0  ;;  %v11232_v52 = vpop.f32.mrb[7].mxu1 }
 0x164   :  { %v11234_v53 = vpop.f32.mrb[9].mxu0 }
 0x166   :  { %v11236_v54 = vpop.f32.mrb[8].mxu1 }
 0x167   :  { %v11238_v55 = vpop.f32.mrb[10].mxu0  ;;  %v11240_v56 = vpop.f32.mrb[9].mxu1 }
 0x168   :  { %v11242_v57 = vpop.f32.mrb[11].mxu0 }
 0x16a   :  { %v11244_v58 = vpop.f32.mrb[10].mxu1 }
 0x16b   :  { %v11246_v59 = vpop.f32.mrb[12].mxu0  ;;  %v801_v60 = vpop.f32.mrb[11].mxu1 }
 0x16c   :  { %v11248_v61 = vpop.f32.mrb[13].mxu0  ;;  %10093 = vmatpush3.xpose.msk.msra.mxu0 %vm230_vm1, %v801_v60 }
 0x16d   :  { %10102 = vmatprep.subr.mxu0 %v12318_v25 }
 0x16e   :  { %v11252_v62 = vpop.f32.mrb[12].mxu1 }
 0x16f   :  { %v11254_v63 = vpop.f32.mrb[14].mxu0  ;;  %v811_v0 = vpop.f32.mrb[13].mxu1 }
 0x170   :  { %v11256_v1 = vpop.f32.mrb[15].mxu0 }
 0x172   :  { %v11258_v2 = vpop.f32.mrb[14].mxu1 }
 0x173   :  { %v11260_v3 = vpop.f32.mrb[16].mxu0  ;;  %v821_v4 = vpop.f32.mrb[15].mxu1 }
 0x174   :  { %v477_v5 = vpop.f32.mrb[17].mxu0 }
 0x175   :  { %10095 = vmatmul.mubr.msk.f32.vlgmr.msra.gmra.mrb[70].mxu0 %vm230_vm1, %v477_v5 }
 0x176   :  { %10103 = vmatpush3.xpose.msk.msra.mxu0 %vm230_vm1, %v811_v0  ;;  %10104 = vmatprep.mubr.msk.f32.mxu0 %vm10942_vm2, %v12318_v25  ;;  %v11266_v6 = vpop.f32.mrb[16].mxu1 }
 0x177   :  { %v11268_v7 = vpop.f32.mrb[18].mxu0  ;;  %10112 = vmatprep.subr.mxu0 %v12318_v25  ;;  %v831_v8 = vpop.f32.mrb[17].mxu1 }
 0x178   :  { %v487_v9 = vpop.f32.mrb[19].mxu0 }
 0x179   :  { %10105 = vmatmul.mubr.msk.f32.vlgmr.msra.gmra.mrb[72].mxu0 %vm230_vm1, %v487_v9 }
 0x17a   :  { %10113 = vmatpush3.xpose.msk.msra.mxu0 %vm230_vm1, %v821_v4  ;;  %10114 = vmatprep.mubr.msk.f32.mxu0 %vm10942_vm2, %v12318_v25  ;;  %v11275_v10 = vpop.f32.mrb[18].mxu1 }
 0x17b   :  { %v11277_v11 = vpop.f32.mrb[20].mxu0  ;;  %10122 = vmatprep.subr.mxu0 %v12318_v25  ;;  %v841_v12 = vpop.f32.mrb[19].mxu1 }
 0x17c   :  { %v497_v13 = vpop.f32.mrb[21].mxu0 }
 0x17d   :  { %10115 = vmatmul.mubr.msk.f32.vlgmr.msra.gmra.mrb[74].mxu0 %vm230_vm1, %v497_v13 }
 0x17e   :  { %10123 = vmatpush3.xpose.msk.msra.mxu0 %vm230_vm1, %v831_v8  ;;  %10124 = vmatprep.mubr.msk.f32.mxu0 %vm10942_vm2, %v12318_v25  ;;  %v11284_v14 = vpop.f32.mrb[20].mxu1 }
 0x17f   :  { %v11286_v15 = vpop.f32.mrb[22].mxu0  ;;  %10132 = vmatprep.subr.mxu0 %v12318_v25  ;;  %v851_v16 = vpop.f32.mrb[21].mxu1 }
 0x180   :  { %v507_v17 = vpop.f32.mrb[23].mxu0 }
 0x181   :  { %10125 = vmatmul.mubr.msk.f32.vlgmr.msra.gmra.mrb[76].mxu0 %vm230_vm1, %v507_v17 }
 0x182   :  { %10133 = vmatpush3.xpose.msk.msra.mxu0 %vm230_vm1, %v841_v12  ;;  %10134 = vmatprep.mubr.msk.f32.mxu0 %vm10942_vm2, %v12318_v25  ;;  %v11293_v18 = vpop.f32.mrb[22].mxu1 }
 0x183   :  { %v11295_v19 = vpop.f32.mrb[24].mxu0  ;;  %10142 = vmatprep.subr.mxu0 %v12318_v25  ;;  %v861_v20 = vpop.f32.mrb[23].mxu1 }
 0x184   :  { %v517_v21 = vpop.f32.mrb[25].mxu0 }
 0x185   :  { %10135 = vmatmul.mubr.msk.f32.vlgmr.msra.gmra.mrb[78].mxu0 %vm230_vm1, %v517_v21 }
 0x186   :  { %10143 = vmatpush3.xpose.msk.msra.mxu0 %vm230_vm1, %v851_v16  ;;  %10144 = vmatprep.mubr.msk.f32.mxu0 %vm10942_vm2, %v12318_v25  ;;  %v11302_v22 = vpop.f32.mrb[24].mxu1 }
 0x187   :  { %v11304_v23 = vpop.f32.mrb[26].mxu0  ;;  %10152 = vmatprep.subr.mxu0 %v12318_v25  ;;  %v871_v24 = vpop.f32.mrb[25].mxu1 }
 0x188   :  { %v527_v26 = vpop.f32.mrb[27].mxu0 }
 0x189   :  { %10145 = vmatmul.mubr.msk.f32.vlgmr.msra.gmra.mrb[80].mxu0 %vm230_vm1, %v527_v26 }
 0x18a   :  { %10153 = vmatpush3.xpose.msk.msra.mxu0 %vm230_vm1, %v861_v20  ;;  %10154 = vmatprep.mubr.msk.f32.mxu0 %vm10942_vm2, %v12318_v25 }
 0x18b   :  { %v11311_v27 = vpop.f32.mrb[28].mxu0  ;;  %10162 = vmatprep.subr.mxu0 %v12318_v25 }
 0x18c   :  { %v537_v28 = vpop.f32.mrb[29].mxu0 }
 0x18d   :  { %10155 = vmatmul.mubr.msk.f32.vlgmr.msra.gmra.mrb[82].mxu0 %vm230_vm1, %v537_v28 }
 0x18e   :  { %10163 = vmatpush3.xpose.msk.msra.mxu0 %vm230_vm1, %v871_v24  ;;  %10164 = vmatprep.mubr.msk.f32.mxu0 %vm10942_vm2, %v12318_v25 }
 0x18f   :  { %v11318_v29 = vpop.f32.mrb[30].mxu0  ;;  %10172 = vmatprep.subr.mxu0 %v12318_v25 }
 0x190   :  { %v547_v30 = vpop.f32.mrb[31].mxu0 }
 0x191   :  { %10165 = vmatmul.mubr.msk.f32.vlgmr.msra.gmra.mrb[84].mxu0 %vm230_vm1, %v547_v30 }
 0x192   :  { %10174 = vmatprep.mubr.msk.f32.mxu0 %vm10942_vm2, %v12318_v25 }
 0x193   :  { %v9916_v31 = vpop.f32.mrb[32].mxu0 }
 0x194   :  { %v721_v32 = vpop.f32.mrb[33].mxu0 }
 0x195   :  { %10013 = vmatpush3.xpose.msk.msra.mxu1 %vm230_vm1, %v721_v32 }
 0x196   :  { %10017 = vmatprep.subr.mxu1 %v12318_v25 }
 0x197   :  { %v9919_v33 = vpop.f32.mrb[34].mxu0 }
 0x198   :  { %10015 = vmatmul.mubr.msk.f32.vlgmr.msra.gmra.mrb[26].mxu1 %vm230_vm1, %v11202_v37  ;;  %v731_v34 = vpop.f32.mrb[35].mxu0 }
 0x199   :  { %10018 = vmatpush3.xpose.msk.msra.mxu1 %vm230_vm1, %v9916_v31  ;;  %10019 = vmatprep.mubr.msk.f32.mxu1 %vm10942_vm2, %v12318_v25 }
 0x19a   :  { %10022 = vmatprep.subr.mxu1 %v12318_v25 }
 0x19b   :  { %v9922_v35 = vpop.f32.mrb[36].mxu0 }
 0x19c   :  { %10020 = vmatmul.mubr.msk.f32.vlgmr.msra.gmra.mrb[28].mxu1 %vm230_vm1, %v11200_v36  ;;  %v741_v60 = vpop.f32.mrb[37].mxu0 }
 0x19d   :  { %10023 = vmatpush3.xpose.msk.msra.mxu1 %vm230_vm1, %v731_v34  ;;  %10024 = vmatprep.mubr.msk.f32.mxu1 %vm10942_vm2, %v12318_v25 }
 0x19e   :  { %10027 = vmatprep.subr.mxu1 %v12318_v25 }
 0x19f   :  { %v11338_v37 = vpop.f32.mrb[38].mxu0 }
 0x1a0   :  { %10025 = vmatmul.mubr.msk.f32.vlgmr.msra.gmra.mrb[30].mxu1 %vm230_vm1, %v11210_v41  ;;  %v1045_v0 = vpop.f32.mrb[39].mxu0 }
 0x1a1   :  { %10028 = vmatpush3.xpose.msk.msra.mxu1 %vm230_vm1, %v9919_v33  ;;  %10029 = vmatprep.mubr.msk.f32.mxu1 %vm10942_vm2, %v12318_v25 }
 0x1a2   :  { %10032 = vmatprep.subr.mxu1 %v12318_v25  ;;  %10173 = vmatpush3.msra.mxu0 %v1045_v0 }
 0x1a3   :  { %v11346_v36 = vpop.f32.mrb[40].mxu0  ;;  %10182 = vmatprep.subr.mxu0 %v12318_v25 }
 0x1a4   :  { %10030 = vmatmul.mubr.msk.f32.vlgmr.msra.gmra.mrb[32].mxu1 %vm230_vm1, %v11206_v39  ;;  %v11351_v4 = vpop.f32.mrb[41].mxu0 }
 0x1a5   :  { %10033 = vmatpush3.xpose.msk.msra.mxu1 %vm230_vm1, %v741_v60  ;;  %10034 = vmatprep.mubr.msk.f32.mxu1 %vm10942_vm2, %v12318_v25 }
 0x1a6   :  { %10037 = vmatprep.subr.mxu1 %v12318_v25 }
 0x1a7   :  { %v11357_v41 = vpop.f32.mrb[42].mxu0 }
 0x1a8   :  { %10035 = vmatmul.mubr.msk.f32.vlgmr.msra.gmra.mrb[34].mxu1 %vm230_vm1, %v11218_v45  ;;  %v11361_v5 = vpop.f32.mrb[43].mxu0 }
 0x1a9   :  { %10038 = vmatpush3.xpose.msk.msra.mxu1 %vm230_vm1, %v9922_v35  ;;  %10039 = vmatprep.mubr.msk.f32.mxu1 %vm10942_vm2, %v12318_v25 }
 0x1aa   :  { %10042 = vmatprep.subr.mxu1 %v12318_v25 }
 0x1ab   :  { %v11367_v39 = vpop.f32.mrb[44].mxu0 }
 0x1ac   :  { %10040 = vmatmul.mubr.msk.f32.vlgmr.msra.gmra.mrb[36].mxu1 %vm230_vm1, %v11214_v43  ;;  %v11371_v8 = vpop.f32.mrb[45].mxu0 }
 0x1ad   :  { %10043 = vmatpush3.xpose.msk.msra.mxu1 %vm230_vm1, %v11208_v40  ;;  %10044 = vmatprep.mubr.msk.f32.mxu1 %vm10942_vm2, %v12318_v25 }
 0x1ae   :  { %10047 = vmatprep.subr.mxu1 %v12318_v25 }
 0x1af   :  { %v11378_v45 = vpop.f32.mrb[46].mxu0 }
 0x1b0   :  { %10045 = vmatmul.mubr.msk.f32.vlgmr.msra.gmra.mrb[38].mxu1 %vm230_vm1, %v11226_v49  ;;  %v11382_v9 = vpop.f32.mrb[47].mxu0 }
 0x1b1   :  { %10048 = vmatpush3.xpose.msk.msra.mxu1 %vm230_vm1, %v11204_v38  ;;  %10049 = vmatprep.mubr.msk.f32.mxu1 %vm10942_vm2, %v12318_v25 }
 0x1b2   :  { %10052 = vmatprep.subr.mxu1 %v12318_v25 }
 0x1b3   :  { %v11389_v40 = vpop.f32.mrb[48].mxu0 }
 0x1b4   :  { %10050 = vmatmul.mubr.msk.f32.vlgmr.msra.gmra.mrb[40].mxu1 %vm230_vm1, %v11222_v47  ;;  %v11393_v43 = vpop.f32.mrb[49].mxu0 }
 0x1b5   :  { %10053 = vmatpush3.xpose.msk.msra.mxu1 %vm230_vm1, %v11216_v44  ;;  %10054 = vmatprep.mubr.msk.f32.mxu1 %vm10942_vm2, %v12318_v25 }
 0x1b6   :  { %10057 = vmatprep.subr.mxu1 %v12318_v25 }
 0x1b7   :  { %v11400_v38 = vpop.f32.mrb[50].mxu0 }
 0x1b8   :  { %10055 = vmatmul.mubr.msk.f32.vlgmr.msra.gmra.mrb[42].mxu1 %vm230_vm1, %v11234_v53  ;;  %v11404_v49 = vpop.f32.mrb[51].mxu0 }
 0x1b9   :  { %10058 = vmatpush3.xpose.msk.msra.mxu1 %vm230_vm1, %v11212_v42  ;;  %10059 = vmatprep.mubr.msk.f32.mxu1 %vm10942_vm2, %v12318_v25 }
 0x1ba   :  { %10062 = vmatprep.subr.mxu1 %v12318_v25 }
 0x1bb   :  { %v11411_v44 = vpop.f32.mrb[52].mxu0 }
 0x1bc   :  { %10060 = vmatmul.mubr.msk.f32.vlgmr.msra.gmra.mrb[44].mxu1 %vm230_vm1, %v11230_v51  ;;  %v11415_v47 = vpop.f32.mrb[53].mxu0 }
 0x1bd   :  { %10063 = vmatpush3.xpose.msk.msra.mxu1 %vm230_vm1, %v11224_v48  ;;  %10064 = vmatprep.mubr.msk.f32.mxu1 %vm10942_vm2, %v12318_v25 }
 0x1be   :  { %10067 = vmatprep.subr.mxu1 %v12318_v25 }
 0x1bf   :  { %v11422_v42 = vpop.f32.mrb[54].mxu0 }
 0x1c0   :  { %10065 = vmatmul.mubr.msk.f32.vlgmr.msra.gmra.mrb[46].mxu1 %vm230_vm1, %v11242_v57  ;;  %v11426_v53 = vpop.f32.mrb[55].mxu0 }
 0x1c1   :  { %10068 = vmatpush3.xpose.msk.msra.mxu1 %vm230_vm1, %v11220_v46  ;;  %10069 = vmatprep.mubr.msk.f32.mxu1 %vm10942_vm2, %v12318_v25 }
 0x1c2   :  { %10072 = vmatprep.subr.mxu1 %v12318_v25 }
 0x1c3   :  { %v11433_v48 = vpop.f32.mrb[56].mxu0 }
 0x1c4   :  { %10070 = vmatmul.mubr.msk.f32.vlgmr.msra.gmra.mrb[48].mxu1 %vm230_vm1, %v11238_v55  ;;  %v11437_v51 = vpop.f32.mrb[57].mxu0 }
 0x1c5   :  { %10073 = vmatpush3.xpose.msk.msra.mxu1 %vm230_vm1, %v11232_v52  ;;  %10074 = vmatprep.mubr.msk.f32.mxu1 %vm10942_vm2, %v12318_v25 }
 0x1c6   :  { %10077 = vmatprep.subr.mxu1 %v12318_v25 }
 0x1c7   :  { %v11444_v46 = vpop.f32.mrb[58].mxu0 }
 0x1c8   :  { %12320 = vst [vmem:[#allocation20_spill] sm:$0xff] %v11444_v46  ;;  %10075 = vmatmul.mubr.msk.f32.vlgmr.msra.gmra.mrb[50].mxu1 %vm230_vm1, %v11248_v61  ;;  %v11448_v57 = vpop.f32.mrb[59].mxu0 }
 0x1c9   :  { %12321 = vst [vmem:[#allocation21_spill] sm:$0xff] %v11448_v57  ;;  %10078 = vmatpush3.xpose.msk.msra.mxu1 %vm230_vm1, %v11228_v50  ;;  %10079 = vmatprep.mubr.msk.f32.mxu1 %vm10942_vm2, %v12318_v25 }
 0x1ca   :  { %10082 = vmatprep.subr.mxu1 %v12318_v25 }
 0x1cb   :  { %v11455_v52 = vpop.f32.mrb[60].mxu0 }
 0x1cc   :  { %12322 = vst [vmem:[#allocation22_spill] sm:$0xff] %v11455_v52  ;;  %10080 = vmatmul.mubr.msk.f32.vlgmr.msra.gmra.mrb[52].mxu1 %vm230_vm1, %v11246_v59  ;;  %v11459_v55 = vpop.f32.mrb[61].mxu0 }
 0x1cd   :  { %12323 = vst [vmem:[#allocation23_spill] sm:$0xff] %v11459_v55  ;;  %10083 = vmatpush3.xpose.msk.msra.mxu1 %vm230_vm1, %v11240_v56  ;;  %10084 = vmatprep.mubr.msk.f32.mxu1 %vm10942_vm2, %v12318_v25 }
 0x1ce   :  { %10087 = vmatprep.subr.mxu1 %v12318_v25 }
 0x1cf   :  { %v11466_v50 = vpop.f32.mrb[62].mxu0 }
 0x1d0   :  { %12324 = vst [vmem:[#allocation24_spill] sm:$0xff] %v11466_v50  ;;  %10085 = vmatmul.mubr.msk.f32.vlgmr.msra.gmra.mrb[54].mxu1 %vm230_vm1, %v11256_v1  ;;  %v11470_v61 = vpop.f32.mrb[63].mxu0 }
 0x1d1   :  { %12325 = vst [vmem:[#allocation25_spill] sm:$0xff] %v11470_v61  ;;  %10088 = vmatpush3.xpose.msk.msra.mxu1 %vm230_vm1, %v11236_v54  ;;  %10089 = vmatprep.mubr.msk.f32.mxu1 %vm10942_vm2, %v12318_v25 }
 0x1d2   :  { %10097 = vmatprep.subr.mxu1 %v12318_v25 }
 0x1d3   :  { %v11477_v56 = vpop.f32.mrb[64].mxu0 }
 0x1d4   :  { %12326 = vst [vmem:[#allocation26_spill] sm:$0xff] %v11477_v56  ;;  %10090 = vmatmul.mubr.msk.f32.vlgmr.msra.gmra.mrb[56].mxu1 %vm230_vm1, %v11254_v63  ;;  %v11481_v59 = vpop.f32.mrb[65].mxu0 }
 0x1d5   :  { %12327 = vst [vmem:[#allocation27_spill] sm:$0xff] %v11481_v59  ;;  %10098 = vmatpush3.xpose.msk.msra.mxu1 %vm230_vm1, %v11244_v58  ;;  %10099 = vmatprep.mubr.msk.f32.mxu1 %vm10942_vm2, %v12318_v25 }
 0x1d6   :  { %10107 = vmatprep.subr.mxu1 %v12318_v25 }
 0x1d7   :  { %v11488_v54 = vpop.f32.mrb[66].mxu0 }
 0x1d8   :  { %12328 = vst [vmem:[#allocation28_spill] sm:$0xff] %v11488_v54  ;;  %10100 = vmatmul.mubr.msk.f32.vlgmr.msra.gmra.mrb[58].mxu1 %vm230_vm1, %v11260_v3  ;;  %v11492_v1 = vpop.f32.mrb[67].mxu0 }
 0x1d9   :  { %12329 = vst [vmem:[#allocation29_spill] sm:$0xff] %v11492_v1  ;;  %10108 = vmatpush3.xpose.msk.msra.mxu1 %vm230_vm1, %v11252_v62  ;;  %10109 = vmatprep.mubr.msk.f32.mxu1 %vm10942_vm2, %v12318_v25 }
 0x1da   :  { %10117 = vmatprep.subr.mxu1 %v12318_v25 }
 0x1db   :  { %v11499_v58 = vpop.f32.mrb[68].mxu0 }
 0x1dc   :  { %12330 = vst [vmem:[#allocation30_spill] sm:$0xff] %v11499_v58  ;;  %10110 = vmatmul.mubr.msk.f32.vlgmr.msra.gmra.mrb[60].mxu1 %vm230_vm1, %v11268_v7  ;;  %v11503_v63 = vpop.f32.mrb[69].mxu0 }
 0x1dd   :  { %12331 = vst [vmem:[#allocation31_spill] sm:$0xff] %v11503_v63  ;;  %10118 = vmatpush3.xpose.msk.msra.mxu1 %vm230_vm1, %v11258_v2  ;;  %10119 = vmatprep.mubr.msk.f32.mxu1 %vm10942_vm2, %v12318_v25 }
 0x1de   :  { %10127 = vmatprep.subr.mxu1 %v12318_v25 }
 0x1e0   :  { %10120 = vmatmul.mubr.msk.f32.vlgmr.msra.gmra.mrb[62].mxu1 %vm230_vm1, %v11277_v11 }
 0x1e1   :  { %10128 = vmatpush3.xpose.msk.msra.mxu1 %vm230_vm1, %v11266_v6  ;;  %10129 = vmatprep.mubr.msk.f32.mxu1 %vm10942_vm2, %v12318_v25 }
 0x1e2   :  { %10137 = vmatprep.subr.mxu1 %v12318_v25 }
 0x1e4   :  { %10130 = vmatmul.mubr.msk.f32.vlgmr.msra.gmra.mrb[64].mxu1 %vm230_vm1, %v11286_v15 }
 0x1e5   :  { %10138 = vmatpush3.xpose.msk.msra.mxu1 %vm230_vm1, %v11275_v10  ;;  %10139 = vmatprep.mubr.msk.f32.mxu1 %vm10942_vm2, %v12318_v25 }
 0x1e6   :  { %10147 = vmatprep.subr.mxu1 %v12318_v25 }
 0x1e8   :  { %10140 = vmatmul.mubr.msk.f32.vlgmr.msra.gmra.mrb[66].mxu1 %vm230_vm1, %v11295_v19 }
 0x1e9   :  { %10148 = vmatpush3.xpose.msk.msra.mxu1 %vm230_vm1, %v11284_v14  ;;  %10149 = vmatprep.mubr.msk.f32.mxu1 %vm10942_vm2, %v12318_v25 }
 0x1ea   :  { %10157 = vmatprep.subr.mxu1 %v12318_v25 }
 0x1ec   :  { %10150 = vmatmul.mubr.msk.f32.vlgmr.msra.gmra.mrb[68].mxu1 %vm230_vm1, %v11304_v23 }
 0x1ed   :  { %10158 = vmatpush3.xpose.msk.msra.mxu1 %vm230_vm1, %v11293_v18  ;;  %10159 = vmatprep.mubr.msk.f32.mxu1 %vm10942_vm2, %v12318_v25 }
 0x1ee   :  { %10167 = vmatprep.subr.mxu1 %v12318_v25 }
 0x1f0   :  { %10160 = vmatmul.mubr.msk.f32.vlgmr.msra.gmra.mrb[70].mxu1 %vm230_vm1, %v11311_v27 }
 0x1f1   :  { %10168 = vmatpush3.xpose.msk.msra.mxu1 %vm230_vm1, %v11302_v22  ;;  %10169 = vmatprep.mubr.msk.f32.mxu1 %vm10942_vm2, %v12318_v25 }
 0x1f2   :  { %10177 = vmatprep.subr.mxu1 %v12318_v25 }
 0x1f4   :  { %10170 = vmatmul.mubr.msk.f32.vlgmr.msra.gmra.mrb[72].mxu1 %vm230_vm1, %v11318_v29 }
 0x1f5   :  { %10178 = vmatpush3.msra.mxu1 %v11338_v37  ;;  %10179 = vmatprep.mubr.msk.f32.mxu1 %vm10942_vm2, %v12318_v25 }
 0x1f6   :  { %10187 = vmatprep.subr.mxu1 %v12318_v25 }
 0x248   :  { %v11551_v62 = vpop.f32.mrb[70].mxu0 }
 0x249   :  { %v10096_v2 = vpop.f32.mrb[71].mxu0 }
 0x24c   :  { %v11553_v3 = vpop.f32.mrb[72].mxu0 }
 0x24d   :  { %v10106_v6 = vpop.f32.mrb[73].mxu0 }
 0x250   :  { %v11555_v7 = vpop.f32.mrb[74].mxu0 }
 0x251   :  { %v10116_v10 = vpop.f32.mrb[75].mxu0 }
 0x254   :  { %v11557_v11 = vpop.f32.mrb[76].mxu0 }
 0x255   :  { %v10126_v12 = vpop.f32.mrb[77].mxu0 }
 0x258   :  { %v11559_v13 = vpop.f32.mrb[78].mxu0 }
 0x259   :  { %v10136_v14 = vpop.f32.mrb[79].mxu0 }
 0x25c   :  { %v11561_v15 = vpop.f32.mrb[80].mxu0 }
 0x25d   :  { %v10146_v16 = vpop.f32.mrb[81].mxu0 }
 0x260   :  { %v11563_v17 = vpop.f32.mrb[82].mxu0 }
 0x261   :  { %v10156_v18 = vpop.f32.mrb[83].mxu0 }
 0x264   :  { %v11565_v19 = vpop.f32.mrb[84].mxu0 }
 0x265   :  { %v10166_v20 = vpop.f32.mrb[85].mxu0 }
 0x26b   :  { %v1276_v21 = vpop.f32.mrb[26].mxu1 }
 0x26c   :  { %v11567_v22 = vmul.f32 0.5, %v1276_v21  ;;  %v10016_v23 = vpop.f32.mrb[27].mxu1 }
 0x26e   :  { %v3669_v24 = vsel %vm3668_vm3, %v11567_v22, -inf }
 0x26f   :  { %3670 = vmax.xlane.f32.xlu0 %v3669_v24  ;;  %v1352_v26 = vpop.f32.mrb[28].mxu1 }
 0x270   :  { %v11571_v27 = vmul.f32 0.5, %v1352_v26  ;;  %v10021_v28 = vpop.f32.mrb[29].mxu1 }
 0x272   :  { %v3672_v29 = vsel %vm3668_vm3, %v11571_v27, -inf }
 0x273   :  { %3673 = vmax.xlane.f32.xlu0 %v3672_v29  ;;  %v1428_v30 = vpop.f32.mrb[30].mxu1 }
 0x274   :  { %v11575_v31 = vmul.f32 0.5, %v1428_v30  ;;  %v10026_v32 = vpop.f32.mrb[31].mxu1 }
 0x276   :  { %v3675_v33 = vsel %vm3668_vm3, %v11575_v31, -inf }
 0x277   :  { %3676 = vmax.xlane.f32.xlu1 %v3675_v33  ;;  %v1504_v34 = vpop.f32.mrb[32].mxu1 }
 0x278   :  { %v11579_v35 = vmul.f32 0.5, %v1504_v34  ;;  %v10031_v60 = vpop.f32.mrb[33].mxu1 }
 0x27a   :  { %v3678_v37 = vsel %vm3668_vm3, %v11579_v35, -inf }
 0x27b   :  { %3679 = vmax.xlane.f32.xlu1 %v3678_v37  ;;  %v1580_v0 = vpop.f32.mrb[34].mxu1 }
 0x27c   :  { %v11583_v2 = vmul.f32 0.5, %v1580_v0  ;;  %v10036_v6 = vpop.f32.mrb[35].mxu1 }
 0x27e   :  { %v3681_v10 = vsel %vm3668_vm3, %v11583_v2, -inf }
 0x27f   :  { %3682 = vmax.xlane.f32.xlu0 %v3681_v10  ;;  %v1656_v12 = vpop.f32.mrb[36].mxu1 }
 0x280   :  { %v11587_v14 = vmul.f32 0.5, %v1656_v12  ;;  %v10041_v16 = vpop.f32.mrb[37].mxu1 }
 0x282   :  { %v3684_v18 = vsel %vm3668_vm3, %v11587_v14, -inf }
 0x283   :  { %3685 = vmax.xlane.f32.xlu1 %v3684_v18  ;;  %v1732_v20 = vpop.f32.mrb[38].mxu1 }
 0x284   :  { %v11591_v21 = vmul.f32 0.5, %v1732_v20  ;;  %v10046_v23 = vpop.f32.mrb[39].mxu1 }
 0x286   :  { %v3687_v24 = vsel %vm3668_vm3, %v11591_v21, -inf }
 0x287   :  { %3688 = vmax.xlane.f32.xlu0 %v3687_v24  ;;  %v1808_v26 = vpop.f32.mrb[40].mxu1 }
 0x288   :  { %v11595_v28 = vmul.f32 0.5, %v1808_v26  ;;  %v10051_v29 = vpop.f32.mrb[41].mxu1 }
 0x28a   :  { %v3690_v30 = vsel %vm3668_vm3, %v11595_v28, -inf }
 0x28b   :  { %3691 = vmax.xlane.f32.xlu1 %v3690_v30  ;;  %v1884_v32 = vpop.f32.mrb[42].mxu1 }
 0x28c   :  { %v11599_v33 = vmul.f32 0.5, %v1884_v32  ;;  %v10056_v34 = vpop.f32.mrb[43].mxu1 }
 0x28e   :  { %v3693_v60 = vsel %vm3668_vm3, %v11599_v33, -inf }
 0x28f   :  { %3694 = vmax.xlane.f32.xlu0 %v3693_v60  ;;  %v1960_v37 = vpop.f32.mrb[44].mxu1 }
 0x290   :  { %v11603_v0 = vmul.f32 0.5, %v1960_v37  ;;  %v10061_v6 = vpop.f32.mrb[45].mxu1 }
 0x292   :  { %v3696_v10 = vsel %vm3668_vm3, %v11603_v0, -inf }
 0x293   :  { %3697 = vmax.xlane.f32.xlu1 %v3696_v10  ;;  %v2036_v12 = vpop.f32.mrb[46].mxu1 }
 0x294   :  { %v11607_v16 = vmul.f32 0.5, %v2036_v12  ;;  %v10066_v18 = vpop.f32.mrb[47].mxu1 }
 0x296   :  { %v3699_v20 = vsel %vm3668_vm3, %v11607_v16, -inf }
 0x297   :  { %3700 = vmax.xlane.f32.xlu0 %v3699_v20  ;;  %v2112_v23 = vpop.f32.mrb[48].mxu1 }
 0x298   :  { %v11611_v24 = vmul.f32 0.5, %v2112_v23  ;;  %v10071_v26 = vpop.f32.mrb[49].mxu1 }
 0x299   :  { %v11626_v26 = vmul.f32 0.5, %v11551_v62 }
 0x29a   :  { %v3702_v29 = vsel %vm3668_vm3, %v11611_v24, -inf }
 0x29b   :  { %3703 = vmax.xlane.f32.xlu1 %v3702_v29  ;;  %v2188_v30 = vpop.f32.mrb[50].mxu1 }
 0x29c   :  { %v11615_v32 = vmul.f32 0.5, %v2188_v30  ;;  %v10076_v34 = vpop.f32.mrb[51].mxu1 }
 0x29e   :  { %v3705_v60 = vsel %vm3668_vm3, %v11615_v32, -inf }
 0x29f   :  { %3706 = vmax.xlane.f32.xlu0 %v3705_v60  ;;  %v2264_v37 = vpop.f32.mrb[52].mxu1 }
 0x2a0   :  { %v11619_v6 = vmul.f32 0.5, %v2264_v37  ;;  %v10081_v10 = vpop.f32.mrb[53].mxu1  ;;  %v11633_v37 = vmul.f32 0.5, %v11553_v3 }
 0x2a2   :  { %v3708_v12 = vsel %vm3668_vm3, %v11619_v6, -inf  ;;  %v3723_v3 = vsel %vm3668_vm3, %v11633_v37, -inf }
 0x2a3   :  { %3709 = vmax.xlane.f32.xlu1 %v3708_v12  ;;  %v2340_v18 = vpop.f32.mrb[54].mxu1  ;;  %v3717_v12 = vsel %vm3668_vm3, %v11626_v26, -inf }
 0x2a4   :  { %v11623_v20 = vmul.f32 0.5, %v2340_v18  ;;  %v10086_v23 = vpop.f32.mrb[55].mxu1 }
 0x2a6   :  { %v3711_v29 = vsel %vm3668_vm3, %v11623_v20, -inf }
 0x2a7   :  { %3712 = vmax.xlane.f32.xlu0 %v3711_v29  ;;  %v2416_v30 = vpop.f32.mrb[56].mxu1  ;;  %v11642_v29 = vmul.f32 0.5, %v11555_v7 }
 0x2a8   :  { %v11630_v34 = vmul.f32 0.5, %v2416_v30  ;;  %v10091_v60 = vpop.f32.mrb[57].mxu1 }
 0x2a9   :  { %v3729_v7 = vsel %vm3668_vm3, %v11642_v29, -inf }
 0x2aa   :  { %v3714_v10 = vsel %vm3668_vm3, %v11630_v34, -inf }
 0x2ab   :  { %3715 = vmax.xlane.f32.xlu1 %v3714_v10  ;;  %v2568_v62 = vpop.f32.mrb[58].mxu1  ;;  %3718 = vmax.xlane.f32.xlu0 %v3717_v12  ;;  %v11651_v12 = vmul.f32 0.5, %v11557_v11 }
 0x2ac   :  { %v11639_v18 = vmul.f32 0.5, %v2568_v62  ;;  %v10101_v23 = vpop.f32.mrb[59].mxu1 }
 0x2ad   :  { %v3735_v11 = vsel %vm3668_vm3, %v11651_v12, -inf }
 0x2ae   :  { %v3720_v30 = vsel %vm3668_vm3, %v11639_v18, -inf }
 0x2af   :  { %3721 = vmax.xlane.f32.xlu1 %v3720_v30  ;;  %v2720_v60 = vpop.f32.mrb[60].mxu1  ;;  %3724 = vmax.xlane.f32.xlu0 %v3723_v3  ;;  %v11660_v3 = vmul.f32 0.5, %v11559_v13 }
 0x2b0   :  { %v11648_v25 = vmul.f32 0.5, %v2720_v60  ;;  %v10111_v10 = vpop.f32.mrb[61].mxu1 }
 0x2b1   :  { %v3741_v13 = vsel %vm3668_vm3, %v11660_v3, -inf }
 0x2b2   :  { %v3726_v62 = vsel %vm3668_vm3, %v11648_v25, -inf }
 0x2b3   :  { %3727 = vmax.xlane.f32.xlu1 %v3726_v62  ;;  %v2872_v23 = vpop.f32.mrb[62].mxu1  ;;  %3730 = vmax.xlane.f32.xlu0 %v3729_v7  ;;  %v11669_v7 = vmul.f32 0.5, %v11561_v15 }
 0x2b4   :  { %v11657_v58 = vmul.f32 0.5, %v2872_v23  ;;  %v10121_v30 = vpop.f32.mrb[63].mxu1 }
 0x2b5   :  { %v3747_v15 = vsel %vm3668_vm3, %v11669_v7, -inf }
 0x2b6   :  { %v3732_v60 = vsel %vm3668_vm3, %v11657_v58, -inf }
 0x2b7   :  { %3733 = vmax.xlane.f32.xlu1 %v3732_v60  ;;  %v3024_v10 = vpop.f32.mrb[64].mxu1  ;;  %3736 = vmax.xlane.f32.xlu0 %v3735_v11  ;;  %v11678_v11 = vmul.f32 0.5, %v11563_v17 }
 0x2b8   :  { %v11666_v63 = vmul.f32 0.5, %v3024_v10  ;;  %v10131_v62 = vpop.f32.mrb[65].mxu1 }
 0x2b9   :  { %v3753_v17 = vsel %vm3668_vm3, %v11678_v11, -inf }
 0x2ba   :  { %v3738_v23 = vsel %vm3668_vm3, %v11666_v63, -inf }
 0x2bb   :  { %3739 = vmax.xlane.f32.xlu1 %v3738_v23  ;;  %v3176_v30 = vpop.f32.mrb[66].mxu1  ;;  %3742 = vmax.xlane.f32.xlu0 %v3741_v13  ;;  %v11687_v13 = vmul.f32 0.5, %v11565_v19 }
 0x2bc   :  { %v11675_v54 = vmul.f32 0.5, %v3176_v30  ;;  %v10141_v60 = vpop.f32.mrb[67].mxu1 }
 0x2be   :  { %v3744_v10 = vsel %vm3668_vm3, %v11675_v54, -inf }
 0x2bf   :  { %3745 = vmax.xlane.f32.xlu1 %v3744_v10  ;;  %v3328_v62 = vpop.f32.mrb[68].mxu1  ;;  %3748 = vmax.xlane.f32.xlu0 %v3747_v15 }
 0x2c0   :  { %v11684_v1 = vmul.f32 0.5, %v3328_v62  ;;  %v10151_v23 = vpop.f32.mrb[69].mxu1  ;;  %v3759_v62 = vsel %vm3668_vm3, %v11687_v13, -inf }
 0x2c2   :  { %v3750_v30 = vsel %vm3668_vm3, %v11684_v1, -inf }
 0x2c3   :  { %3751 = vmax.xlane.f32.xlu1 %v3750_v30  ;;  %v3480_v60 = vpop.f32.mrb[70].mxu1  ;;  %3754 = vmax.xlane.f32.xlu0 %v3753_v17 }
 0x2c4   :  { %v11693_v56 = vmul.f32 0.5, %v3480_v60  ;;  %v10161_v10 = vpop.f32.mrb[71].mxu1 }
 0x2c6   :  { %v3756_v15 = vsel %vm3668_vm3, %v11693_v56, -inf }
 0x2c7   :  { %3757 = vmax.xlane.f32.xlu1 %v3756_v15  ;;  %v3632_v19 = vpop.f32.mrb[72].mxu1  ;;  %3760 = vmax.xlane.f32.xlu0 %v3759_v62 }
 0x2c8   :  { %v11699_v23 = vmul.f32 0.5, %v3632_v19  ;;  %v10171_v59 = vpop.f32.mrb[73].mxu1 }
 0x2ca   :  { %v3762_v30 = vsel %vm3668_vm3, %v11699_v23, -inf }
 0x2cb   :  { %3763 = vmax.xlane.f32.xlu1 %v3762_v30 }
 0x2fc   :  { %v3671_v17 = vpop.xlane.xlu0 %3670 }
 0x2fd   :  { %v3765_v60 = vsub.f32 %v11567_v22, %v3671_v17 }
 0x2ff   :  { %v3797_v10 = vmul.f32 1.442695, %v3765_v60 }
 0x300   :  { %v3674_v50 = vpop.xlane.xlu0 %3673 }
 0x301   :  { %10600 = vpow2.f32 %v3797_v10  ;;  %v3766_v61 = vsub.f32 %v11571_v27, %v3674_v50 }
 0x303   :  { %v3799_v52 = vmul.f32 1.442695, %v3766_v61 }
 0x304   :  { %v3677_v55 = vpop.xlane.xlu1 %3676 }
 0x305   :  { %10602 = vpow2.f32 %v3799_v52  ;;  %v3767_v15 = vsub.f32 %v11575_v31, %v3677_v55 }
 0x307   :  { %v3801_v62 = vmul.f32 1.442695, %v3767_v15 }
 0x308   :  { %v3680_v19 = vpop.xlane.xlu1 %3679 }
 0x309   :  { %10604 = vpow2.f32 %v3801_v62  ;;  %v3768_v59 = vsub.f32 %v11579_v35, %v3680_v19 }
 0x30b   :  { %v11707_v46 = vpop.eup %10600  ;;  %v3803_v30 = vmul.f32 1.442695, %v3768_v59 }
 0x30c   :  { %v3683_v57 = vpop.xlane.xlu0 %3682  ;;  %v3861_v22 = vsel %vm3668_vm3, %v11707_v46, 0.0 }
 0x30d   :  { %10606 = vpow2.f32 %v3803_v30  ;;  %v3769_v50 = vsub.f32 %v11583_v2, %v3683_v57  ;;  %3862 = vadd.xlane.f32.xlu0 %v3861_v22 }
 0x30f   :  { %v11712_v61 = vpop.eup %10602  ;;  %v3805_v52 = vmul.f32 1.442695, %v3769_v50 }
 0x310   :  { %v3686_v55 = vpop.xlane.xlu1 %3685  ;;  %v3864_v27 = vsel %vm3668_vm3, %v11712_v61, 0.0 }
 0x311   :  { %10608 = vpow2.f32 %v3805_v52  ;;  %v3770_v31 = vsub.f32 %v11587_v14, %v3686_v55  ;;  %3865 = vadd.xlane.f32.xlu1 %v3864_v27 }
 0x313   :  { %v11717_v35 = vpop.eup %10604  ;;  %v3807_v17 = vmul.f32 1.442695, %v3770_v31 }
 0x314   :  { %v3689_v60 = vpop.xlane.xlu0 %3688  ;;  %v3867_v10 = vsel %vm3668_vm3, %v11717_v35, 0.0 }
 0x315   :  { %10610 = vpow2.f32 %v3807_v17  ;;  %v3771_v57 = vsub.f32 %v11591_v21, %v3689_v60  ;;  %3868 = vadd.xlane.f32.xlu0 %v3867_v10 }
 0x317   :  { %v11722_v2 = vpop.eup %10606  ;;  %v3809_v15 = vmul.f32 1.442695, %v3771_v57 }
 0x318   :  { %v3692_v62 = vpop.xlane.xlu1 %3691  ;;  %v3870_v19 = vsel %vm3668_vm3, %v11722_v2, 0.0 }
 0x319   :  { %10612 = vpow2.f32 %v3809_v15  ;;  %v3772_v14 = vsub.f32 %v11595_v28, %v3692_v62  ;;  %3871 = vadd.xlane.f32.xlu1 %v3870_v19 }
 0x31b   :  { %v11727_v59 = vpop.eup %10608  ;;  %v3811_v30 = vmul.f32 1.442695, %v3772_v14 }
 0x31c   :  { %v3695_v22 = vpop.xlane.xlu0 %3694  ;;  %v3873_v50 = vsel %vm3668_vm3, %v11727_v59, 0.0 }
 0x31d   :  { %10614 = vpow2.f32 %v3811_v30  ;;  %v3773_v21 = vsub.f32 %v11599_v33, %v3695_v22  ;;  %3874 = vadd.xlane.f32.xlu0 %v3873_v50 }
 0x31f   :  { %v11732_v52 = vpop.eup %10610  ;;  %v3813_v55 = vmul.f32 1.442695, %v3773_v21 }
 0x320   :  { %v3698_v27 = vpop.xlane.xlu1 %3697  ;;  %v3876_v31 = vsel %vm3668_vm3, %v11732_v52, 0.0 }
 0x321   :  { %10616 = vpow2.f32 %v3813_v55  ;;  %v3774_v28 = vsub.f32 %v11603_v0, %v3698_v27  ;;  %3877 = vadd.xlane.f32.xlu1 %v3876_v31 }
 0x323   :  { %v11737_v17 = vpop.eup %10612  ;;  %v3815_v60 = vmul.f32 1.442695, %v3774_v28 }
 0x324   :  { %v3701_v10 = vpop.xlane.xlu0 %3700  ;;  %v3879_v57 = vsel %vm3668_vm3, %v11737_v17, 0.0 }
 0x325   :  { %10618 = vpow2.f32 %v3815_v60  ;;  %v3775_v33 = vsub.f32 %v11607_v16, %v3701_v10  ;;  %3880 = vadd.xlane.f32.xlu0 %v3879_v57 }
 0x327   :  { %v11742_v15 = vpop.eup %10614  ;;  %v3817_v62 = vmul.f32 1.442695, %v3775_v33 }
 0x328   :  { %v3704_v19 = vpop.xlane.xlu1 %3703  ;;  %v3882_v14 = vsel %vm3668_vm3, %v11742_v15, 0.0 }
 0x329   :  { %10620 = vpow2.f32 %v3817_v62  ;;  %v3776_v0 = vsub.f32 %v11611_v24, %v3704_v19  ;;  %3883 = vadd.xlane.f32.xlu1 %v3882_v14 }
 0x32b   :  { %v11747_v30 = vpop.eup %10616  ;;  %v3819_v22 = vmul.f32 1.442695, %v3776_v0 }
 0x32c   :  { %v3707_v50 = vpop.xlane.xlu0 %3706  ;;  %v3885_v21 = vsel %vm3668_vm3, %v11747_v30, 0.0 }
 0x32d   :  { %10622 = vpow2.f32 %v3819_v22  ;;  %v3777_v16 = vsub.f32 %v11615_v32, %v3707_v50  ;;  %3886 = vadd.xlane.f32.xlu0 %v3885_v21 }
 0x32f   :  { %v11752_v55 = vpop.eup %10618  ;;  %v3821_v27 = vmul.f32 1.442695, %v3777_v16 }
 0x330   :  { %v3710_v31 = vpop.xlane.xlu1 %3709  ;;  %v3888_v28 = vsel %vm3668_vm3, %v11752_v55, 0.0 }
 0x331   :  { %10624 = vpow2.f32 %v3821_v27  ;;  %v3778_v24 = vsub.f32 %v11619_v6, %v3710_v31  ;;  %3889 = vadd.xlane.f32.xlu1 %v3888_v28 }
 0x333   :  { %v11757_v60 = vpop.eup %10620  ;;  %v3823_v10 = vmul.f32 1.442695, %v3778_v24 }
 0x334   :  { %v3713_v57 = vpop.xlane.xlu0 %3712  ;;  %v3891_v33 = vsel %vm3668_vm3, %v11757_v60, 0.0 }
 0x335   :  { %10626 = vpow2.f32 %v3823_v10  ;;  %v3779_v32 = vsub.f32 %v11623_v20, %v3713_v57  ;;  %3892 = vadd.xlane.f32.xlu0 %v3891_v33 }
 0x337   :  { %v11762_v62 = vpop.eup %10622  ;;  %v3825_v19 = vmul.f32 1.442695, %v3779_v32 }
 0x338   :  { %v3716_v14 = vpop.xlane.xlu1 %3715  ;;  %v3719_v0 = vpop.xlane.xlu0 %3718  ;;  %v3894_v6 = vsel %vm3668_vm3, %v11762_v62, 0.0 }
 0x339   :  { %10628 = vpow2.f32 %v3825_v19  ;;  %v3780_v22 = vsub.f32 %v11630_v34, %v3716_v14  ;;  %v3781_v50 = vsub.f32 %v11626_v26, %v3719_v0  ;;  %3895 = vadd.xlane.f32.xlu1 %v3894_v6 }
 0x33b   :  { %v11768_v21 = vpop.eup %10624  ;;  %v3827_v16 = vmul.f32 1.442695, %v3780_v22  ;;  %v3829_v27 = vmul.f32 1.442695, %v3781_v50 }
 0x33c   :  { %v3722_v20 = vpop.xlane.xlu1 %3721  ;;  %v3725_v31 = vpop.xlane.xlu0 %3724  ;;  %v3897_v28 = vsel %vm3668_vm3, %v11768_v21, 0.0 }
 0x33d   :  { %10630 = vpow2.f32 %v3827_v16  ;;  %v3782_v24 = vsub.f32 %v11639_v18, %v3722_v20  ;;  %v3783_v10 = vsub.f32 %v11633_v37, %v3725_v31  ;;  %3898 = vadd.xlane.f32.xlu0 %v3897_v28 }
 0x33e   :  { %10632 = vpow2.f32 %v3829_v27 }
 0x33f   :  { %v11774_v34 = vpop.eup %10626  ;;  %v3831_v26 = vmul.f32 1.442695, %v3782_v24  ;;  %v3833_v57 = vmul.f32 1.442695, %v3783_v10 }
 0x340   :  { %v3728_v33 = vpop.xlane.xlu1 %3727  ;;  %v3731_v32 = vpop.xlane.xlu0 %3730  ;;  %v3900_v19 = vsel %vm3668_vm3, %v11774_v34, 0.0 }
 0x341   :  { %10634 = vpow2.f32 %v3831_v26  ;;  %v3784_v14 = vsub.f32 %v11648_v25, %v3728_v33  ;;  %v3785_v0 = vsub.f32 %v11642_v29, %v3731_v32  ;;  %3901 = vadd.xlane.f32.xlu1 %v3900_v19 }
 0x342   :  { %10636 = vpow2.f32 %v3833_v57 }
 0x343   :  { %v11780_v18 = vpop.eup %10628  ;;  %v3835_v37 = vmul.f32 1.442695, %v3784_v14  ;;  %v3837_v6 = vmul.f32 1.442695, %v3785_v0 }
 0x344   :  { %v3734_v22 = vpop.xlane.xlu1 %3733  ;;  %v3737_v50 = vpop.xlane.xlu0 %3736  ;;  %v3903_v16 = vsel %vm3668_vm3, %v11780_v18, 0.0 }
 0x345   :  { %10638 = vpow2.f32 %v3835_v37  ;;  %v3786_v27 = vsub.f32 %v11657_v58, %v3734_v22  ;;  %v3787_v20 = vsub.f32 %v11651_v12, %v3737_v50  ;;  %3904 = vadd.xlane.f32.xlu0 %v3903_v16 }
 0x346   :  { %10640 = vpow2.f32 %v3837_v6 }
 0x347   :  { %v11786_v25 = vpop.eup %10630  ;;  %v3839_v29 = vmul.f32 1.442695, %v3786_v27  ;;  %v3841_v31 = vmul.f32 1.442695, %v3787_v20 }
 0x348   :  { %v11788_v28 = vpop.eup %10632  ;;  %v3740_v24 = vpop.xlane.xlu1 %3739  ;;  %v3906_v26 = vsel %vm3668_vm3, %v11786_v25, 0.0 }
 0x349   :  { %v3743_v10 = vpop.xlane.xlu0 %3742  ;;  %10642 = vpow2.f32 %v3839_v29  ;;  %v3788_v57 = vsub.f32 %v11666_v63, %v3740_v24  ;;  %3907 = vadd.xlane.f32.xlu1 %v3906_v26  ;;  %v3909_v12 = vsel %vm3668_vm3, %v11788_v28, 0.0 }
 0x34a   :  { %v3789_v58 = vsub.f32 %v11660_v3, %v3743_v10  ;;  %10644 = vpow2.f32 %v3841_v31  ;;  %3910 = vadd.xlane.f32.xlu0 %v3909_v12 }
 0x34b   :  { %v11796_v33 = vpop.eup %10634  ;;  %v3843_v32 = vmul.f32 1.442695, %v3788_v57 }
 0x34c   :  { %v3845_v19 = vmul.f32 1.442695, %v3789_v58  ;;  %v11798_v14 = vpop.eup %10636  ;;  %v3746_v0 = vpop.xlane.xlu1 %3745  ;;  %v3912_v6 = vsel %vm3668_vm3, %v11796_v33, 0.0 }
 0x34d   :  { %v3749_v37 = vpop.xlane.xlu0 %3748  ;;  %10646 = vpow2.f32 %v3843_v32  ;;  %v3790_v63 = vsub.f32 %v11675_v54, %v3746_v0  ;;  %3913 = vadd.xlane.f32.xlu1 %v3912_v6  ;;  %v3915_v22 = vsel %vm3668_vm3, %v11798_v14, 0.0 }
 0x34e   :  { %v3791_v3 = vsub.f32 %v11669_v7, %v3749_v37  ;;  %10648 = vpow2.f32 %v3845_v19  ;;  %3916 = vadd.xlane.f32.xlu0 %v3915_v22 }
 0x34f   :  { %v11806_v50 = vpop.eup %10638  ;;  %v3847_v16 = vmul.f32 1.442695, %v3790_v63 }
 0x350   :  { %v3849_v27 = vmul.f32 1.442695, %v3791_v3  ;;  %v11808_v20 = vpop.eup %10640  ;;  %v3752_v29 = vpop.xlane.xlu1 %3751  ;;  %v3918_v24 = vsel %vm3668_vm3, %v11806_v50, 0.0 }
 0x351   :  { %v3755_v31 = vpop.xlane.xlu0 %3754  ;;  %10650 = vpow2.f32 %v3847_v16  ;;  %v3792_v54 = vsub.f32 %v11684_v1, %v3752_v29  ;;  %3919 = vadd.xlane.f32.xlu1 %v3918_v24  ;;  %v3921_v10 = vsel %vm3668_vm3, %v11808_v20, 0.0 }
 0x352   :  { %v3793_v7 = vsub.f32 %v11678_v11, %v3755_v31  ;;  %10652 = vpow2.f32 %v3849_v27  ;;  %3922 = vadd.xlane.f32.xlu0 %v3921_v10 }
 0x353   :  { %v11816_v26 = vpop.eup %10642  ;;  %v3851_v57 = vmul.f32 1.442695, %v3792_v54 }
 0x354   :  { %v3853_v58 = vmul.f32 1.442695, %v3793_v7  ;;  %v11818_v12 = vpop.eup %10644  ;;  %v3758_v32 = vpop.xlane.xlu1 %3757  ;;  %v3924_v0 = vsel %vm3668_vm3, %v11816_v26, 0.0 }
 0x355   :  { %v3761_v19 = vpop.xlane.xlu0 %3760  ;;  %10654 = vpow2.f32 %v3851_v57  ;;  %v3794_v1 = vsub.f32 %v11693_v56, %v3758_v32  ;;  %3925 = vadd.xlane.f32.xlu1 %v3924_v0  ;;  %v3927_v37 = vsel %vm3668_vm3, %v11818_v12, 0.0 }
 0x356   :  { %v3795_v11 = vsub.f32 %v11687_v13, %v3761_v19  ;;  %10656 = vpow2.f32 %v3853_v58  ;;  %3928 = vadd.xlane.f32.xlu0 %v3927_v37 }
 0x357   :  { %v11826_v6 = vpop.eup %10646  ;;  %v3855_v63 = vmul.f32 1.442695, %v3794_v1 }
 0x358   :  { %v3857_v3 = vmul.f32 1.442695, %v3795_v11  ;;  %v11828_v22 = vpop.eup %10648  ;;  %v3764_v16 = vpop.xlane.xlu1 %3763  ;;  %v3930_v27 = vsel %vm3668_vm3, %v11826_v6, 0.0 }
 0x359   :  { %10658 = vpow2.f32 %v3855_v63  ;;  %v3796_v56 = vsub.f32 %v11699_v23, %v3764_v16  ;;  %3931 = vadd.xlane.f32.xlu1 %v3930_v27  ;;  %v3933_v13 = vsel %vm3668_vm3, %v11828_v22, 0.0 }
 0x35a   :  { %10660 = vpow2.f32 %v3857_v3  ;;  %3934 = vadd.xlane.f32.xlu0 %v3933_v13 }
 0x35b   :  { %v11835_v29 = vpop.eup %10650  ;;  %v3859_v31 = vmul.f32 1.442695, %v3796_v56 }
 0x35c   :  { %v11837_v24 = vpop.eup %10652  ;;  %v3936_v54 = vsel %vm3668_vm3, %v11835_v29, 0.0 }
 0x35d   :  { %10662 = vpow2.f32 %v3859_v31  ;;  %3937 = vadd.xlane.f32.xlu1 %v3936_v54  ;;  %v3939_v7 = vsel %vm3668_vm3, %v11837_v24, 0.0  ;;  %v12332_v54 = vmov 0.0  }
 0x35e   :  { %3940 = vadd.xlane.f32.xlu0 %v3939_v7 }
 0x35f   :  { %v11843_v23 = vpop.eup %10654 }
 0x360   :  { %v11845_v10 = vpop.eup %10656  ;;  %v3942_v57 = vsel %vm3668_vm3, %v11843_v23, 0.0 }
 0x361   :  { %3943 = vadd.xlane.f32.xlu1 %v3942_v57  ;;  %v3945_v58 = vsel %vm3668_vm3, %v11845_v10, 0.0 }
 0x362   :  { %3946 = vadd.xlane.f32.xlu0 %v3945_v58 }
 0x363   :  { %v11851_v32 = vpop.eup %10658 }
 0x364   :  { %v11853_v19 = vpop.eup %10660  ;;  %v3948_v0 = vsel %vm3668_vm3, %v11851_v32, 0.0 }
 0x365   :  { %3949 = vadd.xlane.f32.xlu1 %v3948_v0  ;;  %v3951_v1 = vsel %vm3668_vm3, %v11853_v19, 0.0 }
 0x366   :  { %3952 = vadd.xlane.f32.xlu0 %v3951_v1 }
 0x367   :  { %v11859_v11 = vpop.eup %10662 }
 0x368   :  { %v3954_v37 = vsel %vm3668_vm3, %v11859_v11, 0.0 }
 0x369   :  { %3955 = vadd.xlane.f32.xlu1 %v3954_v37 }
 0x39a   :  { %v3863_v63 = vpop.xlane.xlu0 %3862 }
 0x39b   :  { %10664 = vrcp.f32 %v3863_v63 }
 0x39e   :  { %v3866_v3 = vpop.xlane.xlu1 %3865 }
 0x39f   :  { %10666 = vrcp.f32 %v3866_v3 }
 0x3a2   :  { %v3869_v16 = vpop.xlane.xlu0 %3868 }
 0x3a3   :  { %10668 = vrcp.f32 %v3869_v16 }
 0x3a5   :  { %v10665_v27 = vpop.eup %10664 }
 0x3a6   :  { %v3989_v56 = vmul.f32 %v10665_v27, %v11707_v46  ;;  %v3872_v13 = vpop.xlane.xlu1 %3871 }
 0x3a7   :  { %10670 = vrcp.f32 %v3872_v13 }
 0x3a8   :  { %10175 = vmatmul.mubr.msk.f32.vlgmr.msra.gmra.mrb[86].mxu0 %vm3668_vm3, %v3989_v56 }
 0x3a9   :  { %v10667_v31 = vpop.eup %10666  ;;  %10183 = vmatpush3.msra.mxu0 %v11351_v4  ;;  %10184 = vmatprep.mubr.msk.f32.mxu0 %vm10942_vm2, %v12332_v54 }
 0x3aa   :  { %v3990_v7 = vmul.f32 %v10667_v31, %v11712_v61  ;;  %v3875_v57 = vpop.xlane.xlu0 %3874  ;;  %10192 = vmatprep.subr.mxu0 %v12332_v54 }
 0x3ab   :  { %10672 = vrcp.f32 %v3875_v57 }
 0x3ac   :  { %10180 = vmatmul.mubr.msk.f32.vlgmr.msra.gmra.mrb[74].mxu1 %vm3668_vm3, %v3990_v7 }
 0x3ad   :  { %v10669_v58 = vpop.eup %10668  ;;  %10188 = vmatpush3.msra.mxu1 %v11346_v36  ;;  %10189 = vmatprep.mubr.msk.f32.mxu1 %vm10942_vm2, %v12332_v54 }
 0x3ae   :  { %v3991_v46 = vmul.f32 %v10669_v58, %v11717_v35  ;;  %v3878_v4 = vpop.xlane.xlu1 %3877  ;;  %10197 = vmatprep.subr.mxu1 %v12332_v54 }
 0x3af   :  { %10674 = vrcp.f32 %v3878_v4 }
 0x3b0   :  { %10185 = vmatmul.mubr.msk.f32.vlgmr.msra.gmra.mrb[88].mxu0 %vm3668_vm3, %v3991_v46 }
 0x3b1   :  { %v10671_v61 = vpop.eup %10670  ;;  %10193 = vmatpush3.msra.mxu0 %v11361_v5  ;;  %10194 = vmatprep.mubr.msk.f32.mxu0 %vm10942_vm2, %v12332_v54 }
 0x3b2   :  { %v3992_v0 = vmul.f32 %v10671_v61, %v11722_v2  ;;  %v3881_v36 = vpop.xlane.xlu0 %3880  ;;  %10202 = vmatprep.subr.mxu0 %v12332_v54 }
 0x3b3   :  { %10676 = vrcp.f32 %v3881_v36 }
 0x3b4   :  { %10190 = vmatmul.mubr.msk.f32.vlgmr.msra.gmra.mrb[76].mxu1 %vm3668_vm3, %v3992_v0 }
 0x3b5   :  { %v10673_v35 = vpop.eup %10672  ;;  %10198 = vmatpush3.msra.mxu1 %v11357_v41  ;;  %10199 = vmatprep.mubr.msk.f32.mxu1 %vm10942_vm2, %v12332_v54 }
 0x3b6   :  { %v3993_v1 = vmul.f32 %v10673_v35, %v11727_v59  ;;  %v3884_v5 = vpop.xlane.xlu1 %3883  ;;  %10207 = vmatprep.subr.mxu1 %v12332_v54 }
 0x3b7   :  { %10678 = vrcp.f32 %v3884_v5 }
 0x3b8   :  { %10195 = vmatmul.mubr.msk.f32.vlgmr.msra.gmra.mrb[90].mxu0 %vm3668_vm3, %v3993_v1 }
 0x3b9   :  { %v10675_v2 = vpop.eup %10674  ;;  %10203 = vmatpush3.msra.mxu0 %v11371_v8  ;;  %10204 = vmatprep.mubr.msk.f32.mxu0 %vm10942_vm2, %v12332_v54 }
 0x3ba   :  { %v3994_v37 = vmul.f32 %v10675_v2, %v11732_v52  ;;  %v3887_v41 = vpop.xlane.xlu0 %3886  ;;  %10212 = vmatprep.subr.mxu0 %v12332_v54 }
 0x3bb   :  { %10680 = vrcp.f32 %v3887_v41 }
 0x3bc   :  { %10200 = vmatmul.mubr.msk.f32.vlgmr.msra.gmra.mrb[78].mxu1 %vm3668_vm3, %v3994_v37 }
 0x3bd   :  { %v10677_v59 = vpop.eup %10676  ;;  %10208 = vmatpush3.msra.mxu1 %v11367_v39  ;;  %10209 = vmatprep.mubr.msk.f32.mxu1 %vm10942_vm2, %v12332_v54 }
 0x3be   :  { %v3995_v63 = vmul.f32 %v10677_v59, %v11737_v17  ;;  %v3890_v8 = vpop.xlane.xlu1 %3889  ;;  %10217 = vmatprep.subr.mxu1 %v12332_v54 }
 0x3bf   :  { %10682 = vrcp.f32 %v3890_v8 }
 0x3c0   :  { %10205 = vmatmul.mubr.msk.f32.vlgmr.msra.gmra.mrb[92].mxu0 %vm3668_vm3, %v3995_v63  ;;  %v12335_v63 = vld [vmem:[#allocation23_spill] sm:$0xff] }
 0x3c1   :  { %v10679_v52 = vpop.eup %10678  ;;  %10213 = vmatpush3.msra.mxu0 %v11382_v9  ;;  %10214 = vmatprep.mubr.msk.f32.mxu0 %vm10942_vm2, %v12332_v54 }
 0x3c2   :  { %v3996_v3 = vmul.f32 %v10679_v52, %v11742_v15  ;;  %v3893_v39 = vpop.xlane.xlu0 %3892  ;;  %10222 = vmatprep.subr.mxu0 %v12332_v54 }
 0x3c3   :  { %10684 = vrcp.f32 %v3893_v39  ;;  %v12336_v39 = vld [vmem:[#allocation22_spill] sm:$0xff] }
 0x3c4   :  { %10210 = vmatmul.mubr.msk.f32.vlgmr.msra.gmra.mrb[80].mxu1 %vm3668_vm3, %v3996_v3 }
 0x3c5   :  { %v10681_v17 = vpop.eup %10680  ;;  %10218 = vmatpush3.msra.mxu1 %v11378_v45  ;;  %10219 = vmatprep.mubr.msk.f32.mxu1 %vm10942_vm2, %v12332_v54 }
 0x3c6   :  { %v3997_v16 = vmul.f32 %v10681_v17, %v11747_v30  ;;  %v3896_v9 = vpop.xlane.xlu1 %3895  ;;  %10227 = vmatprep.subr.mxu1 %v12332_v54 }
 0x3c7   :  { %10686 = vrcp.f32 %v3896_v9 }
 0x3c8   :  { %10215 = vmatmul.mubr.msk.f32.vlgmr.msra.gmra.mrb[94].mxu0 %vm3668_vm3, %v3997_v16  ;;  %v12337_v16 = vld [vmem:[#allocation25_spill] sm:$0xff] }
 0x3c9   :  { %v10683_v15 = vpop.eup %10682  ;;  %10223 = vmatpush3.msra.mxu0 %v11393_v43  ;;  %10224 = vmatprep.mubr.msk.f32.mxu0 %vm10942_vm2, %v12332_v54 }
 0x3ca   :  { %v3998_v27 = vmul.f32 %v10683_v15, %v11752_v55  ;;  %v3899_v45 = vpop.xlane.xlu0 %3898  ;;  %10232 = vmatprep.subr.mxu0 %v12332_v54 }
 0x3cb   :  { %10688 = vrcp.f32 %v3899_v45  ;;  %v12338_v45 = vld [vmem:[#allocation24_spill] sm:$0xff] }
 0x3cc   :  { %10220 = vmatmul.mubr.msk.f32.vlgmr.msra.gmra.mrb[82].mxu1 %vm3668_vm3, %v3998_v27 }
 0x3cd   :  { %v10685_v30 = vpop.eup %10684  ;;  %10228 = vmatpush3.msra.mxu1 %v11389_v40  ;;  %10229 = vmatprep.mubr.msk.f32.mxu1 %vm10942_vm2, %v12332_v54 }
 0x3ce   :  { %v3999_v56 = vmul.f32 %v10685_v30, %v11757_v60  ;;  %v3902_v43 = vpop.xlane.xlu1 %3901  ;;  %10237 = vmatprep.subr.mxu1 %v12332_v54 }
 0x3cf   :  { %10690 = vrcp.f32 %v3902_v43 }
 0x3d0   :  { %10225 = vmatmul.mubr.msk.f32.vlgmr.msra.gmra.mrb[96].mxu0 %vm3668_vm3, %v3999_v56  ;;  %v12339_v56 = vld [vmem:[#allocation27_spill] sm:$0xff] }
 0x3d1   :  { %v10687_v55 = vpop.eup %10686  ;;  %10233 = vmatpush3.msra.mxu0 %v11404_v49  ;;  %10234 = vmatprep.mubr.msk.f32.mxu0 %vm10942_vm2, %v12332_v54 }
 0x3d2   :  { %v4000_v13 = vmul.f32 %v10687_v55, %v11762_v62  ;;  %v3905_v40 = vpop.xlane.xlu0 %3904  ;;  %10242 = vmatprep.subr.mxu0 %v12332_v54 }
 0x3d3   :  { %10692 = vrcp.f32 %v3905_v40 }
 0x3d4   :  { %10230 = vmatmul.mubr.msk.f32.vlgmr.msra.gmra.mrb[84].mxu1 %vm3668_vm3, %v4000_v13 }
 0x3d5   :  { %v10689_v60 = vpop.eup %10688  ;;  %10238 = vmatpush3.msra.mxu1 %v11400_v38  ;;  %10239 = vmatprep.mubr.msk.f32.mxu1 %vm10942_vm2, %v12332_v54 }
 0x3d6   :  { %v4001_v31 = vmul.f32 %v10689_v60, %v11768_v21  ;;  %v3908_v49 = vpop.xlane.xlu1 %3907  ;;  %10247 = vmatprep.subr.mxu1 %v12332_v54 }
 0x3d7   :  { %10694 = vrcp.f32 %v3908_v49  ;;  %v3911_v7 = vpop.xlane.xlu0 %3910 }
 0x3d8   :  { %10696 = vrcp.f32 %v3911_v7  ;;  %10235 = vmatmul.mubr.msk.f32.vlgmr.msra.gmra.mrb[98].mxu0 %vm3668_vm3, %v4001_v31  ;;  %v12341_v31 = vld [vmem:[#allocation29_spill] sm:$0xff] }
 0x3d9   :  { %v10691_v62 = vpop.eup %10690  ;;  %10243 = vmatpush3.msra.mxu0 %v11415_v47  ;;  %10244 = vmatprep.mubr.msk.f32.mxu0 %vm10942_vm2, %v12332_v54 }
 0x3da   :  { %v4002_v38 = vmul.f32 %v10691_v62, %v11774_v34  ;;  %v3914_v57 = vpop.xlane.xlu1 %3913  ;;  %10252 = vmatprep.subr.mxu0 %v12332_v54 }
 0x3db   :  { %10698 = vrcp.f32 %v3914_v57  ;;  %v3917_v21 = vpop.xlane.xlu0 %3916  ;;  %v6357_v57 = vld [vmem:[#allocation8] sm:$0xf] }
 0x3dc   :  { %10700 = vrcp.f32 %v3917_v21  ;;  %10240 = vmatmul.mubr.msk.f32.vlgmr.msra.gmra.mrb[86].mxu1 %vm3668_vm3, %v4002_v38  ;;  %v12343_v38 = vld [vmem:[#allocation31_spill] sm:$0xff] }
 0x3dd   :  { %v10693_v58 = vpop.eup %10692  ;;  %10248 = vmatpush3.msra.mxu1 %v11411_v44  ;;  %10249 = vmatprep.mubr.msk.f32.mxu1 %vm10942_vm2, %v12332_v54 }
 0x3de   :  { %v4003_v47 = vmul.f32 %v10693_v58, %v11780_v18  ;;  %v3920_v46 = vpop.xlane.xlu1 %3919  ;;  %10257 = vmatprep.subr.mxu1 %v12332_v54 }
 0x3df   :  { %10702 = vrcp.f32 %v3920_v46  ;;  %v3923_v34 = vpop.xlane.xlu0 %3922 }
 0x3e0   :  { %10704 = vrcp.f32 %v3923_v34  ;;  %10245 = vmatmul.mubr.msk.f32.vlgmr.msra.gmra.mrb[100].mxu0 %vm3668_vm3, %v4003_v47  ;;  %v6360_v34 = vld [vmem:[#allocation8 + $0xc] sm:$0xf] }
 0x3e1   :  { %v10695_v4 = vpop.eup %10694  ;;  %10253 = vmatpush3.msra.mxu0 %v11426_v53  ;;  %10254 = vmatprep.mubr.msk.f32.mxu0 %vm10942_vm2, %v12332_v54 }
 0x3e2   :  { %v10697_v44 = vpop.eup %10696  ;;  %v4004_v61 = vmul.f32 %v10695_v4, %v11786_v25  ;;  %v3926_v0 = vpop.xlane.xlu1 %3925  ;;  %10262 = vmatprep.subr.mxu0 %v12332_v54 }
 0x3e3   :  { %v4005_v18 = vmul.f32 %v10697_v44, %v11788_v28  ;;  %10706 = vrcp.f32 %v3926_v0  ;;  %v3929_v36 = vpop.xlane.xlu0 %3928 }
 0x3e4   :  { %10708 = vrcp.f32 %v3929_v36  ;;  %10250 = vmatmul.mubr.msk.f32.vlgmr.msra.gmra.mrb[88].mxu1 %vm3668_vm3, %v4004_v61  ;;  %v6361_v61 = vld [vmem:[#allocation8 + $0x10] sm:$0xf]  ;;  %v6362_v36 = vld [vmem:[#allocation8 + $0x14] sm:$0xf] }
 0x3e5   :  { %v10699_v35 = vpop.eup %10698  ;;  %10255 = vmatmul.mubr.msk.f32.vlgmr.msra.gmra.mrb[102].mxu0 %vm3668_vm3, %v4005_v18  ;;  %10258 = vmatpush3.msra.mxu1 %v11422_v42 }
 0x3e6   :  { %v10701_v53 = vpop.eup %10700  ;;  %v4006_v1 = vmul.f32 %v10699_v35, %v11796_v33  ;;  %10263 = vmatpush3.msra.mxu0 %v11437_v51  ;;  %v3932_v25 = vpop.xlane.xlu1 %3931  ;;  %10259 = vmatprep.mubr.msk.f32.mxu1 %vm10942_vm2, %v12332_v54 }
 0x3e7   :  { %v4007_v28 = vmul.f32 %v10701_v53, %v11798_v14  ;;  %10710 = vrcp.f32 %v3932_v25  ;;  %v3935_v5 = vpop.xlane.xlu0 %3934  ;;  %10264 = vmatprep.mubr.msk.f32.mxu0 %vm10942_vm2, %v12332_v54  ;;  %10267 = vmatprep.subr.mxu1 %v12332_v54  ;;  %v12333_v14 = vld [vmem:[#allocation21_spill] sm:$0xff] }
 0x3e8   :  { %10712 = vrcp.f32 %v3935_v5  ;;  %10272 = vmatprep.subr.mxu0 %v12332_v54  ;;  %10260 = vmatmul.mubr.msk.f32.vlgmr.msra.gmra.mrb[90].mxu1 %vm3668_vm3, %v4006_v1  ;;  %v6363_v1 = vld [vmem:[#allocation8 + $0x18] sm:$0xf]  ;;  %v6364_v5 = vld [vmem:[#allocation8 + $0x1c] sm:$0xf] }
 0x3e9   :  { %v10703_v42 = vpop.eup %10702  ;;  %10265 = vmatmul.mubr.msk.f32.vlgmr.msra.gmra.mrb[104].mxu0 %vm3668_vm3, %v4007_v28  ;;  %10268 = vmatpush3.msra.mxu1 %v11433_v48 }
 0x3ea   :  { %v10705_v51 = vpop.eup %10704  ;;  %v4008_v33 = vmul.f32 %v10703_v42, %v11806_v50  ;;  %10273 = vmatpush3.msra.mxu0 %v12333_v14  ;;  %v3938_v2 = vpop.xlane.xlu1 %3937  ;;  %10269 = vmatprep.mubr.msk.f32.mxu1 %vm10942_vm2, %v12332_v54  ;;  %v12334_v50 = vld [vmem:[#allocation20_spill] sm:$0xff] }
 0x3eb   :  { %v4009_v37 = vmul.f32 %v10705_v51, %v11808_v20  ;;  %10714 = vrcp.f32 %v3938_v2  ;;  %v3941_v41 = vpop.xlane.xlu0 %3940  ;;  %10274 = vmatprep.mubr.msk.f32.mxu0 %vm10942_vm2, %v12332_v54  ;;  %10277 = vmatprep.subr.mxu1 %v12332_v54 }
 0x3ec   :  { %10716 = vrcp.f32 %v3941_v41  ;;  %10282 = vmatprep.subr.mxu0 %v12332_v54  ;;  %10270 = vmatmul.mubr.msk.f32.vlgmr.msra.gmra.mrb[92].mxu1 %vm3668_vm3, %v4008_v33  ;;  %v6365_v33 = vld [vmem:[#allocation8 + $0x20] sm:$0xf] }
 0x3ed   :  { %v10707_v48 = vpop.eup %10706  ;;  %10275 = vmatmul.mubr.msk.f32.vlgmr.msra.gmra.mrb[106].mxu0 %vm3668_vm3, %v4009_v37  ;;  %10278 = vmatpush3.msra.mxu1 %v12334_v50  ;;  %v6366_v37 = vld [vmem:[#allocation8 + $0x24] sm:$0xf]  ;;  %v6367_v50 = vld [vmem:[#allocation8 + $0x28] sm:$0xf] }
 0x3ee   :  { %v10709_v59 = vpop.eup %10708  ;;  %v4010_v20 = vmul.f32 %v10707_v48, %v11816_v26  ;;  %10283 = vmatpush3.msra.mxu0 %v12335_v63  ;;  %v3944_v8 = vpop.xlane.xlu1 %3943  ;;  %10279 = vmatprep.mubr.msk.f32.mxu1 %vm10942_vm2, %v12332_v54  ;;  %v6368_v63 = vld [vmem:[#allocation8 + $0x2c] sm:$0xf] }
 0x3ef   :  { %v4011_v52 = vmul.f32 %v10709_v59, %v11818_v12  ;;  %10718 = vrcp.f32 %v3944_v8  ;;  %v3947_v3 = vpop.xlane.xlu0 %3946  ;;  %10284 = vmatprep.mubr.msk.f32.mxu0 %vm10942_vm2, %v12332_v54  ;;  %10287 = vmatprep.subr.mxu1 %v12332_v54 }
 0x3f0   :  { %10720 = vrcp.f32 %v3947_v3  ;;  %10292 = vmatprep.subr.mxu0 %v12332_v54  ;;  %10280 = vmatmul.mubr.msk.f32.vlgmr.msra.gmra.mrb[94].mxu1 %vm3668_vm3, %v4010_v20  ;;  %v6369_v3 = vld [vmem:[#allocation8 + $0x30] sm:$0xf] }
 0x3f1   :  { %v10711_v26 = vpop.eup %10710  ;;  %10285 = vmatmul.mubr.msk.f32.vlgmr.msra.gmra.mrb[108].mxu0 %vm3668_vm3, %v4011_v52  ;;  %10288 = vmatpush3.msra.mxu1 %v12336_v39 }
 0x3f2   :  { %v10713_v17 = vpop.eup %10712  ;;  %v4012_v12 = vmul.f32 %v10711_v26, %v11826_v6  ;;  %10293 = vmatpush3.msra.mxu0 %v12337_v16  ;;  %v3950_v9 = vpop.xlane.xlu1 %3949  ;;  %10289 = vmatprep.mubr.msk.f32.mxu1 %vm10942_vm2, %v12332_v54 }
 0x3f3   :  { %v4013_v15 = vmul.f32 %v10713_v17, %v11828_v22  ;;  %10722 = vrcp.f32 %v3950_v9  ;;  %v3953_v27 = vpop.xlane.xlu0 %3952  ;;  %10294 = vmatprep.mubr.msk.f32.mxu0 %vm10942_vm2, %v12332_v54  ;;  %10297 = vmatprep.subr.mxu1 %v12332_v54  ;;  %v6370_v17 = vld [vmem:[#allocation8 + $0x34] sm:$0xf]  ;;  %v6371_v9 = vld [vmem:[#allocation8 + $0x38] sm:$0xf] }
 0x3f4   :  { %10724 = vrcp.f32 %v3953_v27  ;;  %10302 = vmatprep.subr.mxu0 %v12332_v54  ;;  %10290 = vmatmul.mubr.msk.f32.vlgmr.msra.gmra.mrb[96].mxu1 %vm3668_vm3, %v4012_v12 }
 0x3f5   :  { %v10715_v6 = vpop.eup %10714  ;;  %10295 = vmatmul.mubr.msk.f32.vlgmr.msra.gmra.mrb[110].mxu0 %vm3668_vm3, %v4013_v15  ;;  %10298 = vmatpush3.msra.mxu1 %v12338_v45 }
 0x3f6   :  { %v10717_v30 = vpop.eup %10716  ;;  %v4014_v22 = vmul.f32 %v10715_v6, %v11835_v29  ;;  %10303 = vmatpush3.msra.mxu0 %v12339_v56  ;;  %v3956_v43 = vpop.xlane.xlu1 %3955  ;;  %10299 = vmatprep.mubr.msk.f32.mxu1 %vm10942_vm2, %v12332_v54  ;;  %v12340_v29 = vld [vmem:[#allocation26_spill] sm:$0xff] }
 0x3f7   :  { %v4015_v55 = vmul.f32 %v10717_v30, %v11837_v24  ;;  %10726 = vrcp.f32 %v3956_v43  ;;  %10304 = vmatprep.mubr.msk.f32.mxu0 %vm10942_vm2, %v12332_v54  ;;  %10307 = vmatprep.subr.mxu1 %v12332_v54  ;;  %v6372_v6 = vld [vmem:[#allocation8 + $0x3c] sm:$0xf] }
 0x3f8   :  { %10312 = vmatprep.subr.mxu0 %v12332_v54  ;;  %10300 = vmatmul.mubr.msk.f32.vlgmr.msra.gmra.mrb[98].mxu1 %vm3668_vm3, %v4014_v22  ;;  %v6373_v22 = vld [vmem:[#allocation8 + $0x40] sm:$0xf] }
 0x3f9   :  { %v10719_v13 = vpop.eup %10718  ;;  %10305 = vmatmul.mubr.msk.f32.vlgmr.msra.gmra.mrb[112].mxu0 %vm3668_vm3, %v4015_v55  ;;  %10308 = vmatpush3.msra.mxu1 %v12340_v29  ;;  %v6374_v55 = vld [vmem:[#allocation8 + $0x44] sm:$0xf]  ;;  %v6375_v29 = vld [vmem:[#allocation8 + $0x48] sm:$0xf] }
 0x3fa   :  { %v10721_v40 = vpop.eup %10720  ;;  %v4016_v60 = vmul.f32 %v10719_v13, %v11843_v23  ;;  %10313 = vmatpush3.msra.mxu0 %v12341_v31  ;;  %10309 = vmatprep.mubr.msk.f32.mxu1 %vm10942_vm2, %v12332_v54  ;;  %v12342_v23 = vld [vmem:[#allocation28_spill] sm:$0xff] }
 0x3fb   :  { %v4017_v24 = vmul.f32 %v10721_v40, %v11845_v10  ;;  %10314 = vmatprep.mubr.msk.f32.mxu0 %vm10942_vm2, %v12332_v54  ;;  %10317 = vmatprep.subr.mxu1 %v12332_v54 }
 0x3fc   :  { %10322 = vmatprep.subr.mxu0 %v12332_v54  ;;  %10310 = vmatmul.mubr.msk.f32.vlgmr.msra.gmra.mrb[100].mxu1 %vm3668_vm3, %v4016_v60 }
 0x3fd   :  { %v10723_v49 = vpop.eup %10722  ;;  %10315 = vmatmul.mubr.msk.f32.vlgmr.msra.gmra.mrb[114].mxu0 %vm3668_vm3, %v4017_v24  ;;  %10318 = vmatpush3.msra.mxu1 %v12342_v23  ;;  %v6376_v24 = vld [vmem:[#allocation8 + $0x4c] sm:$0xf]  ;;  %v6377_v23 = vld [vmem:[#allocation8 + $0x50] sm:$0xf] }
 0x3fe   :  { %v10725_v7 = vpop.eup %10724  ;;  %v4018_v62 = vmul.f32 %v10723_v49, %v11851_v32  ;;  %10323 = vmatpush3.msra.mxu0 %v12343_v38  ;;  %10319 = vmatprep.mubr.msk.f32.mxu1 %vm10942_vm2, %v12332_v54  ;;  %v12344_v32 = vld [vmem:[#allocation30_spill] sm:$0xff] }
 0x3ff   :  { %v4019_v10 = vmul.f32 %v10725_v7, %v11853_v19  ;;  %10324 = vmatprep.mubr.msk.f32.mxu0 %vm10942_vm2, %v12332_v54  ;;  %10327 = vmatprep.subr.mxu1 %v12332_v54  ;;  %v6358_v19 = vld [vmem:[#allocation8 + $0x4] sm:$0xf] }
 0x400   :  { %10320 = vmatmul.mubr.msk.f32.vlgmr.msra.gmra.mrb[102].mxu1 %vm3668_vm3, %v4018_v62  ;;  %10332 = vmatprep.subr.mxu0 %v12332_v54 }
 0x401   :  { %v10727_v21 = vpop.eup %10726  ;;  %10325 = vmatmul.mubr.msk.f32.vlgmr.msra.gmra.mrb[116].mxu0 %vm3668_vm3, %v4019_v10  ;;  %10328 = vmatpush3.msra.mxu1 %v12344_v32  ;;  %v6378_v10 = vld [vmem:[#allocation8 + $0x54] sm:$0xf] }
 0x402   :  { %v4020_v58 = vmul.f32 %v10727_v21, %v11859_v11  ;;  %10329 = vmatprep.mubr.msk.f32.mxu1 %vm10942_vm2, %v12332_v54  ;;  %10333 = vmatpush3.msk.msra.mxu0 %vm327_vm0, %v6357_v57  ;;  %v6359_v11 = vld [vmem:[#allocation8 + $0x8] sm:$0xf]  ;;  %v6379_v21 = vld [vmem:[#allocation8 + $0x58] sm:$0xf] }
 0x403   :  { %10334 = vmatprep.mubr.msk.f32.mxu0 %vm10942_vm2, %v12332_v54  ;;  %10337 = vmatprep.subr.mxu1 %v12332_v54 }
 0x404   :  { %10330 = vmatmul.mubr.msk.f32.vlgmr.msra.gmra.mrb[104].mxu1 %vm3668_vm3, %v4020_v58  ;;  %10342 = vmatprep.subr.mxu0 %v12332_v54 }
 0x405   :  { %10338 = vmatpush3.msk.msra.mxu1 %vm327_vm0, %v6358_v19  ;;  %10339 = vmatprep.mubr.msk.f32.mxu1 %vm10942_vm2, %v12332_v54 }
 0x406   :  { %10347 = vmatprep.subr.mxu1 %v12332_v54 }
 0x47b   :  { %v4090_v47 = vpop.f32.mrb[86].mxu0 }
 0x47c   :  { %v10176_v46 = vpop.f32.mrb[87].mxu0  ;;  %10335 = vmatmul.mubr.msk.f32.vlgmr.msra.gmra.mrb[118].mxu0 %vm230_vm1, %v4090_v47 }
 0x47d   :  { %10343 = vmatpush3.msk.msra.mxu0 %vm327_vm0, %v6359_v11  ;;  %10344 = vmatprep.mubr.msk.f32.mxu0 %vm10942_vm2, %v12332_v54  ;;  %v6380_v11 = vld [vmem:[#allocation8 + $0x5c] sm:$0xf]  ;;  %v6381_v46 = vld [vmem:[#allocation8 + $0x60] sm:$0xf] }
 0x47e   :  { %10352 = vmatprep.subr.mxu0 %v12332_v54 }
 0x47f   :  { %v4163_v4 = vpop.f32.mrb[74].mxu1 }
 0x480   :  { %v10181_v44 = vpop.f32.mrb[75].mxu1  ;;  %10340 = vmatmul.mubr.msk.f32.vlgmr.msra.gmra.mrb[106].mxu1 %vm230_vm1, %v4163_v4 }
 0x481   :  { %10348 = vmatpush3.msk.msra.mxu1 %vm327_vm0, %v6360_v34  ;;  %10349 = vmatprep.mubr.msk.f32.mxu1 %vm10942_vm2, %v12332_v54 }
 0x482   :  { %10357 = vmatprep.subr.mxu1 %v12332_v54 }
 0x483   :  { %v4236_v0 = vpop.f32.mrb[88].mxu0 }
 0x484   :  { %v10186_v18 = vpop.f32.mrb[89].mxu0  ;;  %10345 = vmatmul.mubr.msk.f32.vlgmr.msra.gmra.mrb[120].mxu0 %vm230_vm1, %v4236_v0 }
 0x485   :  { %10353 = vmatpush3.msk.msra.mxu0 %vm327_vm0, %v6361_v61  ;;  %10354 = vmatprep.mubr.msk.f32.mxu0 %vm10942_vm2, %v12332_v54  ;;  %v6382_v61 = vld [vmem:[#allocation8 + $0x64] sm:$0xf]  ;;  %v6383_v18 = vld [vmem:[#allocation8 + $0x68] sm:$0xf] }
 0x486   :  { %10362 = vmatprep.subr.mxu0 %v12332_v54 }
 0x487   :  { %v4309_v35 = vpop.f32.mrb[76].mxu1 }
 0x488   :  { %v10191_v53 = vpop.f32.mrb[77].mxu1  ;;  %10350 = vmatmul.mubr.msk.f32.vlgmr.msra.gmra.mrb[108].mxu1 %vm230_vm1, %v4309_v35 }
 0x489   :  { %10358 = vmatpush3.msk.msra.mxu1 %vm327_vm0, %v6362_v36  ;;  %10359 = vmatprep.mubr.msk.f32.mxu1 %vm10942_vm2, %v12332_v54 }
 0x48a   :  { %10367 = vmatprep.subr.mxu1 %v12332_v54 }
 0x48b   :  { %v4382_v25 = vpop.f32.mrb[90].mxu0 }
 0x48c   :  { %v10196_v28 = vpop.f32.mrb[91].mxu0  ;;  %10355 = vmatmul.mubr.msk.f32.vlgmr.msra.gmra.mrb[122].mxu0 %vm230_vm1, %v4382_v25 }
 0x48d   :  { %10363 = vmatpush3.msk.msra.mxu0 %vm327_vm0, %v6363_v1  ;;  %10364 = vmatprep.mubr.msk.f32.mxu0 %vm10942_vm2, %v12332_v54  ;;  %v6384_v1 = vld [vmem:[#allocation8 + $0x6c] sm:$0xf]  ;;  %v6385_v28 = vld [vmem:[#allocation8 + $0x70] sm:$0xf] }
 0x48e   :  { %10372 = vmatprep.subr.mxu0 %v12332_v54 }
 0x48f   :  { %v4455_v42 = vpop.f32.mrb[78].mxu1 }
 0x490   :  { %v10201_v51 = vpop.f32.mrb[79].mxu1  ;;  %10360 = vmatmul.mubr.msk.f32.vlgmr.msra.gmra.mrb[110].mxu1 %vm230_vm1, %v4455_v42 }
 0x491   :  { %10368 = vmatpush3.msk.msra.mxu1 %vm327_vm0, %v6364_v5  ;;  %10369 = vmatprep.mubr.msk.f32.mxu1 %vm10942_vm2, %v12332_v54 }
 0x492   :  { %10377 = vmatprep.subr.mxu1 %v12332_v54 }
 0x493   :  { %v4528_v14 = vpop.f32.mrb[92].mxu0 }
 0x494   :  { %v10206_v2 = vpop.f32.mrb[93].mxu0  ;;  %10365 = vmatmul.mubr.msk.f32.vlgmr.msra.gmra.mrb[124].mxu0 %vm230_vm1, %v4528_v14 }
 0x495   :  { %10373 = vmatpush3.msk.msra.mxu0 %vm327_vm0, %v6365_v33  ;;  %10374 = vmatprep.mubr.msk.f32.mxu0 %vm10942_vm2, %v12332_v54  ;;  %v6386_v33 = vld [vmem:[#allocation8 + $0x74] sm:$0xf]  ;;  %v6387_v2 = vld [vmem:[#allocation8 + $0x78] sm:$0xf] }
 0x496   :  { %10382 = vmatprep.subr.mxu0 %v12332_v54 }
 0x497   :  { %v4601_v41 = vpop.f32.mrb[80].mxu1 }
 0x498   :  { %v10211_v48 = vpop.f32.mrb[81].mxu1  ;;  %10370 = vmatmul.mubr.msk.f32.vlgmr.msra.gmra.mrb[112].mxu1 %vm230_vm1, %v4601_v41 }
 0x499   :  { %10378 = vmatpush3.msk.msra.mxu1 %vm327_vm0, %v6366_v37  ;;  %10379 = vmatprep.mubr.msk.f32.mxu1 %vm10942_vm2, %v12332_v54 }
 0x49a   :  { %10387 = vmatprep.subr.mxu1 %v12332_v54 }
 0x49b   :  { %v4674_v59 = vpop.f32.mrb[94].mxu0 }
 0x49c   :  { %v10216_v20 = vpop.f32.mrb[95].mxu0  ;;  %10375 = vmatmul.mubr.msk.f32.vlgmr.msra.gmra.mrb[126].mxu0 %vm230_vm1, %v4674_v59 }
 0x49d   :  { %10383 = vmatpush3.msk.msra.mxu0 %vm327_vm0, %v6367_v50  ;;  %10384 = vmatprep.mubr.msk.f32.mxu0 %vm10942_vm2, %v12332_v54  ;;  %v6388_v50 = vld [vmem:[#allocation8 + $0x7c] sm:$0xf] }
 0x49e   :  { %10392 = vmatprep.subr.mxu0 %v12332_v54 }
 0x49f   :  { %v4747_v8 = vpop.f32.mrb[82].mxu1 }
 0x4a0   :  { %v10221_v52 = vpop.f32.mrb[83].mxu1  ;;  %10380 = vmatmul.mubr.msk.f32.vlgmr.msra.gmra.mrb[114].mxu1 %vm230_vm1, %v4747_v8 }
 0x4a1   :  { %10388 = vmatpush3.msk.msra.mxu1 %vm327_vm0, %v6368_v63  ;;  %10389 = vmatprep.mubr.msk.f32.mxu1 %vm10942_vm2, %v12332_v54 }
 0x4a2   :  { %10397 = vmatprep.subr.mxu1 %v12332_v54 }
 0x4a3   :  { %v4820_v26 = vpop.f32.mrb[96].mxu0 }
 0x4a4   :  { %v10226_v39 = vpop.f32.mrb[97].mxu0  ;;  %10385 = vmatmul.mubr.msk.f32.vlgmr.msra.gmra.mrb[128].mxu0 %vm230_vm1, %v4820_v26 }
 0x4a5   :  { %10393 = vmatpush3.msk.msra.mxu0 %vm327_vm0, %v6369_v3  ;;  %10394 = vmatprep.mubr.msk.f32.mxu0 %vm10942_vm2, %v12332_v54 }
 0x4a6   :  { %10402 = vmatprep.subr.mxu0 %v12332_v54 }
 0x4a7   :  { %v4893_v12 = vpop.f32.mrb[84].mxu1 }
 0x4a8   :  { %v10231_v16 = vpop.f32.mrb[85].mxu1  ;;  %10390 = vmatmul.mubr.msk.f32.vlgmr.msra.gmra.mrb[116].mxu1 %vm230_vm1, %v4893_v12 }
 0x4a9   :  { %10398 = vmatpush3.msk.msra.mxu1 %vm327_vm0, %v6370_v17  ;;  %10399 = vmatprep.mubr.msk.f32.mxu1 %vm10942_vm2, %v12332_v54 }
 0x4aa   :  { %10407 = vmatprep.subr.mxu1 %v12332_v54 }
 0x4ab   :  { %v4966_v15 = vpop.f32.mrb[98].mxu0 }
 0x4ac   :  { %v10236_v27 = vpop.f32.mrb[99].mxu0  ;;  %10395 = vmatmul.mubr.msk.f32.vlgmr.msra.gmra.mrb[130].mxu0 %vm230_vm1, %v4966_v15 }
 0x4ad   :  { %10403 = vmatpush3.msk.msra.mxu0 %vm327_vm0, %v6371_v9  ;;  %10404 = vmatprep.mubr.msk.f32.mxu0 %vm10942_vm2, %v12332_v54 }
 0x4ae   :  { %10412 = vmatprep.subr.mxu0 %v12332_v54 }
 0x4af   :  { %v5039_v45 = vpop.f32.mrb[86].mxu1 }
 0x4b0   :  { %v10241_v30 = vpop.f32.mrb[87].mxu1  ;;  %10400 = vmatmul.mubr.msk.f32.vlgmr.msra.gmra.mrb[118].mxu1 %vm230_vm1, %v5039_v45 }
 0x4b1   :  { %10408 = vmatpush3.msk.msra.mxu1 %vm327_vm0, %v6372_v6  ;;  %10409 = vmatprep.mubr.msk.f32.mxu1 %vm10942_vm2, %v12332_v54 }
 0x4b2   :  { %10417 = vmatprep.subr.mxu1 %v12332_v54 }
 0x4b3   :  { %v5112_v56 = vpop.f32.mrb[100].mxu0 }
 0x4b4   :  { %v10246_v43 = vpop.f32.mrb[101].mxu0  ;;  %10405 = vmatmul.mubr.msk.f32.vlgmr.msra.gmra.mrb[132].mxu0 %vm230_vm1, %v5112_v56 }
 0x4b5   :  { %10413 = vmatpush3.msk.msra.mxu0 %vm327_vm0, %v6373_v22  ;;  %10414 = vmatprep.mubr.msk.f32.mxu0 %vm10942_vm2, %v12332_v54 }
 0x4b6   :  { %10422 = vmatprep.subr.mxu0 %v12332_v54 }
 0x4b7   :  { %v5185_v13 = vpop.f32.mrb[88].mxu1 }
 0x4b8   :  { %v5258_v40 = vpop.f32.mrb[102].mxu0  ;;  %v10251_v60 = vpop.f32.mrb[89].mxu1  ;;  %10410 = vmatmul.mubr.msk.f32.vlgmr.msra.gmra.mrb[120].mxu1 %vm230_vm1, %v5185_v13 }
 0x4b9   :  { %v10256_v31 = vpop.f32.mrb[103].mxu0  ;;  %10415 = vmatmul.mubr.msk.f32.vlgmr.msra.gmra.mrb[134].mxu0 %vm230_vm1, %v5258_v40  ;;  %10418 = vmatpush3.msk.msra.mxu1 %vm327_vm0, %v6374_v55 }
 0x4ba   :  { %10419 = vmatprep.mubr.msk.f32.mxu1 %vm10942_vm2, %v12332_v54  ;;  %10423 = vmatpush3.msk.msra.mxu0 %vm327_vm0, %v6375_v29 }
 0x4bb   :  { %v5331_v49 = vpop.f32.mrb[90].mxu1  ;;  %10424 = vmatprep.mubr.msk.f32.mxu0 %vm10942_vm2, %v12332_v54  ;;  %10427 = vmatprep.subr.mxu1 %v12332_v54 }
 0x4bc   :  { %v5404_v7 = vpop.f32.mrb[104].mxu0  ;;  %v10261_v62 = vpop.f32.mrb[91].mxu1  ;;  %10420 = vmatmul.mubr.msk.f32.vlgmr.msra.gmra.mrb[122].mxu1 %vm230_vm1, %v5331_v49  ;;  %10432 = vmatprep.subr.mxu0 %v12332_v54 }
 0x4bd   :  { %v10266_v38 = vpop.f32.mrb[105].mxu0  ;;  %10425 = vmatmul.mubr.msk.f32.vlgmr.msra.gmra.mrb[136].mxu0 %vm230_vm1, %v5404_v7  ;;  %10428 = vmatpush3.msk.msra.mxu1 %vm327_vm0, %v6376_v24 }
 0x4be   :  { %10429 = vmatprep.mubr.msk.f32.mxu1 %vm10942_vm2, %v12332_v54  ;;  %10433 = vmatpush3.msk.msra.mxu0 %vm327_vm0, %v6377_v23 }
 0x4bf   :  { %v5477_v57 = vpop.f32.mrb[92].mxu1  ;;  %10434 = vmatprep.mubr.msk.f32.mxu0 %vm10942_vm2, %v12332_v54  ;;  %10437 = vmatprep.subr.mxu1 %v12332_v54 }
 0x4c0   :  { %v5550_v32 = vpop.f32.mrb[106].mxu0  ;;  %v10271_v58 = vpop.f32.mrb[93].mxu1  ;;  %10430 = vmatmul.mubr.msk.f32.vlgmr.msra.gmra.mrb[124].mxu1 %vm230_vm1, %v5477_v57  ;;  %10442 = vmatprep.subr.mxu0 %v12332_v54  ;;  %v12212_v57 = vld [vmem:[#allocation13 + $0x1] ss:$0 sm:$0xff] }
 0x4c1   :  { %v10276_v19 = vpop.f32.mrb[107].mxu0  ;;  %10435 = vmatmul.mubr.msk.f32.vlgmr.msra.gmra.mrb[138].mxu0 %vm230_vm1, %v5550_v32  ;;  %10438 = vmatpush3.msk.msra.mxu1 %vm327_vm0, %v6378_v10 }
 0x4c2   :  { %10439 = vmatprep.mubr.msk.f32.mxu1 %vm10942_vm2, %v12332_v54  ;;  %10443 = vmatpush3.msk.msra.mxu0 %vm327_vm0, %v6379_v21  ;;  %v120_v19 = vld [vmem:[#allocation5] sm:$0xff] }
 0x4c3   :  { %v5623_v47 = vpop.f32.mrb[94].mxu1  ;;  %10444 = vmatprep.mubr.msk.f32.mxu0 %vm10942_vm2, %v12332_v54  ;;  %10447 = vmatprep.subr.mxu1 %v12332_v54 }
 0x4c4   :  { %v5696_v34 = vpop.f32.mrb[108].mxu0  ;;  %v10281_v4 = vpop.f32.mrb[95].mxu1  ;;  %10440 = vmatmul.mubr.msk.f32.vlgmr.msra.gmra.mrb[126].mxu1 %vm230_vm1, %v5623_v47  ;;  %10452 = vmatprep.subr.mxu0 %v12332_v54 }
 0x4c5   :  { %v10286_v44 = vpop.f32.mrb[109].mxu0  ;;  %10445 = vmatmul.mubr.msk.f32.vlgmr.msra.gmra.mrb[140].mxu0 %vm230_vm1, %v5696_v34  ;;  %10448 = vmatpush3.msk.msra.mxu1 %vm327_vm0, %v6380_v11 }
 0x4c6   :  { %10449 = vmatprep.mubr.msk.f32.mxu1 %vm10942_vm2, %v12332_v54  ;;  %10453 = vmatpush3.msk.msra.mxu0 %vm327_vm0, %v6381_v46 }
 0x4c7   :  { %v5769_v0 = vpop.f32.mrb[96].mxu1  ;;  %10454 = vmatprep.mubr.msk.f32.mxu0 %vm10942_vm2, %v12332_v54  ;;  %10457 = vmatprep.subr.mxu1 %v12332_v54 }
 0x4c8   :  { %v5842_v36 = vpop.f32.mrb[110].mxu0  ;;  %v10291_v35 = vpop.f32.mrb[97].mxu1  ;;  %10450 = vmatmul.mubr.msk.f32.vlgmr.msra.gmra.mrb[128].mxu1 %vm230_vm1, %v5769_v0  ;;  %10462 = vmatprep.subr.mxu0 %v12332_v54 }
 0x4c9   :  { %v10296_v53 = vpop.f32.mrb[111].mxu0  ;;  %10455 = vmatmul.mubr.msk.f32.vlgmr.msra.gmra.mrb[142].mxu0 %vm230_vm1, %v5842_v36  ;;  %10458 = vmatpush3.msk.msra.mxu1 %vm327_vm0, %v6382_v61 }
 0x4ca   :  { %10459 = vmatprep.mubr.msk.f32.mxu1 %vm10942_vm2, %v12332_v54  ;;  %10463 = vmatpush3.msk.msra.mxu0 %vm327_vm0, %v6383_v18 }
 0x4cb   :  { %v5915_v25 = vpop.f32.mrb[98].mxu1  ;;  %10464 = vmatprep.mubr.msk.f32.mxu0 %vm10942_vm2, %v12332_v54  ;;  %10467 = vmatprep.subr.mxu1 %v12332_v54 }
 0x4cc   :  { %v5988_v5 = vpop.f32.mrb[112].mxu0  ;;  %v10301_v42 = vpop.f32.mrb[99].mxu1  ;;  %10460 = vmatmul.mubr.msk.f32.vlgmr.msra.gmra.mrb[130].mxu1 %vm230_vm1, %v5915_v25  ;;  %10472 = vmatprep.subr.mxu0 %v12332_v54 }
 0x4cd   :  { %v10306_v51 = vpop.f32.mrb[113].mxu0  ;;  %10465 = vmatmul.mubr.msk.f32.vlgmr.msra.gmra.mrb[144].mxu0 %vm230_vm1, %v5988_v5  ;;  %10468 = vmatpush3.msk.msra.mxu1 %vm327_vm0, %v6384_v1 }
 0x4ce   :  { %10469 = vmatprep.mubr.msk.f32.mxu1 %vm10942_vm2, %v12332_v54  ;;  %10473 = vmatpush3.msk.msra.mxu0 %vm327_vm0, %v6385_v28 }
 0x4cf   :  { %v6061_v14 = vpop.f32.mrb[100].mxu1  ;;  %10474 = vmatprep.mubr.msk.f32.mxu0 %vm10942_vm2, %v12332_v54  ;;  %10477 = vmatprep.subr.mxu1 %v12332_v54 }
 0x4d0   :  { %v6134_v37 = vpop.f32.mrb[114].mxu0  ;;  %v10311_v41 = vpop.f32.mrb[101].mxu1  ;;  %10470 = vmatmul.mubr.msk.f32.vlgmr.msra.gmra.mrb[132].mxu1 %vm230_vm1, %v6061_v14  ;;  %10482 = vmatprep.subr.mxu0 %v12332_v54 }
 0x4d1   :  { %v10316_v48 = vpop.f32.mrb[115].mxu0  ;;  %10475 = vmatmul.mubr.msk.f32.vlgmr.msra.gmra.mrb[146].mxu0 %vm230_vm1, %v6134_v37  ;;  %10478 = vmatpush3.msk.msra.mxu1 %vm327_vm0, %v6386_v33 }
 0x4d2   :  { %10479 = vmatprep.mubr.msk.f32.mxu1 %vm10942_vm2, %v12332_v54  ;;  %10483 = vmatpush3.msk.msra.mxu0 %vm327_vm0, %v6387_v2 }
 0x4d3   :  { %v6207_v59 = vpop.f32.mrb[102].mxu1  ;;  %10484 = vmatprep.mubr.msk.f32.mxu0 %vm10942_vm2, %v12332_v54  ;;  %10487 = vmatprep.subr.mxu1 %v12332_v54 }
 0x4d4   :  { %v6280_v20 = vpop.f32.mrb[116].mxu0  ;;  %v10321_v63 = vpop.f32.mrb[103].mxu1  ;;  %10480 = vmatmul.mubr.msk.f32.vlgmr.msra.gmra.mrb[134].mxu1 %vm230_vm1, %v6207_v59 }
 0x4d5   :  { %v10326_v8 = vpop.f32.mrb[117].mxu0  ;;  %10485 = vmatmul.mubr.msk.f32.vlgmr.msra.gmra.mrb[148].mxu0 %vm230_vm1, %v6280_v20  ;;  %10488 = vmatpush3.msk.msra.mxu1 %vm327_vm0, %v6388_v50 }
 0x4d6   :  { %10489 = vmatprep.mubr.msk.f32.mxu1 %vm10942_vm2, %v12332_v54 }
 0x4d7   :  { %v6353_v52 = vpop.f32.mrb[104].mxu1 }
 0x4d8   :  { %v10331_v3 = vpop.f32.mrb[105].mxu1  ;;  %10490 = vmatmul.mubr.msk.f32.vlgmr.msra.gmra.mrb[136].mxu1 %vm230_vm1, %v6353_v52 }
 0x54f   :  { %v6461_v26 = vpop.f32.mrb[118].mxu0 }
 0x550   :  { %v10336_v39 = vpop.f32.mrb[119].mxu0  ;;  %v8822_v12 = vsel %vm8821_vm4, %v6461_v26, 0.0 }
 0x553   :  { %v6537_v17 = vpop.f32.mrb[106].mxu1 }
 0x554   :  { %v8823_v16 = vsel %vm8821_vm4, %v6537_v17, 0.0  ;;  %v10341_v9 = vpop.f32.mrb[107].mxu1 }
 0x555   :  { %v8824_v15 = vadd.f32 %v8823_v16, %v8822_v12  ;;  %v121_v9 = vld [vmem:[#allocation5 + $0x8] sm:$0xff] }
 0x557   :  { %v6613_v27 = vpop.f32.mrb[120].mxu0 }
 0x558   :  { %v8825_v6 = vsel %vm8821_vm4, %v6613_v27, 0.0  ;;  %v10346_v45 = vpop.f32.mrb[121].mxu0 }
 0x559   :  { %v8826_v30 = vadd.f32 %v8825_v6, %v8824_v15 }
 0x55b   :  { %v6689_v54 = vpop.f32.mrb[108].mxu1 }
 0x55c   :  { %v8827_v22 = vsel %vm8821_vm4, %v6689_v54, 0.0  ;;  %v10351_v56 = vpop.f32.mrb[109].mxu1 }
 0x55d   :  { %v8828_v43 = vadd.f32 %v8827_v22, %v8826_v30 }
 0x55f   :  { %v6765_v55 = vpop.f32.mrb[122].mxu0 }
 0x560   :  { %v8829_v13 = vsel %vm8821_vm4, %v6765_v55, 0.0  ;;  %v10356_v29 = vpop.f32.mrb[123].mxu0 }
 0x561   :  { %v8830_v40 = vadd.f32 %v8829_v13, %v8828_v43 }
 0x563   :  { %v6841_v60 = vpop.f32.mrb[110].mxu1 }
 0x564   :  { %v8831_v31 = vsel %vm8821_vm4, %v6841_v60, 0.0  ;;  %v10361_v24 = vpop.f32.mrb[111].mxu1 }
 0x565   :  { %v8832_v49 = vadd.f32 %v8831_v31, %v8830_v40 }
 0x567   :  { %v6917_v23 = vpop.f32.mrb[124].mxu0 }
 0x568   :  { %v8833_v7 = vsel %vm8821_vm4, %v6917_v23, 0.0  ;;  %v10366_v62 = vpop.f32.mrb[125].mxu0 }
 0x569   :  { %v8834_v38 = vadd.f32 %v8833_v7, %v8832_v49 }
 0x56b   :  { %v6993_v10 = vpop.f32.mrb[112].mxu1 }
 0x56c   :  { %v8835_v21 = vsel %vm8821_vm4, %v6993_v10, 0.0  ;;  %v10371_v32 = vpop.f32.mrb[113].mxu1 }
 0x56d   :  { %v8836_v58 = vadd.f32 %v8835_v21, %v8834_v38 }
 0x56f   :  { %v8886_v11 = vadd.f32 %v12212_v57, %v8836_v58  ;;  %v7069_v47 = vpop.f32.mrb[126].mxu0 }
 0x570   :  { %v10376_v46 = vpop.f32.mrb[127].mxu0  ;;  %v8837_v61 = vsel %vm8821_vm4, %v7069_v47, 0.0 }
 0x571   :  { %v12216_v34 = vadd.f32 %v8886_v11, %v120_v19 }
 0x573   :  { %v7145_v4 = vpop.f32.mrb[114].mxu1  ;;  %v8894_v44 = vsel %vm8821_vm4, %v12216_v34, 0.0 }
 0x574   :  { %v8838_v0 = vsel %vm8821_vm4, %v7145_v4, 0.0  ;;  %v10381_v18 = vpop.f32.mrb[115].mxu1  ;;  %8895 = vadd.xlane.f32.xlu0 %v8894_v44 }
 0x575   :  { %v8839_v36 = vadd.f32 %v8838_v0, %v8837_v61 }
 0x577   :  { %v7221_v35 = vpop.f32.mrb[128].mxu0 }
 0x578   :  { %v8840_v53 = vsel %vm8821_vm4, %v7221_v35, 0.0  ;;  %v10386_v1 = vpop.f32.mrb[129].mxu0 }
 0x579   :  { %v8841_v25 = vadd.f32 %v8840_v53, %v8839_v36  ;;  %v122_v36 = vld [vmem:[#allocation5 + $0x10] sm:$0xff] }
 0x57b   :  { %v7297_v28 = vpop.f32.mrb[116].mxu1 }
 0x57c   :  { %v8842_v5 = vsel %vm8821_vm4, %v7297_v28, 0.0  ;;  %v10391_v42 = vpop.f32.mrb[117].mxu1 }
 0x57d   :  { %v8843_v51 = vadd.f32 %v8842_v5, %v8841_v25 }
 0x57f   :  { %v7373_v33 = vpop.f32.mrb[130].mxu0 }
 0x580   :  { %v8844_v14 = vsel %vm8821_vm4, %v7373_v33, 0.0  ;;  %v10396_v2 = vpop.f32.mrb[131].mxu0 }
 0x581   :  { %v8845_v37 = vadd.f32 %v8844_v14, %v8843_v51 }
 0x583   :  { %v7449_v41 = vpop.f32.mrb[118].mxu1 }
 0x584   :  { %v8846_v48 = vsel %vm8821_vm4, %v7449_v41, 0.0  ;;  %v10401_v50 = vpop.f32.mrb[119].mxu1 }
 0x585   :  { %v8847_v59 = vadd.f32 %v8846_v48, %v8845_v37 }
 0x587   :  { %v7525_v20 = vpop.f32.mrb[132].mxu0 }
 0x588   :  { %v8848_v63 = vsel %vm8821_vm4, %v7525_v20, 0.0  ;;  %v10406_v8 = vpop.f32.mrb[133].mxu0 }
 0x589   :  { %v8849_v52 = vadd.f32 %v8848_v63, %v8847_v59 }
 0x58b   :  { %v7601_v3 = vpop.f32.mrb[120].mxu1 }
 0x58c   :  { %v8850_v26 = vsel %vm8821_vm4, %v7601_v3, 0.0  ;;  %v7677_v39 = vpop.f32.mrb[134].mxu0  ;;  %v10411_v17 = vpop.f32.mrb[121].mxu1 }
 0x58d   :  { %v8851_v12 = vadd.f32 %v8850_v26, %v8849_v52  ;;  %v10416_v16 = vpop.f32.mrb[135].mxu0  ;;  %v8852_v6 = vsel %vm8821_vm4, %v7677_v39, 0.0 }
 0x58f   :  { %v8887_v15 = vadd.f32 %v12212_v57, %v8851_v12  ;;  %v7753_v27 = vpop.f32.mrb[122].mxu1 }
 0x590   :  { %v8853_v45 = vsel %vm8821_vm4, %v7753_v27, 0.0  ;;  %v7829_v30 = vpop.f32.mrb[136].mxu0  ;;  %v10421_v54 = vpop.f32.mrb[123].mxu1 }
 0x591   :  { %v8854_v22 = vadd.f32 %v8853_v45, %v8852_v6  ;;  %v10426_v56 = vpop.f32.mrb[137].mxu0  ;;  %v12231_v43 = vadd.f32 %v8887_v15, %v121_v9  ;;  %v8855_v55 = vsel %vm8821_vm4, %v7829_v30, 0.0  ;;  %v123_v54 = vld [vmem:[#allocation5 + $0x18] sm:$0xff] }
 0x593   :  { %v8856_v13 = vadd.f32 %v8855_v55, %v8854_v22  ;;  %v7905_v29 = vpop.f32.mrb[124].mxu1  ;;  %v8897_v40 = vsel %vm8821_vm4, %v12231_v43, 0.0 }
 0x594   :  { %v8857_v60 = vsel %vm8821_vm4, %v7905_v29, 0.0  ;;  %v7981_v31 = vpop.f32.mrb[138].mxu0  ;;  %v10431_v24 = vpop.f32.mrb[125].mxu1  ;;  %8898 = vadd.xlane.f32.xlu1 %v8897_v40 }
 0x595   :  { %v8858_v49 = vadd.f32 %v8857_v60, %v8856_v13  ;;  %v10436_v23 = vpop.f32.mrb[139].mxu0  ;;  %v8859_v7 = vsel %vm8821_vm4, %v7981_v31, 0.0 }
 0x597   :  { %v8860_v62 = vadd.f32 %v8859_v7, %v8858_v49  ;;  %v8057_v38 = vpop.f32.mrb[126].mxu1 }
 0x598   :  { %v8861_v10 = vsel %vm8821_vm4, %v8057_v38, 0.0  ;;  %v8133_v21 = vpop.f32.mrb[140].mxu0  ;;  %v10441_v32 = vpop.f32.mrb[127].mxu1 }
 0x599   :  { %v8862_v58 = vadd.f32 %v8861_v10, %v8860_v62  ;;  %v10446_v19 = vpop.f32.mrb[141].mxu0  ;;  %v8863_v11 = vsel %vm8821_vm4, %v8133_v21, 0.0 }
 0x59a   :  { %v8964_v19 = vld [vmem:[#allocation10 + $0x8] sm:$0xff] }
 0x59b   :  { %v8864_v47 = vadd.f32 %v8863_v11, %v8862_v58  ;;  %v8209_v46 = vpop.f32.mrb[128].mxu1 }
 0x59c   :  { %v8865_v4 = vsel %vm8821_vm4, %v8209_v46, 0.0  ;;  %v8285_v44 = vpop.f32.mrb[142].mxu0  ;;  %v10451_v61 = vpop.f32.mrb[129].mxu1 }
 0x59d   :  { %v8866_v0 = vadd.f32 %v8865_v4, %v8864_v47  ;;  %v10456_v18 = vpop.f32.mrb[143].mxu0  ;;  %v8867_v1 = vsel %vm8821_vm4, %v8285_v44, 0.0  ;;  %v8965_v4 = vld [vmem:[#allocation10 + $0x10] sm:$0xff]  ;;  %v8966_v44 = vld [vmem:[#allocation10 + $0x18] sm:$0xff] }
 0x59e   :  { %v9072_v18 = vld [vmem:[#allocation11] sm:$0xff] }
 0x59f   :  { %v8888_v35 = vadd.f32 %v12212_v57, %v8866_v0  ;;  %v8361_v53 = vpop.f32.mrb[130].mxu1  ;;  %v10548_v0 = vpack.c.bf16 %v8966_v44, %v8965_v4 }
 0x5a0   :  { %v8868_v25 = vsel %vm8821_vm4, %v8361_v53, 0.0  ;;  %v8437_v28 = vpop.f32.mrb[144].mxu0  ;;  %v10461_v5 = vpop.f32.mrb[131].mxu1 }
 0x5a1   :  { %v8869_v42 = vadd.f32 %v8868_v25, %v8867_v1  ;;  %v10466_v51 = vpop.f32.mrb[145].mxu0  ;;  %v8892_v33 = vadd.f32 %v8888_v35, %v122_v36  ;;  %v8870_v14 = vsel %vm8821_vm4, %v8437_v28, 0.0  ;;  %v9073_v36 = vld [vmem:[#allocation11 + $0x8] sm:$0xff]  ;;  %v9074_v35 = vld [vmem:[#allocation11 + $0x10] sm:$0xff]  ;;  %v9075_v1 = vld [vmem:[#allocation11 + $0x18] sm:$0xff] }
 0x5a2   :  { %v10552_v53 = vpack.c.bf16 %v9073_v36, %v9072_v18  ;;  %v10556_v25 = vpack.c.bf16 %v9075_v1, %v9074_v35  ;;  %v9076_v28 = vld [vmem:[#allocation11 + $0x20] sm:$0xff]  ;;  %v9077_v5 = vld [vmem:[#allocation11 + $0x28] sm:$0xff]  ;;  %v9078_v51 = vld [vmem:[#allocation11 + $0x30] sm:$0xff] }
 0x5a3   :  { %v8871_v2 = vadd.f32 %v8870_v14, %v8869_v42  ;;  %v8513_v37 = vpop.f32.mrb[132].mxu1  ;;  %v8900_v41 = vsel %vm8821_vm4, %v8892_v33, 0.0  ;;  %v10560_v42 = vpack.c.bf16 %v9077_v5, %v9076_v28 }
 0x5a4   :  { %v8872_v48 = vsel %vm8821_vm4, %v8513_v37, 0.0  ;;  %v8589_v50 = vpop.f32.mrb[146].mxu0  ;;  %v10471_v59 = vpop.f32.mrb[133].mxu1  ;;  %8901 = vadd.xlane.f32.xlu0 %v8900_v41  ;;  %10553 = vmatprep.subr.bf16.mxu1 %v10552_v53  ;;  %v9081_v37 = vld [vmem:[#allocation11 + $0x48] sm:$0xff] }
 0x5a5   :  { %v8873_v20 = vadd.f32 %v8872_v48, %v8871_v2  ;;  %v10476_v63 = vpop.f32.mrb[147].mxu0  ;;  %v8874_v8 = vsel %vm8821_vm4, %v8589_v50, 0.0  ;;  %10555 = vmatpush3.bf16.msra.mxu1 %v10552_v53  ;;  %v9080_v2 = vld [vmem:[#allocation11 + $0x40] sm:$0xff]  ;;  %v9082_v48 = vld [vmem:[#allocation11 + $0x50] sm:$0xff]  ;;  %v9083_v50 = vld [vmem:[#allocation11 + $0x58] sm:$0xff] }
 0x5a6   :  { %10557 = vmatprep.subr.bf16.mxu1 %v10556_v25  ;;  %v10568_v41 = vpack.c.bf16 %v9081_v37, %v9080_v2  ;;  %v10572_v59 = vpack.c.bf16 %v9083_v50, %v9082_v48  ;;  %v9085_v63 = vld [vmem:[#allocation11 + $0x68] sm:$0xff]  ;;  %v9540_v53 = vld [vmem:[#allocation13 + $0x2] ss:$0 sm:$0xff] }
 0x5a7   :  { %v8875_v52 = vadd.f32 %v8874_v8, %v8873_v20  ;;  %v8665_v3 = vpop.f32.mrb[134].mxu1  ;;  %v9084_v20 = vld [vmem:[#allocation11 + $0x60] sm:$0xff] }
 0x5a8   :  { %v8876_v26 = vsel %vm8821_vm4, %v8665_v3, 0.0  ;;  %v8741_v39 = vpop.f32.mrb[148].mxu0  ;;  %v10481_v17 = vpop.f32.mrb[135].mxu1  ;;  %v10576_v8 = vpack.c.bf16 %v9085_v63, %v9084_v20 }
 0x5a9   :  { %v8877_v12 = vadd.f32 %v8876_v26, %v8875_v52  ;;  %v10486_v16 = vpop.f32.mrb[149].mxu0  ;;  %v8878_v9 = vsel %vm8821_vm4, %v8741_v39, 0.0  ;;  %10559 = vmatpush3.bf16.msra.mxu1 %v10556_v25  ;;  %v9533_v17 = vld [vmem:[#allocation13 + $0x3] ss:$0 sm:$0xff] }
 0x5aa   :  { %10561 = vmatprep.subr.bf16.mxu1 %v10560_v42  ;;  %v9534_v16 = vld [vmem:[#allocation13 + $0x4] ss:$0 sm:$0xff] }
 0x5ab   :  { %v8879_v15 = vadd.f32 %v8878_v9, %v8877_v12  ;;  %v8817_v27 = vpop.f32.mrb[136].mxu1 }
 0x5ac   :  { %v8880_v6 = vsel %vm8821_vm4, %v8817_v27, 0.0  ;;  %v10491_v45 = vpop.f32.mrb[137].mxu1 }
 0x5ad   :  { %v8881_v30 = vadd.f32 %v8880_v6, %v8879_v15  ;;  %10563 = vmatpush3.bf16.msra.mxu1 %v10560_v42 }
 0x5af   :  { %v8889_v22 = vadd.f32 %v12212_v57, %v8881_v30 }
 0x5b1   :  { %v8893_v56 = vadd.f32 %v8889_v22, %v123_v54 }
 0x5b3   :  { %v8903_v55 = vsel %vm8821_vm4, %v8893_v56, 0.0 }
 0x5b4   :  { %8904 = vadd.xlane.f32.xlu1 %v8903_v55 }
 0x601   :  { %v8896_v13 = vpop.xlane.xlu0 %8895 }
 0x602   :  { %v8907_v29 = vmul.f32 0.03125, %v8896_v13 }
 0x604   :  { %v12254_v40 = vsub.f32 %v12216_v34, %v8907_v29 }
 0x606   :  { %v8915_v60 = vmul.f32 %v12254_v40, %v12254_v40 }
 0x608   :  { %v8919_v31 = vsel %vm8821_vm4, %v8915_v60, 0.0 }
 0x609   :  { %8920 = vadd.xlane.f32.xlu0 %v8919_v31 }
 0x621   :  { %v8899_v24 = vpop.xlane.xlu1 %8898 }
 0x622   :  { %v8908_v49 = vmul.f32 0.03125, %v8899_v24 }
 0x624   :  { %v12260_v23 = vsub.f32 %v12231_v43, %v8908_v49  ;;  %v8963_v43 = vld [vmem:[#allocation10] sm:$0xff] }
 0x625   :  { %v10544_v47 = vpack.c.bf16 %v8964_v19, %v8963_v43 }
 0x626   :  { %v8916_v57 = vmul.f32 %v12260_v23, %v12260_v23 }
 0x627   :  { %10545 = vmatprep.subr.bf16.mxu0 %v10544_v47 }
 0x628   :  { %v8922_v7 = vsel %vm8821_vm4, %v8916_v57, 0.0  ;;  %10547 = vmatpush3.bf16.msra.mxu0 %v10544_v47 }
 0x629   :  { %8923 = vadd.xlane.f32.xlu1 %v8922_v7  ;;  %10549 = vmatprep.subr.bf16.mxu0 %v10548_v0 }
 0x62c   :  { %10551 = vmatpush3.bf16.msra.mxu0 %v10548_v0 }
 0x631   :  { %v8902_v62 = vpop.xlane.xlu0 %8901 }
 0x632   :  { %v8909_v34 = vmul.f32 0.03125, %v8902_v62 }
 0x634   :  { %v12265_v38 = vsub.f32 %v8892_v33, %v8909_v34  ;;  %v9079_v33 = vld [vmem:[#allocation11 + $0x38] sm:$0xff] }
 0x635   :  { %v10564_v14 = vpack.c.bf16 %v9079_v33, %v9078_v51 }
 0x636   :  { %v8917_v10 = vmul.f32 %v12265_v38, %v12265_v38 }
 0x637   :  { %10565 = vmatprep.subr.bf16.mxu1 %v10564_v14 }
 0x638   :  { %v8925_v21 = vsel %vm8821_vm4, %v8917_v10, 0.0  ;;  %10567 = vmatpush3.bf16.msra.mxu1 %v10564_v14 }
 0x639   :  { %8926 = vadd.xlane.f32.xlu0 %v8925_v21  ;;  %10569 = vmatprep.subr.bf16.mxu1 %v10568_v41  ;;  %v9086_v21 = vld [vmem:[#allocation11 + $0x70] sm:$0xff] }
 0x63c   :  { %10571 = vmatpush3.bf16.msra.mxu1 %v10568_v41 }
 0x63d   :  { %10573 = vmatprep.subr.bf16.mxu1 %v10572_v59 }
 0x640   :  { %10575 = vmatpush3.bf16.msra.mxu1 %v10572_v59 }
 0x641   :  { %v8905_v32 = vpop.xlane.xlu1 %8904  ;;  %10577 = vmatprep.subr.bf16.mxu1 %v10576_v8 }
 0x642   :  { %v8910_v58 = vmul.f32 0.03125, %v8905_v32  ;;  %v9087_v32 = vld [vmem:[#allocation11 + $0x78] sm:$0xff] }
 0x644   :  { %v12270_v11 = vsub.f32 %v8893_v56, %v8910_v58  ;;  %10579 = vmatpush3.bf16.msra.mxu1 %v10576_v8  ;;  %v10580_v58 = vpack.c.bf16 %v9087_v32, %v9086_v21  ;;  %v9542_v21 = vld [vmem:[#allocation13 + $0x6] ss:$0 sm:$0xff] }
 0x646   :  { %v8918_v46 = vmul.f32 %v12270_v11, %v12270_v11  ;;  %10581 = vmatprep.subr.bf16.mxu1 %v10580_v58 }
 0x648   :  { %v8928_v61 = vsel %vm8821_vm4, %v8918_v46, 0.0  ;;  %10583 = vmatpush3.bf16.msra.mxu1 %v10580_v58 }
 0x649   :  { %8929 = vadd.xlane.f32.xlu1 %v8928_v61 }
 0x696   :  { %v8921_v52 = vpop.xlane.xlu0 %8920 }
 0x697   :  { %v8931_v3 = vmul.f32 0.03125, %v8921_v52 }
 0x699   :  { %v8935_v26 = vadd.f32 1e-05, %v8931_v3 }
 0x69b   :  { %10728 = vrsqrt.f32 %v8935_v26 }
 0x6a5   :  { %v10729_v39 = vpop.eup %10728 }
 0x6a6   :  { %v8943_v12 = vmul.f32 %v10729_v39, %v12254_v40 }
 0x6a8   :  { %v8951_v9 = vmul.f32 %v9533_v17, %v8943_v12 }
 0x6aa   :  { %v8959_v15 = vadd.f32 %v9534_v16, %v8951_v9 }
 0x6ac   :  { %10500 = vmatprep.mubr.msk.f32.mxu0 %vm8821_vm4, %v8959_v15 }
 0x6b6   :  { %v8924_v27 = vpop.xlane.xlu1 %8923 }
 0x6b7   :  { %v8932_v6 = vmul.f32 0.03125, %v8924_v27 }
 0x6b9   :  { %v8936_v45 = vadd.f32 1e-05, %v8932_v6 }
 0x6bb   :  { %10730 = vrsqrt.f32 %v8936_v45 }
 0x6c5   :  { %v10731_v30 = vpop.eup %10730 }
 0x6c6   :  { %v8944_v54 = vmul.f32 %v10731_v30, %v12260_v23  ;;  %v8927_v22 = vpop.xlane.xlu0 %8926 }
 0x6c7   :  { %v8933_v56 = vmul.f32 0.03125, %v8927_v22 }
 0x6c8   :  { %v8952_v55 = vmul.f32 %v9533_v17, %v8944_v54 }
 0x6c9   :  { %v8937_v13 = vadd.f32 1e-05, %v8933_v56 }
 0x6ca   :  { %v8960_v29 = vadd.f32 %v9534_v16, %v8952_v55 }
 0x6cb   :  { %10732 = vrsqrt.f32 %v8937_v13 }
 0x6cc   :  { %10501 = vmatmul.mubr.msk.f32.vlgmr.msra.gmra.mrb[150].mxu0 %vm8821_vm4, %v8960_v29 }
 0x6d5   :  { %v10733_v40 = vpop.eup %10732 }
 0x6d6   :  { %v8930_v60 = vpop.xlane.xlu1 %8929  ;;  %v8945_v31 = vmul.f32 %v10733_v40, %v12265_v38  ;;  %v9535_v38 = vld [vmem:[#allocation13] ss:$0 sm:$0xff] }
 0x6d7   :  { %v8934_v24 = vmul.f32 0.03125, %v8930_v60 }
 0x6d8   :  { %v8953_v49 = vmul.f32 %v9533_v17, %v8945_v31 }
 0x6d9   :  { %v8938_v57 = vadd.f32 1e-05, %v8934_v24 }
 0x6da   :  { %v8961_v7 = vadd.f32 %v9534_v16, %v8953_v49 }
 0x6db   :  { %10734 = vrsqrt.f32 %v8938_v57 }
 0x6dc   :  { %10503 = vmatprep.mubr.msk.f32.mxu0 %vm8821_vm4, %v8961_v7 }
 0x6e5   :  { %v10735_v23 = vpop.eup %10734 }
 0x6e6   :  { %v8946_v62 = vmul.f32 %v10735_v23, %v12270_v11  ;;  %v9541_v23 = vld [vmem:[#allocation13 + $0x5] ss:$0 sm:$0xff] }
 0x6e8   :  { %v8954_v34 = vmul.f32 %v9533_v17, %v8946_v62 }
 0x6ea   :  { %v8962_v10 = vadd.f32 %v9534_v16, %v8954_v34 }
 0x6ec   :  { %10504 = vmatmul.mubr.msk.f32.gmra.mrb[152].mxu0 %vm8821_vm4, %v8962_v10 }
 0x79f   :  { %v10502_v43 = vpop.f32.mrb[150].mxu0 }
 0x7a0   :  { %v9055_v19 = vadd.f32 %v10502_v43, %v9535_v38  ;;  %v9049_v47 = vpop.f32.mrb[151].mxu0 }
 0x7a1   :  { %v9050_v46 = vadd.f32 %v9535_v38, %v9049_v47 }
 0x7a2   :  { %v9069_v44 = vmax.f32 %v9055_v19, 0.0 }
 0x7a3   :  { %v9068_v4 = vmax.f32 %v9050_v46, 0.0 }
 0x7a5   :  { %10538 = vmatprep.mubr.f32.mxu1 %v9068_v4 }
 0x7a6   :  { %10539 = vmatmul.mubr.f32.vlgmr.msra.gmra.mrb[138].mxu1 %v9069_v44 }
 0x7bf   :  { %v10505_v61 = vpop.f32.mrb[152].mxu0 }
 0x7c0   :  { %v9065_v11 = vadd.f32 %v10505_v61, %v9535_v38  ;;  %v9059_v0 = vpop.f32.mrb[153].mxu0 }
 0x7c1   :  { %v9060_v18 = vadd.f32 %v9535_v38, %v9059_v0 }
 0x7c2   :  { %v9071_v35 = vmax.f32 %v9065_v11, 0.0 }
 0x7c3   :  { %v9070_v36 = vmax.f32 %v9060_v18, 0.0 }
 0x7c5   :  { %10541 = vmatprep.mubr.f32.mxu1 %v9070_v36 }
 0x7c6   :  { %10542 = vmatmul.mubr.f32.gmra.mrb[140].mxu1 %v9071_v35 }
 0x879   :  { %v10540_v1 = vpop.f32.mrb[138].mxu1 }
 0x87a   :  { %v9164_v25 = vadd.f32 %v10540_v1, %v9540_v53  ;;  %v9158_v28 = vpop.f32.mrb[139].mxu1 }
 0x87b   :  { %v9159_v5 = vadd.f32 %v9540_v53, %v9158_v28 }
 0x87c   :  { %v9178_v42 = vadd.f32 %v9164_v25, %v8960_v29 }
 0x87d   :  { %v9177_v51 = vadd.f32 %v9159_v5, %v8959_v15 }
 0x87e   :  { %v9184_v33 = vsel %vm8821_vm4, %v9178_v42, 0.0 }
 0x87f   :  { %9185 = vadd.xlane.f32.xlu1 %v9184_v33  ;;  %v9181_v14 = vsel %vm8821_vm4, %v9177_v51, 0.0 }
 0x880   :  { %9182 = vadd.xlane.f32.xlu0 %v9181_v14 }
 0x899   :  { %v10543_v2 = vpop.f32.mrb[140].mxu1 }
 0x89a   :  { %v9174_v37 = vadd.f32 %v10543_v2, %v9540_v53  ;;  %v9168_v41 = vpop.f32.mrb[141].mxu1 }
 0x89b   :  { %v9169_v48 = vadd.f32 %v9540_v53, %v9168_v41 }
 0x89c   :  { %v9180_v50 = vadd.f32 %v9174_v37, %v8962_v10 }
 0x89d   :  { %v9179_v59 = vadd.f32 %v9169_v48, %v8961_v7 }
 0x89e   :  { %v9190_v20 = vsel %vm8821_vm4, %v9180_v50, 0.0 }
 0x89f   :  { %9191 = vadd.xlane.f32.xlu1 %v9190_v20  ;;  %v9187_v63 = vsel %vm8821_vm4, %v9179_v59, 0.0 }
 0x8a0   :  { %9188 = vadd.xlane.f32.xlu0 %v9187_v63 }
 0x90c   :  { %v9186_v8 = vpop.xlane.xlu1 %9185 }
 0x90d   :  { %v9194_v52 = vmul.f32 0.03125, %v9186_v8  ;;  %v9183_v3 = vpop.xlane.xlu0 %9182 }
 0x90e   :  { %v9193_v26 = vmul.f32 0.03125, %v9183_v3 }
 0x90f   :  { %v9198_v39 = vsub.f32 %v9178_v42, %v9194_v52 }
 0x910   :  { %v9197_v17 = vsub.f32 %v9177_v51, %v9193_v26 }
 0x911   :  { %v9202_v12 = vmul.f32 %v9198_v39, %v9198_v39 }
 0x912   :  { %v9201_v16 = vmul.f32 %v9197_v17, %v9197_v17 }
 0x913   :  { %v9208_v9 = vsel %vm8821_vm4, %v9202_v12, 0.0 }
 0x914   :  { %9209 = vadd.xlane.f32.xlu1 %v9208_v9  ;;  %v9205_v15 = vsel %vm8821_vm4, %v9201_v16, 0.0 }
 0x915   :  { %9206 = vadd.xlane.f32.xlu0 %v9205_v15 }
 0x92c   :  { %v9192_v27 = vpop.xlane.xlu1 %9191 }
 0x92d   :  { %v9196_v6 = vmul.f32 0.03125, %v9192_v27  ;;  %v9189_v45 = vpop.xlane.xlu0 %9188 }
 0x92e   :  { %v9195_v30 = vmul.f32 0.03125, %v9189_v45 }
 0x92f   :  { %v9200_v54 = vsub.f32 %v9180_v50, %v9196_v6 }
 0x930   :  { %v9199_v22 = vsub.f32 %v9179_v59, %v9195_v30 }
 0x931   :  { %v9204_v56 = vmul.f32 %v9200_v54, %v9200_v54 }
 0x932   :  { %v9203_v55 = vmul.f32 %v9199_v22, %v9199_v22 }
 0x933   :  { %v9214_v13 = vsel %vm8821_vm4, %v9204_v56, 0.0 }
 0x934   :  { %9215 = vadd.xlane.f32.xlu1 %v9214_v13  ;;  %v9211_v29 = vsel %vm8821_vm4, %v9203_v55, 0.0 }
 0x935   :  { %9212 = vadd.xlane.f32.xlu0 %v9211_v29 }
 0x9a1   :  { %v9210_v40 = vpop.xlane.xlu1 %9209 }
 0x9a2   :  { %v9218_v60 = vmul.f32 0.03125, %v9210_v40  ;;  %v9207_v31 = vpop.xlane.xlu0 %9206 }
 0x9a3   :  { %v9217_v24 = vmul.f32 0.03125, %v9207_v31 }
 0x9a4   :  { %v9222_v49 = vadd.f32 1e-05, %v9218_v60 }
 0x9a5   :  { %v9221_v57 = vadd.f32 1e-05, %v9217_v24 }
 0x9a6   :  { %10736 = vrsqrt.f32 %v9222_v49 }
 0x9a7   :  { %10738 = vrsqrt.f32 %v9221_v57 }
 0x9b0   :  { %v10737_v7 = vpop.eup %10736 }
 0x9b1   :  { %v10739_v62 = vpop.eup %10738  ;;  %v9230_v34 = vmul.f32 %v10737_v7, %v9198_v39 }
 0x9b2   :  { %v9229_v10 = vmul.f32 %v10739_v62, %v9197_v17 }
 0x9b3   :  { %v9238_v32 = vmul.f32 %v9541_v23, %v9230_v34 }
 0x9b4   :  { %v9237_v58 = vmul.f32 %v9541_v23, %v9229_v10 }
 0x9b5   :  { %v9246_v38 = vadd.f32 %v9542_v21, %v9238_v32 }
 0x9b6   :  { %v9245_v43 = vadd.f32 %v9542_v21, %v9237_v58 }
 0x9b7   :  { %9250 = vst.msk [vmem:[#allocation14 + $0x8] sm:$0xff] %vm8821_vm4, %v9246_v38 }
 0x9b8   :  { %9249 = vst.msk [vmem:[#allocation14] sm:$0xff] %vm8821_vm4, %v9245_v43 }
 0x9c1   :  { %v9216_v19 = vpop.xlane.xlu1 %9215 }
 0x9c2   :  { %v9220_v47 = vmul.f32 0.03125, %v9216_v19  ;;  %v9213_v46 = vpop.xlane.xlu0 %9212 }
 0x9c3   :  { %v9219_v4 = vmul.f32 0.03125, %v9213_v46 }
 0x9c4   :  { %v9224_v44 = vadd.f32 1e-05, %v9220_v47 }
 0x9c5   :  { %v9223_v61 = vadd.f32 1e-05, %v9219_v4 }
 0x9c6   :  { %10740 = vrsqrt.f32 %v9224_v44 }
 0x9c7   :  { %10742 = vrsqrt.f32 %v9223_v61 }
 0x9d0   :  { %v10741_v11 = vpop.eup %10740 }
 0x9d1   :  { %v10743_v0 = vpop.eup %10742  ;;  %v9232_v18 = vmul.f32 %v10741_v11, %v9200_v54 }
 0x9d2   :  { %v9231_v36 = vmul.f32 %v10743_v0, %v9199_v22 }
 0x9d3   :  { %v9240_v35 = vmul.f32 %v9541_v23, %v9232_v18 }
 0x9d4   :  { %v9239_v53 = vmul.f32 %v9541_v23, %v9231_v36 }
 0x9d5   :  { %v9248_v1 = vadd.f32 %v9542_v21, %v9240_v35 }
 0x9d6   :  { %v9247_v25 = vadd.f32 %v9542_v21, %v9239_v53 }
 0x9d7   :  { %9252 = vst.msk [vmem:[#allocation14 + $0x18] sm:$0xff] %vm8821_vm4, %v9248_v1 }
 0x9d8   :  { %9251 = vst.msk [vmem:[#allocation14 + $0x10] sm:$0xff] %vm8821_vm4, %v9247_v25 }
 0x9d9   :  { %10909 = shalt.err (!%p10906_p4)
}
 0x9da   :  { %s10910_s21 = scalar_lea.hbm %s12317_s7, 512 }
 0x9db   :  { %p10911_p5 = scmp.ne.s32.totalorder %s12317_s7, %s10910_s21  ;;  %p10914_p6 = scmp.lt.u32.totalorder %s10910_s21, %s12317_s7 }
 0x9dd   :  { %p10916_p7 = pnand %p10914_p6, %p10911_p5 }
 0x9df   :  { %10919 = shalt.err (!%p10916_p7)
}
 0x9e0   :  { %9264 = dma.vmem_to_hbm [thread:$0]  %s9259_s16, 512, %s12317_s7, [#allocation4], %s10931_s11, %s10931_s11, %s10932_s12  }
 0x9e1   :  { %10928 = dma.done.wait [#allocation4], 512  }
 0x9e2   :  { %10929 = vsyncadd [#allocation4], 4294966784 }
 0x9e3   :  { %9268 = vsyncpa [#allocation3], 1 }
 0x9e4   :  { %9269 = vsyncpa [#allocation6], 1 }
 0x9e5   :  { %9270 = vsyncpa [#allocation9], 1 }
 0x9e6   :  { %9271 = vsyncpa [#allocation12], 1 }
 0x9e7   :  { %9272 = vsyncpa [#allocation4], 1 }

</bundles_post_ra>
